<compile_context>
chip_gen: v6e
topology: v6e:2x2x1
jax: 0.10.0
libtpu: 0.0.40
codegen_flags: <defaults>
</compile_context>

<pallas_src>
import functools

import jax
import jax.numpy as jnp
from jax import lax
from jax.experimental import pallas as pl
from jax.experimental.pallas import tpu as pltpu

RRELU_SLOPE = (1.0 / 8.0 + 1.0 / 3.0) / 2.0   # RReLU eval slope
BN_EPS = 1e-5
SUB = 16       # sublane padding multiple (16 keeps bf16 MXU operands aligned)
LANE = 128     # lane multiple
VMEM_LIMIT = 32 * 1024 * 1024   # safe scoped-VMEM limit on v5e / v6e / v7x


# ----------------------------- small helpers --------------------------------

def _ru(n, m):
    return ((n + m - 1) // m) * m


def _default_tile_m():
    """Generation-aware M tile: bigger on 128-MiB-VMEM parts (v5e/v6e),
    smaller on v7x (64 MiB)."""
    try:
        vmem = pltpu.get_tpu_info().vmem_capacity_bytes
        return 1024 if vmem >= (96 << 20) else 512
    except Exception:
        return 512


def _act(x, mode):
    if mode == "none":
        return x
    if mode == "relu6":
        return jnp.clip(x, 0.0, 6.0)
    if mode == "leaky":              # RReLU in eval mode
        return jnp.where(x >= 0, x, x * RRELU_SLOPE)
    if mode == "tanh":
        return jnp.tanh(x)
    raise ValueError(mode)


def _grid_m(M, tile_m):
    Mp = _ru(max(M, 1), SUB)
    if Mp > tile_m:
        Mp = _ru(Mp, tile_m)
        bm = tile_m
    else:
        bm = Mp
    return Mp, bm


# ----------------------------- Pallas kernels --------------------------------

def _matmul_fused_kernel(a_ref, b_ref, bias_ref, ps_ref, ph_ref, o_ref, *,
                         post_act):
    # o = post_scale * act(A @ B + bias) + post_shift
    # (epilogue math in f32; only the MXU operands are bf16)
    a = a_ref[...].astype(jnp.bfloat16)
    acc = jnp.dot(a, b_ref[...], preferred_element_type=jnp.float32)
    o_ref[...] = ps_ref[...] * _act(acc + bias_ref[...], post_act) + ph_ref[...]


def _resblock_kernel(a_ref, w1_ref, b1_ref, s2_ref, h2_ref, w2_ref, b2_ref,
                     ps_ref, ph_ref, res_ref, o_ref, *, post_act):
    # Whole ResidualBlock (minus its first BN+RReLU, applied on the host side
    # so conv zero-padding stays exact):
    #   mid = RReLU(BN2(conv3x3(a) + b1))
    #   y   = res + conv1x1(mid) + b2
    #   o   = post_scale * act(y) + post_shift   (fuses the next ReLU6+BN when
    #                                             requested, e.g. decoder)
    a = a_ref[...].astype(jnp.bfloat16)
    acc1 = jnp.dot(a, w1_ref[...], preferred_element_type=jnp.float32)
    mid = _act(s2_ref[...] * (acc1 + b1_ref[...]) + h2_ref[...], "leaky")
    acc2 = jnp.dot(mid.astype(jnp.bfloat16), w2_ref[...],
                   preferred_element_type=jnp.float32)
    y = acc2 + b2_ref[...] + res_ref[...]
    o_ref[...] = ps_ref[...] * _act(y, post_act) + ph_ref[...]


def _quantize_kernel(z_ref, e_ref, colbias_ref, q_ref):
    # Nearest-codebook lookup.  Distance math stays in f32 for argmin/tie
    # stability.  colbias = ||e||^2 (+1e30 for padded codebook rows).
    z = z_ref[...]                                   # (bm, D)
    e = e_ref[...]                                   # (Sp, D)
    zn = jnp.sum(z * z, axis=-1, keepdims=True)
    cross = lax.dot_general(z, e, (((1,), (1,)), ((), ())),
                            preferred_element_type=jnp.float32)   # z @ e^T
    d = zn - 2.0 * cross + colbias_ref[...]
    dmin = jnp.min(d, axis=-1, keepdims=True)
    iota = lax.broadcasted_iota(jnp.int32, d.shape, 1)
    big = jnp.iinfo(jnp.int32).max
    idx = jnp.min(jnp.where(d <= dmin, iota, big), axis=-1, keepdims=True)
    onehot = (iota == idx).astype(jnp.float32)
    q_ref[...] = jnp.dot(onehot, e, preferred_element_type=jnp.float32)


# ----------------------------- kernel wrappers --------------------------------

def matmul_fused(a, bmat, bias, ps, ph, post_act, tile_m):
    """(M,K)@(K,Np) + bias -> activation -> per-channel affine.
    Weights stay resident across the M-tiled grid; output is lane-padded."""
    M, K = a.shape
    Np = bmat.shape[1]
    Mp, bm = _grid_m(M, tile_m)
    ap = jnp.pad(a, ((0, Mp - M), (0, 0)))
    out = pl.pallas_call(
        functools.partial(_matmul_fused_kernel, post_act=post_act),
        grid=(Mp // bm,),
        in_specs=[pl.BlockSpec((bm, K), lambda i: (i, 0)),
                  pl.BlockSpec((K, Np), lambda i: (0, 0)),   # weights resident
                  pl.BlockSpec((1, Np), lambda i: (0, 0)),
                  pl.BlockSpec((1, Np), lambda i: (0, 0)),
                  pl.BlockSpec((1, Np), lambda i: (0, 0))],
        out_specs=pl.BlockSpec((bm, Np), lambda i: (i, 0)),
        out_shape=jax.ShapeDtypeStruct((Mp, Np), jnp.float32),
        compiler_params=pltpu.CompilerParams(
            dimension_semantics=("parallel",),
            vmem_limit_bytes=VMEM_LIMIT),
    )(ap, bmat, bias, ps, ph)
    return out


def im2col(x, k, s, p):
    """x: NHWC.  Returns patches (N*Ho*Wo, k*k*C) ordered (di, dj, c)."""
    N, H, W, C = x.shape
    xp = jnp.pad(x, ((0, 0), (p, p), (p, p), (0, 0)))
    Ho = (H + 2 * p - k) // s + 1
    Wo = (W + 2 * p - k) // s + 1
    cols = []
    for di in range(k):
        for dj in range(k):
            cols.append(xp[:, di:di + (Ho - 1) * s + 1:s,
                           dj:dj + (Wo - 1) * s + 1:s, :])
    patches = jnp.concatenate(cols, axis=-1)
    return patches.reshape(N * Ho * Wo, k * k * C), (N, Ho, Wo)


def conv2d_fused(x, cp, k, s, p, post_act, cout, tile_m):
    patches, (N, Ho, Wo) = im2col(x, k, s, p)
    out = matmul_fused(patches, cp["B"], cp["bias"], cp["ps"], cp["ph"],
                       post_act, tile_m)
    M = N * Ho * Wo
    return out[:M, :cout].reshape(N, Ho, Wo, cout)


def dilate(x, s):
    if s == 1:
        return x
    N, H, W, C = x.shape
    out = jnp.zeros((N, (H - 1) * s + 1, (W - 1) * s + 1, C), x.dtype)
    return out.at[:, ::s, ::s, :].set(x)


def conv_transpose2d_fused(x, cp, k, s, p, post_act, cout, tile_m):
    # TODO(synk): sub-pixel decomposition would avoid the (s^2-1)/s^2 zero
    #             rows introduced by dilation on the stride-2 layers.
    xd = dilate(x, s)
    return conv2d_fused(xd, cp, k, 1, k - 1 - p, post_act, cout, tile_m)


def resblock_apply(x, rp, tile_m, post_act="none", ps=None, ph=None):
    """Whole ResidualBlock in a single Pallas call (two chained MXU matmuls,
    fused BN+RReLU in between, residual add and optional next-layer ReLU6+BN
    in the epilogue)."""
    N, H, W, C = x.shape
    # First BN+RReLU is applied on the host side (XLA fuses it into the im2col
    # gather) so the zero-padding of the 3x3 conv stays exact (act(0) == 0).
    xa = _act(x * rp["bn1_s"] + rp["bn1_h"], "leaky")
    patches, _ = im2col(xa, 3, 1, 1)
    M = N * H * W
    K1 = patches.shape[1]
    Np = rp["w1m"].shape[1]
    Mp, bm = _grid_m(M, tile_m)
    ap = jnp.pad(patches, ((0, Mp - M), (0, 0)))
    res = jnp.pad(x.reshape(M, C), ((0, Mp - M), (0, Np - C)))
    if ps is None:
        ps = jnp.ones((1, Np), jnp.float32)
    if ph is None:
        ph = jnp.zeros((1, Np), jnp.float32)
    out = pl.pallas_call(
        functools.partial(_resblock_kernel, post_act=post_act),
        grid=(Mp // bm,),
        in_specs=[pl.BlockSpec((bm, K1), lambda i: (i, 0)),
                  pl.BlockSpec((K1, Np), lambda i: (0, 0)),
                  pl.BlockSpec((1, Np), lambda i: (0, 0)),
                  pl.BlockSpec((1, Np), lambda i: (0, 0)),
                  pl.BlockSpec((1, Np), lambda i: (0, 0)),
                  pl.BlockSpec((Np, Np), lambda i: (0, 0)),
                  pl.BlockSpec((1, Np), lambda i: (0, 0)),
                  pl.BlockSpec((1, Np), lambda i: (0, 0)),
                  pl.BlockSpec((1, Np), lambda i: (0, 0)),
                  pl.BlockSpec((bm, Np), lambda i: (i, 0))],
        out_specs=pl.BlockSpec((bm, Np), lambda i: (i, 0)),
        out_shape=jax.ShapeDtypeStruct((Mp, Np), jnp.float32),
        compiler_params=pltpu.CompilerParams(
            dimension_semantics=("parallel",),
            vmem_limit_bytes=VMEM_LIMIT),
    )(ap, rp["w1m"], rp["b1"], rp["s2"], rp["h2"], rp["w2m"], rp["b2"],
      ps, ph, res)
    return out[:M, :C].reshape(N, H, W, C)


def quantize(zf, qp, tile_m):
    """Nearest-codebook lookup.  zf: (M, D) -> q: (M, D)."""
    M, D = zf.shape
    Sp = qp["e"].shape[0]
    Mp, bm = _grid_m(M, tile_m)
    zp = jnp.pad(zf, ((0, Mp - M), (0, 0)))
    q = pl.pallas_call(
        _quantize_kernel,
        grid=(Mp // bm,),
        in_specs=[pl.BlockSpec((bm, D), lambda i: (i, 0)),
                  pl.BlockSpec((Sp, D), lambda i: (0, 0)),
                  pl.BlockSpec((1, Sp), lambda i: (0, 0))],
        out_specs=pl.BlockSpec((bm, D), lambda i: (i, 0)),
        out_shape=jax.ShapeDtypeStruct((Mp, D), jnp.float32),
        compiler_params=pltpu.CompilerParams(
            dimension_semantics=("parallel",),
            vmem_limit_bytes=VMEM_LIMIT),
    )(zp, qp["e"], qp["colbias"])
    return q[:M]


# ----------------------------- model pieces ----------------------------------

def encoder(x, P, code_dim, tile_m):
    # PyTorch order is Conv -> ReLU6 -> BN; the epilogue applies act-then-affine.
    h = conv2d_fused(x, P["c0"], 4, 2, 1, "relu6", code_dim, tile_m)
    h = conv2d_fused(h, P["c1"], 3, 2, 1, "relu6", code_dim, tile_m)
    h = conv2d_fused(h, P["c2"], 3, 1, 1, "relu6", code_dim, tile_m)
    h = conv2d_fused(h, P["c3"], 3, 1, 1, "relu6", code_dim, tile_m)
    h = conv2d_fused(h, P["c4"], 3, 2, 1, "none", code_dim, tile_m)
    for rp in P["res"]:
        h = resblock_apply(h, rp, tile_m)
    return h


def decoder(x, P, code_dim, tile_m):
    h = x
    n_res = len(P["res"])
    for i, rp in enumerate(P["res"]):
        if i == n_res - 1:
            # fuse the decoder's first ReLU6 + BatchNorm into the last
            # residual block's epilogue
            h = resblock_apply(h, rp, tile_m, post_act="relu6",
                               ps=P["pre0_s"], ph=P["pre0_h"])
        else:
            h = resblock_apply(h, rp, tile_m)
    # each ConvT epilogue applies the *following* ReLU6 + BatchNorm affine
    h = conv_transpose2d_fused(h, P["t0"], 3, 2, 1, "relu6", code_dim, tile_m)
    h = conv_transpose2d_fused(h, P["t1"], 3, 1, 1, "relu6", code_dim, tile_m)
    h = conv_transpose2d_fused(h, P["t2"], 3, 1, 1, "relu6", code_dim, tile_m)
    h = conv_transpose2d_fused(h, P["t3"], 3, 2, 1, "relu6", code_dim, tile_m)
    h = conv_transpose2d_fused(h, P["t4"], 4, 2, 1, "tanh", 3, tile_m)
    return h


def vqvae_forward(x_nchw, prep, *, tile_m=512):
    # layout: NCHW in / out (PyTorch convention), NHWC internally.
    code_dim = prep["quant"]["e"].shape[1]
    x = jnp.transpose(x_nchw, (0, 2, 3, 1)).astype(jnp.float32)
    z = encoder(x, prep["enc"], code_dim, tile_m)
    N, Hc, Wc, D = z.shape
    zf = z.reshape(-1, D)
    q = quantize(zf, prep["quant"], tile_m)
    e = q.reshape(N, Hc, Wc, D)
    # straight-through value path: (quantized - z).detach() + z
    e_st = (lax.stop_gradient(q - zf) + zf).reshape(N, Hc, Wc, D)
    x_tilde = decoder(e_st, prep["dec"], code_dim, tile_m)
    commitment_loss = 0.15 * jnp.mean((z - e) ** 2)
    return jnp.transpose(x_tilde, (0, 3, 1, 2)), commitment_loss


# ----------------------------- parameter prep --------------------------------

def _vec(v, n=LANE):
    v = jnp.asarray(v, jnp.float32)
    return jnp.pad(v, (0, n - v.shape[0])).reshape(1, n)


def _conv_w_to_mat(W, rows_pad=None):
    """Torch conv weight (Cout, Cin, k, k) -> bf16 (k*k*Cin [opt. padded],
    Cout padded to 128 lanes), column ordering (di, dj, c) matching im2col."""
    Cout, Cin, kh, kw = W.shape
    B = jnp.transpose(W, (2, 3, 1, 0)).reshape(kh * kw * Cin, Cout)
    rows = B.shape[0] if rows_pad is None else rows_pad
    Np = _ru(Cout, LANE)
    B = jnp.pad(B, ((0, rows - B.shape[0]), (0, Np - Cout)))
    return B.astype(jnp.bfloat16)


def prepare_params(params):
    """One-time repack of torch-layout params into kernel-ready matrices
    (bf16, lane-padded) and folded per-channel vectors."""
    enc, dec = params["enc"], params["dec"]

    def conv_entry(W, b, ps=None, ph=None):
        Cout = W.shape[0]
        if ps is None:
            ps = jnp.ones((Cout,), jnp.float32)
        if ph is None:
            ph = jnp.zeros((Cout,), jnp.float32)
        return dict(B=_conv_w_to_mat(W), bias=_vec(b), ps=_vec(ps), ph=_vec(ph))

    def convT_entry(W, b, ps=None, ph=None):
        # ConvTranspose weight (Cin, Cout, k, k) -> spatially-flipped conv weight.
        Wc = jnp.transpose(W[:, :, ::-1, ::-1], (1, 0, 2, 3))
        return conv_entry(Wc, b, ps, ph)

    def res_entry(rp):
        C = rp["b1"].shape[0]
        return dict(bn1_s=jnp.asarray(rp["bn1_scale"], jnp.float32),
                    bn1_h=jnp.asarray(rp["bn1_shift"], jnp.float32),
                    w1m=_conv_w_to_mat(rp["w1"]), b1=_vec(rp["b1"]),
                    s2=_vec(rp["bn2_scale"]), h2=_vec(rp["bn2_shift"]),
                    w2m=_conv_w_to_mat(rp["w2"], rows_pad=_ru(C, LANE)),
                    b2=_vec(rp["b2"]))

    enc_prep = dict(
        c0=conv_entry(enc["w0"], enc["b0"], enc["bn0_s"], enc["bn0_b"]),
        c1=conv_entry(enc["w1"], enc["b1"], enc["bn1_s"], enc["bn1_b"]),
        c2=conv_entry(enc["w2"], enc["b2"], enc["bn2_s"], enc["bn2_b"]),
        c3=conv_entry(enc["w3"], enc["b3"], enc["bn3_s"], enc["bn3_b"]),
        c4=conv_entry(enc["w4"], enc["b4"]),
        res=[res_entry(rp) for rp in enc["res"]],
    )
    dec_prep = dict(
        res=[res_entry(rp) for rp in dec["res"]],
        pre0_s=_vec(dec["bn0_s"]), pre0_h=_vec(dec["bn0_b"]),
        t0=convT_entry(dec["w0"], dec["b0"], dec["bn1_s"], dec["bn1_b"]),
        t1=convT_entry(dec["w1"], dec["b1"], dec["bn2_s"], dec["bn2_b"]),
        t2=convT_entry(dec["w2"], dec["b2"], dec["bn3_s"], dec["bn3_b"]),
        t3=convT_entry(dec["w3"], dec["b3"], dec["bn4_s"], dec["bn4_b"]),
        t4=convT_entry(dec["w4"], dec["b4"]),
    )
    emb = jnp.asarray(params["embeddings"], jnp.float32)
    S = emb.shape[0]
    Sp = _ru(S, LANE)
    ep = jnp.pad(emb, ((0, Sp - S), (0, 0)))
    colbias = (jnp.sum(ep * ep, axis=-1)
               + jnp.where(jnp.arange(Sp) < S, 0.0, 1e30)
               ).reshape(1, Sp).astype(jnp.float32)
    return dict(enc=enc_prep, dec=dec_prep, quant=dict(e=ep, colbias=colbias))


# ----------------------------- parameter init --------------------------------

def init_params(key, code_dim, code_size):
    keys = iter(jax.random.split(key, 200))

    def nrm(shape, scale=0.05):
        return scale * jax.random.normal(next(keys), shape, jnp.float32)

    def bn(dim):
        gamma = 1.0 + 0.1 * jax.random.normal(next(keys), (dim,), jnp.float32)
        beta = 0.1 * jax.random.normal(next(keys), (dim,), jnp.float32)
        running_mean = jnp.zeros((dim,), jnp.float32)
        running_var = jnp.ones((dim,), jnp.float32)
        scale = gamma / jnp.sqrt(running_var + BN_EPS)
        shift = beta - running_mean * scale
        return scale, shift

    def res_params(dim):
        s1, b1 = bn(dim)
        s2, b2 = bn(dim)
        return dict(bn1_scale=s1, bn1_shift=b1,
                    w1=nrm((dim, dim, 3, 3)), b1=nrm((dim,)),
                    bn2_scale=s2, bn2_shift=b2,
                    w2=nrm((dim, dim, 1, 1)), b2=nrm((dim,)))

    D = code_dim
    enc = dict(w0=nrm((D, 3, 4, 4)), b0=nrm((D,)),
               w1=nrm((D, D, 3, 3)), b1=nrm((D,)),
               w2=nrm((D, D, 3, 3)), b2=nrm((D,)),
               w3=nrm((D, D, 3, 3)), b3=nrm((D,)),
               w4=nrm((D, D, 3, 3)), b4=nrm((D,)),
               res=[res_params(D) for _ in range(9)])
    for i in range(4):
        enc[f"bn{i}_s"], enc[f"bn{i}_b"] = bn(D)

    dec = dict(res=[res_params(D) for _ in range(9)],
               w0=nrm((D, D, 3, 3)), b0=nrm((D,)),      # ConvT: (Cin, Cout, k, k)
               w1=nrm((D, D, 3, 3)), b1=nrm((D,)),
               w2=nrm((D, D, 3, 3)), b2=nrm((D,)),
               w3=nrm((D, D, 3, 3)), b3=nrm((D,)),
               w4=nrm((D, 3, 4, 4)), b4=nrm((3,)))
    for i in range(5):
        dec[f"bn{i}_s"], dec[f"bn{i}_b"] = bn(D)

    emb = jax.random.normal(next(keys), (code_size, D), jnp.float32)
    return dict(enc=enc, dec=dec, embeddings=emb)


# ----------------------------------- main -------------------------------------

if __name__ == "__main__":
    code_dim, code_size = 32, 128
    key = jax.random.PRNGKey(0)
    k_params, k_x = jax.random.split(key)
    params = init_params(k_params, code_dim, code_size)
    prep = prepare_params(params)          # one-time weight repack (bf16, padded)
    x = jax.random.uniform(k_x, (2, 3, 16, 16), jnp.float32)

    fwd = jax.jit(functools.partial(vqvae_forward, tile_m=_default_tile_m()))
    x_tilde, commit_loss = fwd(x, prep)
    jax.block_until_ready((x_tilde, commit_loss))

    assert x_tilde.shape == (2, 3, 10, 10), x_tilde.shape
    assert commit_loss.shape == ()
    print("KERNEL_OK")
</pallas_src>

<mosaic_0001>
module attributes {stable_mosaic.version = 11 : i64} {
  func.func @_matmul_fused_kernel(%arg0: i32, %arg1: memref<128x48xf32, #tpu.memory_space<vmem>>, %arg2: memref<48x128xbf16, #tpu.memory_space<vmem>>, %arg3: memref<1x128xf32, #tpu.memory_space<vmem>>, %arg4: memref<1x128xf32, #tpu.memory_space<vmem>>, %arg5: memref<1x128xf32, #tpu.memory_space<vmem>>, %arg6: memref<128x128xf32, #tpu.memory_space<vmem>>) attributes {dimension_semantics = [#tpu.dimension_semantics<parallel>], iteration_bounds = array<i64: 1>, scalar_prefetch = 0 : i64, scratch_operands = 0 : i64, tpu.core_type = #tpu.core_type<tc>, window_params = [{transform_indices = @transform_0, window_bounds = array<i64: 128, 48>}, {pipeline_mode = #tpu.pipeline_mode<synchronous>, transform_indices = @transform_1, window_bounds = array<i64: 48, 128>}, {pipeline_mode = #tpu.pipeline_mode<synchronous>, transform_indices = @transform_2, window_bounds = array<i64: 1, 128>}, {pipeline_mode = #tpu.pipeline_mode<synchronous>, transform_indices = @transform_3, window_bounds = array<i64: 1, 128>}, {pipeline_mode = #tpu.pipeline_mode<synchronous>, transform_indices = @transform_4, window_bounds = array<i64: 1, 128>}, {transform_indices = @transform_5, window_bounds = array<i64: 128, 128>}]} {
    %c0 = arith.constant 0 : index
    %c0_0 = arith.constant 0 : index
    %0 = vector.load %arg1[%c0, %c0_0] : memref<128x48xf32, #tpu.memory_space<vmem>>, vector<128x48xf32>
    %1 = arith.truncf %0 : vector<128x48xf32> to vector<128x48xbf16>
    %c0_1 = arith.constant 0 : index
    %c0_2 = arith.constant 0 : index
    %2 = vector.load %arg2[%c0_1, %c0_2] : memref<48x128xbf16, #tpu.memory_space<vmem>>, vector<48x128xbf16>
    %cst = arith.constant dense<0.000000e+00> : vector<128x128xf32>
    %3 = tpu.matmul %1, %2, %cst {dimension_numbers = #tpu.dot_dimension_numbers<[1], [0], [0], [1], [0, 0, 1, 1], [], []>} : vector<128x48xbf16>, vector<48x128xbf16>, vector<128x128xf32> -> vector<128x128xf32>
    %c0_3 = arith.constant 0 : index
    %c0_4 = arith.constant 0 : index
    %4 = vector.load %arg4[%c0_3, %c0_4] : memref<1x128xf32, #tpu.memory_space<vmem>>, vector<1x128xf32>
    %c0_5 = arith.constant 0 : index
    %c0_6 = arith.constant 0 : index
    %5 = vector.load %arg3[%c0_5, %c0_6] : memref<1x128xf32, #tpu.memory_space<vmem>>, vector<1x128xf32>
    %6 = vector.broadcast %5 : vector<1x128xf32> to vector<128x128xf32>
    %7 = arith.addf %3, %6 : vector<128x128xf32>
    %cst_7 = arith.constant 0.000000e+00 : f32
    %cst_8 = arith.constant 6.000000e+00 : f32
    %8 = vector.broadcast %cst_7 : f32 to vector<128x128xf32>
    %9 = arith.maximumf %8, %7 : vector<128x128xf32>
    %10 = vector.broadcast %cst_8 : f32 to vector<128x128xf32>
    %11 = arith.minimumf %10, %9 : vector<128x128xf32>
    %12 = vector.broadcast %4 : vector<1x128xf32> to vector<128x128xf32>
    %13 = arith.mulf %12, %11 : vector<128x128xf32>
    %c0_9 = arith.constant 0 : index
    %c0_10 = arith.constant 0 : index
    %14 = vector.load %arg5[%c0_9, %c0_10] : memref<1x128xf32, #tpu.memory_space<vmem>>, vector<1x128xf32>
    %15 = vector.broadcast %14 : vector<1x128xf32> to vector<128x128xf32>
    %16 = arith.addf %13, %15 : vector<128x128xf32>
    %c0_11 = arith.constant 0 : index
    %c0_12 = arith.constant 0 : index
    %17 = vector.load %arg6[%c0_11, %c0_12] : memref<128x128xf32, #tpu.memory_space<vmem>>, vector<128x128xf32>
    tpu.vector_store %arg6[%c0_11, %c0_12], %16 {strides = array<i32>} : memref<128x128xf32, #tpu.memory_space<vmem>>, vector<128x128xf32>,
    return
  }
  func.func @transform_0(%arg0: i32) -> (i32, i32) {
    %c0_i32 = arith.constant 0 : i32
    %c0_i32_0 = arith.constant 0 : i32
    return %arg0, %c0_i32 : i32, i32
  }
  func.func @transform_1(%arg0: i32) -> (i32, i32) {
    %c0_i32 = arith.constant 0 : i32
    %c0_i32_0 = arith.constant 0 : i32
    %c0_i32_1 = arith.constant 0 : i32
    return %c0_i32, %c0_i32_0 : i32, i32
  }
  func.func @transform_2(%arg0: i32) -> (i32, i32) {
    %c0_i32 = arith.constant 0 : i32
    %c0_i32_0 = arith.constant 0 : i32
    %c0_i32_1 = arith.constant 0 : i32
    return %c0_i32, %c0_i32_0 : i32, i32
  }
  func.func @transform_3(%arg0: i32) -> (i32, i32) {
    %c0_i32 = arith.constant 0 : i32
    %c0_i32_0 = arith.constant 0 : i32
    %c0_i32_1 = arith.constant 0 : i32
    return %c0_i32, %c0_i32_0 : i32, i32
  }
  func.func @transform_4(%arg0: i32) -> (i32, i32) {
    %c0_i32 = arith.constant 0 : i32
    %c0_i32_0 = arith.constant 0 : i32
    %c0_i32_1 = arith.constant 0 : i32
    return %c0_i32, %c0_i32_0 : i32, i32
  }
  func.func @transform_5(%arg0: i32) -> (i32, i32) {
    %c0_i32 = arith.constant 0 : i32
    %c0_i32_0 = arith.constant 0 : i32
    return %arg0, %c0_i32 : i32, i32
  }
}

module attributes {stable_mosaic.version = 11 : i64} {
  func.func @_matmul_fused_kernel(%arg0: i32, %arg1: memref<32x288xf32, #tpu.memory_space<vmem>>, %arg2: memref<288x128xbf16, #tpu.memory_space<vmem>>, %arg3: memref<1x128xf32, #tpu.memory_space<vmem>>, %arg4: memref<1x128xf32, #tpu.memory_space<vmem>>, %arg5: memref<1x128xf32, #tpu.memory_space<vmem>>, %arg6: memref<32x128xf32, #tpu.memory_space<vmem>>) attributes {dimension_semantics = [#tpu.dimension_semantics<parallel>], iteration_bounds = array<i64: 1>, scalar_prefetch = 0 : i64, scratch_operands = 0 : i64, tpu.core_type = #tpu.core_type<tc>, window_params = [{transform_indices = @transform_0, window_bounds = array<i64: 32, 288>}, {pipeline_mode = #tpu.pipeline_mode<synchronous>, transform_indices = @transform_1, window_bounds = array<i64: 288, 128>}, {pipeline_mode = #tpu.pipeline_mode<synchronous>, transform_indices = @transform_2, window_bounds = array<i64: 1, 128>}, {pipeline_mode = #tpu.pipeline_mode<synchronous>, transform_indices = @transform_3, window_bounds = array<i64: 1, 128>}, {pipeline_mode = #tpu.pipeline_mode<synchronous>, transform_indices = @transform_4, window_bounds = array<i64: 1, 128>}, {transform_indices = @transform_5, window_bounds = array<i64: 32, 128>}]} {
    %c0 = arith.constant 0 : index
    %c0_0 = arith.constant 0 : index
    %0 = vector.load %arg1[%c0, %c0_0] : memref<32x288xf32, #tpu.memory_space<vmem>>, vector<32x288xf32>
    %1 = arith.truncf %0 : vector<32x288xf32> to vector<32x288xbf16>
    %c0_1 = arith.constant 0 : index
    %c0_2 = arith.constant 0 : index
    %2 = vector.load %arg2[%c0_1, %c0_2] : memref<288x128xbf16, #tpu.memory_space<vmem>>, vector<288x128xbf16>
    %cst = arith.constant dense<0.000000e+00> : vector<32x128xf32>
    %3 = tpu.matmul %1, %2, %cst {dimension_numbers = #tpu.dot_dimension_numbers<[1], [0], [0], [1], [0, 0, 1, 1], [], []>} : vector<32x288xbf16>, vector<288x128xbf16>, vector<32x128xf32> -> vector<32x128xf32>
    %c0_3 = arith.constant 0 : index
    %c0_4 = arith.constant 0 : index
    %4 = vector.load %arg4[%c0_3, %c0_4] : memref<1x128xf32, #tpu.memory_space<vmem>>, vector<1x128xf32>
    %c0_5 = arith.constant 0 : index
    %c0_6 = arith.constant 0 : index
    %5 = vector.load %arg3[%c0_5, %c0_6] : memref<1x128xf32, #tpu.memory_space<vmem>>, vector<1x128xf32>
    %6 = vector.broadcast %5 : vector<1x128xf32> to vector<32x128xf32>
    %7 = arith.addf %3, %6 : vector<32x128xf32>
    %cst_7 = arith.constant 0.000000e+00 : f32
    %cst_8 = arith.constant 6.000000e+00 : f32
    %8 = vector.broadcast %cst_7 : f32 to vector<32x128xf32>
    %9 = arith.maximumf %8, %7 : vector<32x128xf32>
    %10 = vector.broadcast %cst_8 : f32 to vector<32x128xf32>
    %11 = arith.minimumf %10, %9 : vector<32x128xf32>
    %12 = vector.broadcast %4 : vector<1x128xf32> to vector<32x128xf32>
    %13 = arith.mulf %12, %11 : vector<32x128xf32>
    %c0_9 = arith.constant 0 : index
    %c0_10 = arith.constant 0 : index
    %14 = vector.load %arg5[%c0_9, %c0_10] : memref<1x128xf32, #tpu.memory_space<vmem>>, vector<1x128xf32>
    %15 = vector.broadcast %14 : vector<1x128xf32> to vector<32x128xf32>
    %16 = arith.addf %13, %15 : vector<32x128xf32>
    %c0_11 = arith.constant 0 : index
    %c0_12 = arith.constant 0 : index
    %17 = vector.load %arg6[%c0_11, %c0_12] : memref<32x128xf32, #tpu.memory_space<vmem>>, vector<32x128xf32>
    tpu.vector_store %arg6[%c0_11, %c0_12], %16 {strides = array<i32>} : memref<32x128xf32, #tpu.memory_space<vmem>>, vector<32x128xf32>,
    return
  }
  func.func @transform_0(%arg0: i32) -> (i32, i32) {
    %c0_i32 = arith.constant 0 : i32
    %c0_i32_0 = arith.constant 0 : i32
    return %arg0, %c0_i32 : i32, i32
  }
  func.func @transform_1(%arg0: i32) -> (i32, i32) {
    %c0_i32 = arith.constant 0 : i32
    %c0_i32_0 = arith.constant 0 : i32
    %c0_i32_1 = arith.constant 0 : i32
    return %c0_i32, %c0_i32_0 : i32, i32
  }
  func.func @transform_2(%arg0: i32) -> (i32, i32) {
    %c0_i32 = arith.constant 0 : i32
    %c0_i32_0 = arith.constant 0 : i32
    %c0_i32_1 = arith.constant 0 : i32
    return %c0_i32, %c0_i32_0 : i32, i32
  }
  func.func @transform_3(%arg0: i32) -> (i32, i32) {
    %c0_i32 = arith.constant 0 : i32
    %c0_i32_0 = arith.constant 0 : i32
    %c0_i32_1 = arith.constant 0 : i32
    return %c0_i32, %c0_i32_0 : i32, i32
  }
  func.func @transform_4(%arg0: i32) -> (i32, i32) {
    %c0_i32 = arith.constant 0 : i32
    %c0_i32_0 = arith.constant 0 : i32
    %c0_i32_1 = arith.constant 0 : i32
    return %c0_i32, %c0_i32_0 : i32, i32
  }
  func.func @transform_5(%arg0: i32) -> (i32, i32) {
    %c0_i32 = arith.constant 0 : i32
    %c0_i32_0 = arith.constant 0 : i32
    return %arg0, %c0_i32 : i32, i32
  }
}

module attributes {stable_mosaic.version = 11 : i64} {
  func.func @_matmul_fused_kernel(%arg0: i32, %arg1: memref<16x288xf32, #tpu.memory_space<vmem>>, %arg2: memref<288x128xbf16, #tpu.memory_space<vmem>>, %arg3: memref<1x128xf32, #tpu.memory_space<vmem>>, %arg4: memref<1x128xf32, #tpu.memory_space<vmem>>, %arg5: memref<1x128xf32, #tpu.memory_space<vmem>>, %arg6: memref<16x128xf32, #tpu.memory_space<vmem>>) attributes {dimension_semantics = [#tpu.dimension_semantics<parallel>], iteration_bounds = array<i64: 1>, scalar_prefetch = 0 : i64, scratch_operands = 0 : i64, tpu.core_type = #tpu.core_type<tc>, window_params = [{transform_indices = @transform_0, window_bounds = array<i64: 16, 288>}, {pipeline_mode = #tpu.pipeline_mode<synchronous>, transform_indices = @transform_1, window_bounds = array<i64: 288, 128>}, {pipeline_mode = #tpu.pipeline_mode<synchronous>, transform_indices = @transform_2, window_bounds = array<i64: 1, 128>}, {pipeline_mode = #tpu.pipeline_mode<synchronous>, transform_indices = @transform_3, window_bounds = array<i64: 1, 128>}, {pipeline_mode = #tpu.pipeline_mode<synchronous>, transform_indices = @transform_4, window_bounds = array<i64: 1, 128>}, {transform_indices = @transform_5, window_bounds = array<i64: 16, 128>}]} {
    %c0 = arith.constant 0 : index
    %c0_0 = arith.constant 0 : index
    %0 = vector.load %arg1[%c0, %c0_0] : memref<16x288xf32, #tpu.memory_space<vmem>>, vector<16x288xf32>
    %1 = arith.truncf %0 : vector<16x288xf32> to vector<16x288xbf16>
    %c0_1 = arith.constant 0 : index
    %c0_2 = arith.constant 0 : index
    %2 = vector.load %arg2[%c0_1, %c0_2] : memref<288x128xbf16, #tpu.memory_space<vmem>>, vector<288x128xbf16>
    %cst = arith.constant dense<0.000000e+00> : vector<16x128xf32>
    %3 = tpu.matmul %1, %2, %cst {dimension_numbers = #tpu.dot_dimension_numbers<[1], [0], [0], [1], [0, 0, 1, 1], [], []>} : vector<16x288xbf16>, vector<288x128xbf16>, vector<16x128xf32> -> vector<16x128xf32>
    %c0_3 = arith.constant 0 : index
    %c0_4 = arith.constant 0 : index
    %4 = vector.load %arg4[%c0_3, %c0_4] : memref<1x128xf32, #tpu.memory_space<vmem>>, vector<1x128xf32>
    %c0_5 = arith.constant 0 : index
    %c0_6 = arith.constant 0 : index
    %5 = vector.load %arg3[%c0_5, %c0_6] : memref<1x128xf32, #tpu.memory_space<vmem>>, vector<1x128xf32>
    %6 = vector.broadcast %5 : vector<1x128xf32> to vector<16x128xf32>
    %7 = arith.addf %3, %6 : vector<16x128xf32>
    %8 = vector.broadcast %4 : vector<1x128xf32> to vector<16x128xf32>
    %9 = arith.mulf %8, %7 : vector<16x128xf32>
    %c0_7 = arith.constant 0 : index
    %c0_8 = arith.constant 0 : index
    %10 = vector.load %arg5[%c0_7, %c0_8] : memref<1x128xf32, #tpu.memory_space<vmem>>, vector<1x128xf32>
    %11 = vector.broadcast %10 : vector<1x128xf32> to vector<16x128xf32>
    %12 = arith.addf %9, %11 : vector<16x128xf32>
    %c0_9 = arith.constant 0 : index
    %c0_10 = arith.constant 0 : index
    %13 = vector.load %arg6[%c0_9, %c0_10] : memref<16x128xf32, #tpu.memory_space<vmem>>, vector<16x128xf32>
    tpu.vector_store %arg6[%c0_9, %c0_10], %12 {strides = array<i32>} : memref<16x128xf32, #tpu.memory_space<vmem>>, vector<16x128xf32>,
    return
  }
  func.func @transform_0(%arg0: i32) -> (i32, i32) {
    %c0_i32 = arith.constant 0 : i32
    %c0_i32_0 = arith.constant 0 : i32
    return %arg0, %c0_i32 : i32, i32
  }
  func.func @transform_1(%arg0: i32) -> (i32, i32) {
    %c0_i32 = arith.constant 0 : i32
    %c0_i32_0 = arith.constant 0 : i32
    %c0_i32_1 = arith.constant 0 : i32
    return %c0_i32, %c0_i32_0 : i32, i32
  }
  func.func @transform_2(%arg0: i32) -> (i32, i32) {
    %c0_i32 = arith.constant 0 : i32
    %c0_i32_0 = arith.constant 0 : i32
    %c0_i32_1 = arith.constant 0 : i32
    return %c0_i32, %c0_i32_0 : i32, i32
  }
  func.func @transform_3(%arg0: i32) -> (i32, i32) {
    %c0_i32 = arith.constant 0 : i32
    %c0_i32_0 = arith.constant 0 : i32
    %c0_i32_1 = arith.constant 0 : i32
    return %c0_i32, %c0_i32_0 : i32, i32
  }
  func.func @transform_4(%arg0: i32) -> (i32, i32) {
    %c0_i32 = arith.constant 0 : i32
    %c0_i32_0 = arith.constant 0 : i32
    %c0_i32_1 = arith.constant 0 : i32
    return %c0_i32, %c0_i32_0 : i32, i32
  }
  func.func @transform_5(%arg0: i32) -> (i32, i32) {
    %c0_i32 = arith.constant 0 : i32
    %c0_i32_0 = arith.constant 0 : i32
    return %arg0, %c0_i32 : i32, i32
  }
}

module attributes {stable_mosaic.version = 11 : i64} {
  func.func @_quantize_kernel(%arg0: i32, %arg1: memref<16x32xf32, #tpu.memory_space<vmem>>, %arg2: memref<128x32xf32, #tpu.memory_space<vmem>>, %arg3: memref<1x128xf32, #tpu.memory_space<vmem>>, %arg4: memref<16x32xf32, #tpu.memory_space<vmem>>) attributes {dimension_semantics = [#tpu.dimension_semantics<parallel>], iteration_bounds = array<i64: 1>, scalar_prefetch = 0 : i64, scratch_operands = 0 : i64, tpu.core_type = #tpu.core_type<tc>, window_params = [{transform_indices = @transform_0, window_bounds = array<i64: 16, 32>}, {pipeline_mode = #tpu.pipeline_mode<synchronous>, transform_indices = @transform_1, window_bounds = array<i64: 128, 32>}, {pipeline_mode = #tpu.pipeline_mode<synchronous>, transform_indices = @transform_2, window_bounds = array<i64: 1, 128>}, {transform_indices = @transform_3, window_bounds = array<i64: 16, 32>}]} {
    %c0 = arith.constant 0 : index
    %c0_0 = arith.constant 0 : index
    %0 = vector.load %arg1[%c0, %c0_0] : memref<16x32xf32, #tpu.memory_space<vmem>>, vector<16x32xf32>
    %c0_1 = arith.constant 0 : index
    %c0_2 = arith.constant 0 : index
    %1 = vector.load %arg2[%c0_1, %c0_2] : memref<128x32xf32, #tpu.memory_space<vmem>>, vector<128x32xf32>
    %2 = arith.mulf %0, %0 : vector<16x32xf32>
    %cst = arith.constant dense<0.000000e+00> : vector<16xf32>
    %3 = vector.multi_reduction <add>, %2, %cst [1] : vector<16x32xf32> to vector<16xf32>
    %4 = vector.shape_cast %3 : vector<16xf32> to vector<16x1xf32>
    %cst_3 = arith.constant dense<0.000000e+00> : vector<16x128xf32>
    %5 = tpu.matmul %0, %1, %cst_3 {dimension_numbers = #tpu.dot_dimension_numbers<[1], [1], [0], [0], [0, 0, 1, 0], [], []>} : vector<16x32xf32>, vector<128x32xf32>, vector<16x128xf32> -> vector<16x128xf32>
    %cst_4 = arith.constant 2.000000e+00 : f32
    %6 = vector.broadcast %cst_4 : f32 to vector<16x128xf32>
    %7 = arith.mulf %6, %5 : vector<16x128xf32>
    %8 = vector.broadcast %4 : vector<16x1xf32> to vector<16x128xf32>
    %9 = arith.subf %8, %7 : vector<16x128xf32>
    %c0_5 = arith.constant 0 : index
    %c0_6 = arith.constant 0 : index
    %10 = vector.load %arg3[%c0_5, %c0_6] : memref<1x128xf32, #tpu.memory_space<vmem>>, vector<1x128xf32>
    %11 = vector.broadcast %10 : vector<1x128xf32> to vector<16x128xf32>
    %12 = arith.addf %9, %11 : vector<16x128xf32>
    %cst_7 = arith.constant dense<0x7F800000> : vector<16xf32>
    %13 = vector.multi_reduction <minimumf>, %12, %cst_7 [1] : vector<16x128xf32> to vector<16xf32>
    %14 = vector.shape_cast %13 : vector<16xf32> to vector<16x1xf32>
    %15 = tpu.iota {dimensions = array<i32: 1>} : vector<16x128xi32>
    %16 = vector.broadcast %14 : vector<16x1xf32> to vector<16x128xf32>
    %17 = arith.cmpf ole, %12, %16 : vector<16x128xf32>
    %c2147483647_i32 = arith.constant 2147483647 : i32
    %18 = vector.broadcast %c2147483647_i32 : i32 to vector<16x128xi32>
    %19 = arith.select %17, %15, %18 : vector<16x128xi1>, vector<16x128xi32>
    %cst_8 = arith.constant dense<2147483647> : vector<16xi32>
    %20 = vector.multi_reduction <minsi>, %19, %cst_8 [1] : vector<16x128xi32> to vector<16xi32>
    %21 = vector.shape_cast %20 : vector<16xi32> to vector<16x1xi32>
    %22 = vector.broadcast %21 : vector<16x1xi32> to vector<16x128xi32>
    %23 = arith.cmpi eq, %15, %22 : vector<16x128xi32>
    %24 = arith.extui %23 : vector<16x128xi1> to vector<16x128xi32>
    %25 = arith.sitofp %24 : vector<16x128xi32> to vector<16x128xf32>
    %cst_9 = arith.constant dense<0.000000e+00> : vector<16x32xf32>
    %26 = tpu.matmul %25, %1, %cst_9 {dimension_numbers = #tpu.dot_dimension_numbers<[1], [0], [0], [1], [0, 0, 1, 1], [], []>} : vector<16x128xf32>, vector<128x32xf32>, vector<16x32xf32> -> vector<16x32xf32>
    %c0_10 = arith.constant 0 : index
    %c0_11 = arith.constant 0 : index
    %27 = vector.load %arg4[%c0_10, %c0_11] : memref<16x32xf32, #tpu.memory_space<vmem>>, vector<16x32xf32>
    tpu.vector_store %arg4[%c0_10, %c0_11], %26 {strides = array<i32>} : memref<16x32xf32, #tpu.memory_space<vmem>>, vector<16x32xf32>,
    return
  }
  func.func @transform_0(%arg0: i32) -> (i32, i32) {
    %c0_i32 = arith.constant 0 : i32
    %c0_i32_0 = arith.constant 0 : i32
    return %arg0, %c0_i32 : i32, i32
  }
  func.func @transform_1(%arg0: i32) -> (i32, i32) {
    %c0_i32 = arith.constant 0 : i32
    %c0_i32_0 = arith.constant 0 : i32
    %c0_i32_1 = arith.constant 0 : i32
    return %c0_i32, %c0_i32_0 : i32, i32
  }
  func.func @transform_2(%arg0: i32) -> (i32, i32) {
    %c0_i32 = arith.constant 0 : i32
    %c0_i32_0 = arith.constant 0 : i32
    %c0_i32_1 = arith.constant 0 : i32
    return %c0_i32, %c0_i32_0 : i32, i32
  }
  func.func @transform_3(%arg0: i32) -> (i32, i32) {
    %c0_i32 = arith.constant 0 : i32
    %c0_i32_0 = arith.constant 0 : i32
    return %arg0, %c0_i32 : i32, i32
  }
}

module attributes {stable_mosaic.version = 11 : i64} {
  func.func @_resblock_kernel(%arg0: i32, %arg1: memref<16x288xf32, #tpu.memory_space<vmem>>, %arg2: memref<288x128xbf16, #tpu.memory_space<vmem>>, %arg3: memref<1x128xf32, #tpu.memory_space<vmem>>, %arg4: memref<1x128xf32, #tpu.memory_space<vmem>>, %arg5: memref<1x128xf32, #tpu.memory_space<vmem>>, %arg6: memref<128x128xbf16, #tpu.memory_space<vmem>>, %arg7: memref<1x128xf32, #tpu.memory_space<vmem>>, %arg8: memref<1x128xf32, #tpu.memory_space<vmem>>, %arg9: memref<1x128xf32, #tpu.memory_space<vmem>>, %arg10: memref<16x128xf32, #tpu.memory_space<vmem>>, %arg11: memref<16x128xf32, #tpu.memory_space<vmem>>) attributes {dimension_semantics = [#tpu.dimension_semantics<parallel>], iteration_bounds = array<i64: 1>, scalar_prefetch = 0 : i64, scratch_operands = 0 : i64, tpu.core_type = #tpu.core_type<tc>, window_params = [{transform_indices = @transform_0, window_bounds = array<i64: 16, 288>}, {pipeline_mode = #tpu.pipeline_mode<synchronous>, transform_indices = @transform_1, window_bounds = array<i64: 288, 128>}, {pipeline_mode = #tpu.pipeline_mode<synchronous>, transform_indices = @transform_2, window_bounds = array<i64: 1, 128>}, {pipeline_mode = #tpu.pipeline_mode<synchronous>, transform_indices = @transform_3, window_bounds = array<i64: 1, 128>}, {pipeline_mode = #tpu.pipeline_mode<synchronous>, transform_indices = @transform_4, window_bounds = array<i64: 1, 128>}, {pipeline_mode = #tpu.pipeline_mode<synchronous>, transform_indices = @transform_5, window_bounds = array<i64: 128, 128>}, {pipeline_mode = #tpu.pipeline_mode<synchronous>, transform_indices = @transform_6, window_bounds = array<i64: 1, 128>}, {pipeline_mode = #tpu.pipeline_mode<synchronous>, transform_indices = @transform_7, window_bounds = array<i64: 1, 128>}, {pipeline_mode = #tpu.pipeline_mode<synchronous>, transform_indices = @transform_8, window_bounds = array<i64: 1, 128>}, {transform_indices = @transform_9, window_bounds = array<i64: 16, 128>}, {transform_indices = @transform_10, window_bounds = array<i64: 16, 128>}]} {
    %c0 = arith.constant 0 : index
    %c0_0 = arith.constant 0 : index
    %0 = vector.load %arg1[%c0, %c0_0] : memref<16x288xf32, #tpu.memory_space<vmem>>, vector<16x288xf32>
    %1 = arith.truncf %0 : vector<16x288xf32> to vector<16x288xbf16>
    %c0_1 = arith.constant 0 : index
    %c0_2 = arith.constant 0 : index
    %2 = vector.load %arg2[%c0_1, %c0_2] : memref<288x128xbf16, #tpu.memory_space<vmem>>, vector<288x128xbf16>
    %cst = arith.constant dense<0.000000e+00> : vector<16x128xf32>
    %3 = tpu.matmul %1, %2, %cst {dimension_numbers = #tpu.dot_dimension_numbers<[1], [0], [0], [1], [0, 0, 1, 1], [], []>} : vector<16x288xbf16>, vector<288x128xbf16>, vector<16x128xf32> -> vector<16x128xf32>
    %c0_3 = arith.constant 0 : index
    %c0_4 = arith.constant 0 : index
    %4 = vector.load %arg4[%c0_3, %c0_4] : memref<1x128xf32, #tpu.memory_space<vmem>>, vector<1x128xf32>
    %c0_5 = arith.constant 0 : index
    %c0_6 = arith.constant 0 : index
    %5 = vector.load %arg3[%c0_5, %c0_6] : memref<1x128xf32, #tpu.memory_space<vmem>>, vector<1x128xf32>
    %6 = vector.broadcast %5 : vector<1x128xf32> to vector<16x128xf32>
    %7 = arith.addf %3, %6 : vector<16x128xf32>
    %8 = vector.broadcast %4 : vector<1x128xf32> to vector<16x128xf32>
    %9 = arith.mulf %8, %7 : vector<16x128xf32>
    %c0_7 = arith.constant 0 : index
    %c0_8 = arith.constant 0 : index
    %10 = vector.load %arg5[%c0_7, %c0_8] : memref<1x128xf32, #tpu.memory_space<vmem>>, vector<1x128xf32>
    %11 = vector.broadcast %10 : vector<1x128xf32> to vector<16x128xf32>
    %12 = arith.addf %9, %11 : vector<16x128xf32>
    %cst_9 = arith.constant 0.000000e+00 : f32
    %13 = vector.broadcast %cst_9 : f32 to vector<16x128xf32>
    %14 = arith.cmpf oge, %12, %13 : vector<16x128xf32>
    %cst_10 = arith.constant 0.229166672 : f32
    %15 = vector.broadcast %cst_10 : f32 to vector<16x128xf32>
    %16 = arith.mulf %12, %15 : vector<16x128xf32>
    %17 = arith.select %14, %12, %16 : vector<16x128xi1>, vector<16x128xf32>
    %18 = arith.truncf %17 : vector<16x128xf32> to vector<16x128xbf16>
    %c0_11 = arith.constant 0 : index
    %c0_12 = arith.constant 0 : index
    %19 = vector.load %arg6[%c0_11, %c0_12] : memref<128x128xbf16, #tpu.memory_space<vmem>>, vector<128x128xbf16>
    %cst_13 = arith.constant dense<0.000000e+00> : vector<16x128xf32>
    %20 = tpu.matmul %18, %19, %cst_13 {dimension_numbers = #tpu.dot_dimension_numbers<[1], [0], [0], [1], [0, 0, 1, 1], [], []>} : vector<16x128xbf16>, vector<128x128xbf16>, vector<16x128xf32> -> vector<16x128xf32>
    %c0_14 = arith.constant 0 : index
    %c0_15 = arith.constant 0 : index
    %21 = vector.load %arg7[%c0_14, %c0_15] : memref<1x128xf32, #tpu.memory_space<vmem>>, vector<1x128xf32>
    %22 = vector.broadcast %21 : vector<1x128xf32> to vector<16x128xf32>
    %23 = arith.addf %20, %22 : vector<16x128xf32>
    %c0_16 = arith.constant 0 : index
    %c0_17 = arith.constant 0 : index
    %24 = vector.load %arg10[%c0_16, %c0_17] : memref<16x128xf32, #tpu.memory_space<vmem>>, vector<16x128xf32>
    %25 = arith.addf %23, %24 : vector<16x128xf32>
    %c0_18 = arith.constant 0 : index
    %c0_19 = arith.constant 0 : index
    %26 = vector.load %arg8[%c0_18, %c0_19] : memref<1x128xf32, #tpu.memory_space<vmem>>, vector<1x128xf32>
    %27 = vector.broadcast %26 : vector<1x128xf32> to vector<16x128xf32>
    %28 = arith.mulf %27, %25 : vector<16x128xf32>
    %c0_20 = arith.constant 0 : index
    %c0_21 = arith.constant 0 : index
    %29 = vector.load %arg9[%c0_20, %c0_21] : memref<1x128xf32, #tpu.memory_space<vmem>>, vector<1x128xf32>
    %30 = vector.broadcast %29 : vector<1x128xf32> to vector<16x128xf32>
    %31 = arith.addf %28, %30 : vector<16x128xf32>
    %c0_22 = arith.constant 0 : index
    %c0_23 = arith.constant 0 : index
    %32 = vector.load %arg11[%c0_22, %c0_23] : memref<16x128xf32, #tpu.memory_space<vmem>>, vector<16x128xf32>
    tpu.vector_store %arg11[%c0_22, %c0_23], %31 {strides = array<i32>} : memref<16x128xf32, #tpu.memory_space<vmem>>, vector<16x128xf32>,
    return
  }
  func.func @transform_0(%arg0: i32) -> (i32, i32) {
    %c0_i32 = arith.constant 0 : i32
    %c0_i32_0 = arith.constant 0 : i32
    return %arg0, %c0_i32 : i32, i32
  }
  func.func @transform_1(%arg0: i32) -> (i32, i32) {
    %c0_i32 = arith.constant 0 : i32
    %c0_i32_0 = arith.constant 0 : i32
    %c0_i32_1 = arith.constant 0 : i32
    return %c0_i32, %c0_i32_0 : i32, i32
  }
  func.func @transform_2(%arg0: i32) -> (i32, i32) {
    %c0_i32 = arith.constant 0 : i32
    %c0_i32_0 = arith.constant 0 : i32
    %c0_i32_1 = arith.constant 0 : i32
    return %c0_i32, %c0_i32_0 : i32, i32
  }
  func.func @transform_3(%arg0: i32) -> (i32, i32) {
    %c0_i32 = arith.constant 0 : i32
    %c0_i32_0 = arith.constant 0 : i32
    %c0_i32_1 = arith.constant 0 : i32
    return %c0_i32, %c0_i32_0 : i32, i32
  }
  func.func @transform_4(%arg0: i32) -> (i32, i32) {
    %c0_i32 = arith.constant 0 : i32
    %c0_i32_0 = arith.constant 0 : i32
    %c0_i32_1 = arith.constant 0 : i32
    return %c0_i32, %c0_i32_0 : i32, i32
  }
  func.func @transform_5(%arg0: i32) -> (i32, i32) {
    %c0_i32 = arith.constant 0 : i32
    %c0_i32_0 = arith.constant 0 : i32
    %c0_i32_1 = arith.constant 0 : i32
    return %c0_i32, %c0_i32_0 : i32, i32
  }
  func.func @transform_6(%arg0: i32) -> (i32, i32) {
    %c0_i32 = arith.constant 0 : i32
    %c0_i32_0 = arith.constant 0 : i32
    %c0_i32_1 = arith.constant 0 : i32
    return %c0_i32, %c0_i32_0 : i32, i32
  }
  func.func @transform_7(%arg0: i32) -> (i32, i32) {
    %c0_i32 = arith.constant 0 : i32
    %c0_i32_0 = arith.constant 0 : i32
    %c0_i32_1 = arith.constant 0 : i32
    return %c0_i32, %c0_i32_0 : i32, i32
  }
  func.func @transform_8(%arg0: i32) -> (i32, i32) {
    %c0_i32 = arith.constant 0 : i32
    %c0_i32_0 = arith.constant 0 : i32
    %c0_i32_1 = arith.constant 0 : i32
    return %c0_i32, %c0_i32_0 : i32, i32
  }
  func.func @transform_9(%arg0: i32) -> (i32, i32) {
    %c0_i32 = arith.constant 0 : i32
    %c0_i32_0 = arith.constant 0 : i32
    return %arg0, %c0_i32 : i32, i32
  }
  func.func @transform_10(%arg0: i32) -> (i32, i32) {
    %c0_i32 = arith.constant 0 : i32
    %c0_i32_0 = arith.constant 0 : i32
    return %arg0, %c0_i32 : i32, i32
  }
}

module attributes {stable_mosaic.version = 11 : i64} {
  func.func @_resblock_kernel(%arg0: i32, %arg1: memref<16x288xf32, #tpu.memory_space<vmem>>, %arg2: memref<288x128xbf16, #tpu.memory_space<vmem>>, %arg3: memref<1x128xf32, #tpu.memory_space<vmem>>, %arg4: memref<1x128xf32, #tpu.memory_space<vmem>>, %arg5: memref<1x128xf32, #tpu.memory_space<vmem>>, %arg6: memref<128x128xbf16, #tpu.memory_space<vmem>>, %arg7: memref<1x128xf32, #tpu.memory_space<vmem>>, %arg8: memref<1x128xf32, #tpu.memory_space<vmem>>, %arg9: memref<1x128xf32, #tpu.memory_space<vmem>>, %arg10: memref<16x128xf32, #tpu.memory_space<vmem>>, %arg11: memref<16x128xf32, #tpu.memory_space<vmem>>) attributes {dimension_semantics = [#tpu.dimension_semantics<parallel>], iteration_bounds = array<i64: 1>, scalar_prefetch = 0 : i64, scratch_operands = 0 : i64, tpu.core_type = #tpu.core_type<tc>, window_params = [{transform_indices = @transform_0, window_bounds = array<i64: 16, 288>}, {pipeline_mode = #tpu.pipeline_mode<synchronous>, transform_indices = @transform_1, window_bounds = array<i64: 288, 128>}, {pipeline_mode = #tpu.pipeline_mode<synchronous>, transform_indices = @transform_2, window_bounds = array<i64: 1, 128>}, {pipeline_mode = #tpu.pipeline_mode<synchronous>, transform_indices = @transform_3, window_bounds = array<i64: 1, 128>}, {pipeline_mode = #tpu.pipeline_mode<synchronous>, transform_indices = @transform_4, window_bounds = array<i64: 1, 128>}, {pipeline_mode = #tpu.pipeline_mode<synchronous>, transform_indices = @transform_5, window_bounds = array<i64: 128, 128>}, {pipeline_mode = #tpu.pipeline_mode<synchronous>, transform_indices = @transform_6, window_bounds = array<i64: 1, 128>}, {pipeline_mode = #tpu.pipeline_mode<synchronous>, transform_indices = @transform_7, window_bounds = array<i64: 1, 128>}, {pipeline_mode = #tpu.pipeline_mode<synchronous>, transform_indices = @transform_8, window_bounds = array<i64: 1, 128>}, {transform_indices = @transform_9, window_bounds = array<i64: 16, 128>}, {transform_indices = @transform_10, window_bounds = array<i64: 16, 128>}]} {
    %c0 = arith.constant 0 : index
    %c0_0 = arith.constant 0 : index
    %0 = vector.load %arg1[%c0, %c0_0] : memref<16x288xf32, #tpu.memory_space<vmem>>, vector<16x288xf32>
    %1 = arith.truncf %0 : vector<16x288xf32> to vector<16x288xbf16>
    %c0_1 = arith.constant 0 : index
    %c0_2 = arith.constant 0 : index
    %2 = vector.load %arg2[%c0_1, %c0_2] : memref<288x128xbf16, #tpu.memory_space<vmem>>, vector<288x128xbf16>
    %cst = arith.constant dense<0.000000e+00> : vector<16x128xf32>
    %3 = tpu.matmul %1, %2, %cst {dimension_numbers = #tpu.dot_dimension_numbers<[1], [0], [0], [1], [0, 0, 1, 1], [], []>} : vector<16x288xbf16>, vector<288x128xbf16>, vector<16x128xf32> -> vector<16x128xf32>
    %c0_3 = arith.constant 0 : index
    %c0_4 = arith.constant 0 : index
    %4 = vector.load %arg4[%c0_3, %c0_4] : memref<1x128xf32, #tpu.memory_space<vmem>>, vector<1x128xf32>
    %c0_5 = arith.constant 0 : index
    %c0_6 = arith.constant 0 : index
    %5 = vector.load %arg3[%c0_5, %c0_6] : memref<1x128xf32, #tpu.memory_space<vmem>>, vector<1x128xf32>
    %6 = vector.broadcast %5 : vector<1x128xf32> to vector<16x128xf32>
    %7 = arith.addf %3, %6 : vector<16x128xf32>
    %8 = vector.broadcast %4 : vector<1x128xf32> to vector<16x128xf32>
    %9 = arith.mulf %8, %7 : vector<16x128xf32>
    %c0_7 = arith.constant 0 : index
    %c0_8 = arith.constant 0 : index
    %10 = vector.load %arg5[%c0_7, %c0_8] : memref<1x128xf32, #tpu.memory_space<vmem>>, vector<1x128xf32>
    %11 = vector.broadcast %10 : vector<1x128xf32> to vector<16x128xf32>
    %12 = arith.addf %9, %11 : vector<16x128xf32>
    %cst_9 = arith.constant 0.000000e+00 : f32
    %13 = vector.broadcast %cst_9 : f32 to vector<16x128xf32>
    %14 = arith.cmpf oge, %12, %13 : vector<16x128xf32>
    %cst_10 = arith.constant 0.229166672 : f32
    %15 = vector.broadcast %cst_10 : f32 to vector<16x128xf32>
    %16 = arith.mulf %12, %15 : vector<16x128xf32>
    %17 = arith.select %14, %12, %16 : vector<16x128xi1>, vector<16x128xf32>
    %18 = arith.truncf %17 : vector<16x128xf32> to vector<16x128xbf16>
    %c0_11 = arith.constant 0 : index
    %c0_12 = arith.constant 0 : index
    %19 = vector.load %arg6[%c0_11, %c0_12] : memref<128x128xbf16, #tpu.memory_space<vmem>>, vector<128x128xbf16>
    %cst_13 = arith.constant dense<0.000000e+00> : vector<16x128xf32>
    %20 = tpu.matmul %18, %19, %cst_13 {dimension_numbers = #tpu.dot_dimension_numbers<[1], [0], [0], [1], [0, 0, 1, 1], [], []>} : vector<16x128xbf16>, vector<128x128xbf16>, vector<16x128xf32> -> vector<16x128xf32>
    %c0_14 = arith.constant 0 : index
    %c0_15 = arith.constant 0 : index
    %21 = vector.load %arg7[%c0_14, %c0_15] : memref<1x128xf32, #tpu.memory_space<vmem>>, vector<1x128xf32>
    %22 = vector.broadcast %21 : vector<1x128xf32> to vector<16x128xf32>
    %23 = arith.addf %20, %22 : vector<16x128xf32>
    %c0_16 = arith.constant 0 : index
    %c0_17 = arith.constant 0 : index
    %24 = vector.load %arg10[%c0_16, %c0_17] : memref<16x128xf32, #tpu.memory_space<vmem>>, vector<16x128xf32>
    %25 = arith.addf %23, %24 : vector<16x128xf32>
    %c0_18 = arith.constant 0 : index
    %c0_19 = arith.constant 0 : index
    %26 = vector.load %arg8[%c0_18, %c0_19] : memref<1x128xf32, #tpu.memory_space<vmem>>, vector<1x128xf32>
    %cst_20 = arith.constant 0.000000e+00 : f32
    %cst_21 = arith.constant 6.000000e+00 : f32
    %27 = vector.broadcast %cst_20 : f32 to vector<16x128xf32>
    %28 = arith.maximumf %27, %25 : vector<16x128xf32>
    %29 = vector.broadcast %cst_21 : f32 to vector<16x128xf32>
    %30 = arith.minimumf %29, %28 : vector<16x128xf32>
    %31 = vector.broadcast %26 : vector<1x128xf32> to vector<16x128xf32>
    %32 = arith.mulf %31, %30 : vector<16x128xf32>
    %c0_22 = arith.constant 0 : index
    %c0_23 = arith.constant 0 : index
    %33 = vector.load %arg9[%c0_22, %c0_23] : memref<1x128xf32, #tpu.memory_space<vmem>>, vector<1x128xf32>
    %34 = vector.broadcast %33 : vector<1x128xf32> to vector<16x128xf32>
    %35 = arith.addf %32, %34 : vector<16x128xf32>
    %c0_24 = arith.constant 0 : index
    %c0_25 = arith.constant 0 : index
    %36 = vector.load %arg11[%c0_24, %c0_25] : memref<16x128xf32, #tpu.memory_space<vmem>>, vector<16x128xf32>
    tpu.vector_store %arg11[%c0_24, %c0_25], %35 {strides = array<i32>} : memref<16x128xf32, #tpu.memory_space<vmem>>, vector<16x128xf32>,
    return
  }
  func.func @transform_0(%arg0: i32) -> (i32, i32) {
    %c0_i32 = arith.constant 0 : i32
    %c0_i32_0 = arith.constant 0 : i32
    return %arg0, %c0_i32 : i32, i32
  }
  func.func @transform_1(%arg0: i32) -> (i32, i32) {
    %c0_i32 = arith.constant 0 : i32
    %c0_i32_0 = arith.constant 0 : i32
    %c0_i32_1 = arith.constant 0 : i32
    return %c0_i32, %c0_i32_0 : i32, i32
  }
  func.func @transform_2(%arg0: i32) -> (i32, i32) {
    %c0_i32 = arith.constant 0 : i32
    %c0_i32_0 = arith.constant 0 : i32
    %c0_i32_1 = arith.constant 0 : i32
    return %c0_i32, %c0_i32_0 : i32, i32
  }
  func.func @transform_3(%arg0: i32) -> (i32, i32) {
    %c0_i32 = arith.constant 0 : i32
    %c0_i32_0 = arith.constant 0 : i32
    %c0_i32_1 = arith.constant 0 : i32
    return %c0_i32, %c0_i32_0 : i32, i32
  }
  func.func @transform_4(%arg0: i32) -> (i32, i32) {
    %c0_i32 = arith.constant 0 : i32
    %c0_i32_0 = arith.constant 0 : i32
    %c0_i32_1 = arith.constant 0 : i32
    return %c0_i32, %c0_i32_0 : i32, i32
  }
  func.func @transform_5(%arg0: i32) -> (i32, i32) {
    %c0_i32 = arith.constant 0 : i32
    %c0_i32_0 = arith.constant 0 : i32
    %c0_i32_1 = arith.constant 0 : i32
    return %c0_i32, %c0_i32_0 : i32, i32
  }
  func.func @transform_6(%arg0: i32) -> (i32, i32) {
    %c0_i32 = arith.constant 0 : i32
    %c0_i32_0 = arith.constant 0 : i32
    %c0_i32_1 = arith.constant 0 : i32
    return %c0_i32, %c0_i32_0 : i32, i32
  }
  func.func @transform_7(%arg0: i32) -> (i32, i32) {
    %c0_i32 = arith.constant 0 : i32
    %c0_i32_0 = arith.constant 0 : i32
    %c0_i32_1 = arith.constant 0 : i32
    return %c0_i32, %c0_i32_0 : i32, i32
  }
  func.func @transform_8(%arg0: i32) -> (i32, i32) {
    %c0_i32 = arith.constant 0 : i32
    %c0_i32_0 = arith.constant 0 : i32
    %c0_i32_1 = arith.constant 0 : i32
    return %c0_i32, %c0_i32_0 : i32, i32
  }
  func.func @transform_9(%arg0: i32) -> (i32, i32) {
    %c0_i32 = arith.constant 0 : i32
    %c0_i32_0 = arith.constant 0 : i32
    return %arg0, %c0_i32 : i32, i32
  }
  func.func @transform_10(%arg0: i32) -> (i32, i32) {
    %c0_i32 = arith.constant 0 : i32
    %c0_i32_0 = arith.constant 0 : i32
    return %arg0, %c0_i32 : i32, i32
  }
}

module attributes {stable_mosaic.version = 11 : i64} {
  func.func @_matmul_fused_kernel(%arg0: i32, %arg1: memref<64x288xf32, #tpu.memory_space<vmem>>, %arg2: memref<288x128xbf16, #tpu.memory_space<vmem>>, %arg3: memref<1x128xf32, #tpu.memory_space<vmem>>, %arg4: memref<1x128xf32, #tpu.memory_space<vmem>>, %arg5: memref<1x128xf32, #tpu.memory_space<vmem>>, %arg6: memref<64x128xf32, #tpu.memory_space<vmem>>) attributes {dimension_semantics = [#tpu.dimension_semantics<parallel>], iteration_bounds = array<i64: 1>, scalar_prefetch = 0 : i64, scratch_operands = 0 : i64, tpu.core_type = #tpu.core_type<tc>, window_params = [{transform_indices = @transform_0, window_bounds = array<i64: 64, 288>}, {pipeline_mode = #tpu.pipeline_mode<synchronous>, transform_indices = @transform_1, window_bounds = array<i64: 288, 128>}, {pipeline_mode = #tpu.pipeline_mode<synchronous>, transform_indices = @transform_2, window_bounds = array<i64: 1, 128>}, {pipeline_mode = #tpu.pipeline_mode<synchronous>, transform_indices = @transform_3, window_bounds = array<i64: 1, 128>}, {pipeline_mode = #tpu.pipeline_mode<synchronous>, transform_indices = @transform_4, window_bounds = array<i64: 1, 128>}, {transform_indices = @transform_5, window_bounds = array<i64: 64, 128>}]} {
    %c0 = arith.constant 0 : index
    %c0_0 = arith.constant 0 : index
    %0 = vector.load %arg1[%c0, %c0_0] : memref<64x288xf32, #tpu.memory_space<vmem>>, vector<64x288xf32>
    %1 = arith.truncf %0 : vector<64x288xf32> to vector<64x288xbf16>
    %c0_1 = arith.constant 0 : index
    %c0_2 = arith.constant 0 : index
    %2 = vector.load %arg2[%c0_1, %c0_2] : memref<288x128xbf16, #tpu.memory_space<vmem>>, vector<288x128xbf16>
    %cst = arith.constant dense<0.000000e+00> : vector<64x128xf32>
    %3 = tpu.matmul %1, %2, %cst {dimension_numbers = #tpu.dot_dimension_numbers<[1], [0], [0], [1], [0, 0, 1, 1], [], []>} : vector<64x288xbf16>, vector<288x128xbf16>, vector<64x128xf32> -> vector<64x128xf32>
    %c0_3 = arith.constant 0 : index
    %c0_4 = arith.constant 0 : index
    %4 = vector.load %arg4[%c0_3, %c0_4] : memref<1x128xf32, #tpu.memory_space<vmem>>, vector<1x128xf32>
    %c0_5 = arith.constant 0 : index
    %c0_6 = arith.constant 0 : index
    %5 = vector.load %arg3[%c0_5, %c0_6] : memref<1x128xf32, #tpu.memory_space<vmem>>, vector<1x128xf32>
    %6 = vector.broadcast %5 : vector<1x128xf32> to vector<64x128xf32>
    %7 = arith.addf %3, %6 : vector<64x128xf32>
    %cst_7 = arith.constant 0.000000e+00 : f32
    %cst_8 = arith.constant 6.000000e+00 : f32
    %8 = vector.broadcast %cst_7 : f32 to vector<64x128xf32>
    %9 = arith.maximumf %8, %7 : vector<64x128xf32>
    %10 = vector.broadcast %cst_8 : f32 to vector<64x128xf32>
    %11 = arith.minimumf %10, %9 : vector<64x128xf32>
    %12 = vector.broadcast %4 : vector<1x128xf32> to vector<64x128xf32>
    %13 = arith.mulf %12, %11 : vector<64x128xf32>
    %c0_9 = arith.constant 0 : index
    %c0_10 = arith.constant 0 : index
    %14 = vector.load %arg5[%c0_9, %c0_10] : memref<1x128xf32, #tpu.memory_space<vmem>>, vector<1x128xf32>
    %15 = vector.broadcast %14 : vector<1x128xf32> to vector<64x128xf32>
    %16 = arith.addf %13, %15 : vector<64x128xf32>
    %c0_11 = arith.constant 0 : index
    %c0_12 = arith.constant 0 : index
    %17 = vector.load %arg6[%c0_11, %c0_12] : memref<64x128xf32, #tpu.memory_space<vmem>>, vector<64x128xf32>
    tpu.vector_store %arg6[%c0_11, %c0_12], %16 {strides = array<i32>} : memref<64x128xf32, #tpu.memory_space<vmem>>, vector<64x128xf32>,
    return
  }
  func.func @transform_0(%arg0: i32) -> (i32, i32) {
    %c0_i32 = arith.constant 0 : i32
    %c0_i32_0 = arith.constant 0 : i32
    return %arg0, %c0_i32 : i32, i32
  }
  func.func @transform_1(%arg0: i32) -> (i32, i32) {
    %c0_i32 = arith.constant 0 : i32
    %c0_i32_0 = arith.constant 0 : i32
    %c0_i32_1 = arith.constant 0 : i32
    return %c0_i32, %c0_i32_0 : i32, i32
  }
  func.func @transform_2(%arg0: i32) -> (i32, i32) {
    %c0_i32 = arith.constant 0 : i32
    %c0_i32_0 = arith.constant 0 : i32
    %c0_i32_1 = arith.constant 0 : i32
    return %c0_i32, %c0_i32_0 : i32, i32
  }
  func.func @transform_3(%arg0: i32) -> (i32, i32) {
    %c0_i32 = arith.constant 0 : i32
    %c0_i32_0 = arith.constant 0 : i32
    %c0_i32_1 = arith.constant 0 : i32
    return %c0_i32, %c0_i32_0 : i32, i32
  }
  func.func @transform_4(%arg0: i32) -> (i32, i32) {
    %c0_i32 = arith.constant 0 : i32
    %c0_i32_0 = arith.constant 0 : i32
    %c0_i32_1 = arith.constant 0 : i32
    return %c0_i32, %c0_i32_0 : i32, i32
  }
  func.func @transform_5(%arg0: i32) -> (i32, i32) {
    %c0_i32 = arith.constant 0 : i32
    %c0_i32_0 = arith.constant 0 : i32
    return %arg0, %c0_i32 : i32, i32
  }
}

module attributes {stable_mosaic.version = 11 : i64} {
  func.func @_matmul_fused_kernel(%arg0: i32, %arg1: memref<208x512xf32, #tpu.memory_space<vmem>>, %arg2: memref<512x128xbf16, #tpu.memory_space<vmem>>, %arg3: memref<1x128xf32, #tpu.memory_space<vmem>>, %arg4: memref<1x128xf32, #tpu.memory_space<vmem>>, %arg5: memref<1x128xf32, #tpu.memory_space<vmem>>, %arg6: memref<208x128xf32, #tpu.memory_space<vmem>>) attributes {dimension_semantics = [#tpu.dimension_semantics<parallel>], iteration_bounds = array<i64: 1>, scalar_prefetch = 0 : i64, scratch_operands = 0 : i64, tpu.core_type = #tpu.core_type<tc>, window_params = [{transform_indices = @transform_0, window_bounds = array<i64: 208, 512>}, {pipeline_mode = #tpu.pipeline_mode<synchronous>, transform_indices = @transform_1, window_bounds = array<i64: 512, 128>}, {pipeline_mode = #tpu.pipeline_mode<synchronous>, transform_indices = @transform_2, window_bounds = array<i64: 1, 128>}, {pipeline_mode = #tpu.pipeline_mode<synchronous>, transform_indices = @transform_3, window_bounds = array<i64: 1, 128>}, {pipeline_mode = #tpu.pipeline_mode<synchronous>, transform_indices = @transform_4, window_bounds = array<i64: 1, 128>}, {transform_indices = @transform_5, window_bounds = array<i64: 208, 128>}]} {
    %c0 = arith.constant 0 : index
    %c0_0 = arith.constant 0 : index
    %0 = vector.load %arg1[%c0, %c0_0] : memref<208x512xf32, #tpu.memory_space<vmem>>, vector<208x512xf32>
    %1 = arith.truncf %0 : vector<208x512xf32> to vector<208x512xbf16>
    %c0_1 = arith.constant 0 : index
    %c0_2 = arith.constant 0 : index
    %2 = vector.load %arg2[%c0_1, %c0_2] : memref<512x128xbf16, #tpu.memory_space<vmem>>, vector<512x128xbf16>
    %cst = arith.constant dense<0.000000e+00> : vector<208x128xf32>
    %3 = tpu.matmul %1, %2, %cst {dimension_numbers = #tpu.dot_dimension_numbers<[1], [0], [0], [1], [0, 0, 1, 1], [], []>} : vector<208x512xbf16>, vector<512x128xbf16>, vector<208x128xf32> -> vector<208x128xf32>
    %c0_3 = arith.constant 0 : index
    %c0_4 = arith.constant 0 : index
    %4 = vector.load %arg4[%c0_3, %c0_4] : memref<1x128xf32, #tpu.memory_space<vmem>>, vector<1x128xf32>
    %c0_5 = arith.constant 0 : index
    %c0_6 = arith.constant 0 : index
    %5 = vector.load %arg3[%c0_5, %c0_6] : memref<1x128xf32, #tpu.memory_space<vmem>>, vector<1x128xf32>
    %6 = vector.broadcast %5 : vector<1x128xf32> to vector<208x128xf32>
    %7 = arith.addf %3, %6 : vector<208x128xf32>
    %8 = math.tanh %7 : vector<208x128xf32>
    %9 = vector.broadcast %4 : vector<1x128xf32> to vector<208x128xf32>
    %10 = arith.mulf %9, %8 : vector<208x128xf32>
    %c0_7 = arith.constant 0 : index
    %c0_8 = arith.constant 0 : index
    %11 = vector.load %arg5[%c0_7, %c0_8] : memref<1x128xf32, #tpu.memory_space<vmem>>, vector<1x128xf32>
    %12 = vector.broadcast %11 : vector<1x128xf32> to vector<208x128xf32>
    %13 = arith.addf %10, %12 : vector<208x128xf32>
    %c0_9 = arith.constant 0 : index
    %c0_10 = arith.constant 0 : index
    %14 = vector.load %arg6[%c0_9, %c0_10] : memref<208x128xf32, #tpu.memory_space<vmem>>, vector<208x128xf32>
    tpu.vector_store %arg6[%c0_9, %c0_10], %13 {strides = array<i32>} : memref<208x128xf32, #tpu.memory_space<vmem>>, vector<208x128xf32>,
    return
  }
  func.func @transform_0(%arg0: i32) -> (i32, i32) {
    %c0_i32 = arith.constant 0 : i32
    %c0_i32_0 = arith.constant 0 : i32
    return %arg0, %c0_i32 : i32, i32
  }
  func.func @transform_1(%arg0: i32) -> (i32, i32) {
    %c0_i32 = arith.constant 0 : i32
    %c0_i32_0 = arith.constant 0 : i32
    %c0_i32_1 = arith.constant 0 : i32
    return %c0_i32, %c0_i32_0 : i32, i32
  }
  func.func @transform_2(%arg0: i32) -> (i32, i32) {
    %c0_i32 = arith.constant 0 : i32
    %c0_i32_0 = arith.constant 0 : i32
    %c0_i32_1 = arith.constant 0 : i32
    return %c0_i32, %c0_i32_0 : i32, i32
  }
  func.func @transform_3(%arg0: i32) -> (i32, i32) {
    %c0_i32 = arith.constant 0 : i32
    %c0_i32_0 = arith.constant 0 : i32
    %c0_i32_1 = arith.constant 0 : i32
    return %c0_i32, %c0_i32_0 : i32, i32
  }
  func.func @transform_4(%arg0: i32) -> (i32, i32) {
    %c0_i32 = arith.constant 0 : i32
    %c0_i32_0 = arith.constant 0 : i32
    %c0_i32_1 = arith.constant 0 : i32
    return %c0_i32, %c0_i32_0 : i32, i32
  }
  func.func @transform_5(%arg0: i32) -> (i32, i32) {
    %c0_i32 = arith.constant 0 : i32
    %c0_i32_0 = arith.constant 0 : i32
    return %arg0, %c0_i32 : i32, i32
  }
}

</mosaic_0001>

<bundles_post_ra>
// kernel: vqvae_forward.29
= control target key start
LH: loop header
LB: loop body
LE: loop exit
PB: predicated region body
PF: predicated region fallthrough
CT: control target
= control target key end

     0   :  { %vm77_vm0 = vcmask 392192   ;;  %s558_s1 = inlined_call_operand.vmem [shape: bf16[48,128], index: 1, kind: input, shape index: {}]   ;;  %s559_s0 = inlined_call_operand.vmem [shape: f32[128,48], index: 0, kind: input, shape index: {}]   ;;  %s560_s2 = inlined_call_operand.vmem [shape: f32[1,128], index: 2, kind: input, shape index: {}]   ;;  %s561_s3 = inlined_call_operand.vmem [shape: f32[1,128], index: 3, kind: input, shape index: {}]   ;;  %s562_s4 = inlined_call_operand.vmem [shape: f32[1,128], index: 4, kind: input, shape index: {}]   ;;  %s563_s5 = inlined_call_operand.vmem [shape: f32[128,128], index: 5, kind: output, shape index: {}]  }
   0x1   :  { %v349_v0 = vld [vmem:[%s558_s1 + $0x10] sm:$0xff]   ;;  %v350_v1 = vld [vmem:[%s558_s1 + $0x8] sm:$0xff]   ;;  %v21_v2 = vld [vmem:[%s559_s0] sm:$0xff] }
   0x2   :  { %321 = vmatprep.subr.bf16.mxu0 %v349_v0  ;;  %343 = vmatprep.subr.bf16.mxu1 %v349_v0  ;;  %v22_v3 = vld [vmem:[%s559_s0 + $0x8] sm:$0xff]  ;;  %v29_v4 = vld [vmem:[%s559_s0 + $0x40] sm:$0xff]  ;;  %v23_v9 = vld [vmem:[%s559_s0 + $0x10] sm:$0xff] }
   0x3   :  { %322 = vmatpush3.bf16.msra.mxu0 %v349_v0  ;;  %346 = vmatpush3.bf16.msra.mxu1 %v349_v0  ;;  %v351_v5 = vld [vmem:[%s558_s1] sm:$0xff]   ;;  %v37_v6 = vpack.c.bf16 %v22_v3, %v21_v2  ;;  %v30_v7 = vld [vmem:[%s559_s0 + $0x48] sm:$0xff]  ;;  %v24_v10 = vld [vmem:[%s559_s0 + $0x18] sm:$0xff] }
   0x4   :  { %323 = vmatprep.subr.bf16.mxu0 %v350_v1  ;;  %344 = vmatprep.subr.bf16.mxu1 %v350_v1  ;;  %v41_v8 = vpack.c.bf16 %v30_v7, %v29_v4  ;;  %v31_v11 = vld [vmem:[%s559_s0 + $0x50] sm:$0xff]  ;;  %v32_v12 = vld [vmem:[%s559_s0 + $0x58] sm:$0xff]  ;;  %v25_v13 = vld [vmem:[%s559_s0 + $0x20] sm:$0xff]  ;;  %v38_v17 = vpack.c.bf16 %v24_v10, %v23_v9 }
   0x5   :  { %327 = vmatprep.mubr.msk.bf16.mxu0 %vm77_vm0, %v37_v6  ;;  %v26_v14 = vld [vmem:[%s559_s0 + $0x28] sm:$0xff]  ;;  %v33_v15 = vld [vmem:[%s559_s0 + $0x60] sm:$0xff]  ;;  %v42_v18 = vpack.c.bf16 %v32_v12, %v31_v11  ;;  %v27_v21 = vld [vmem:[%s559_s0 + $0x30] sm:$0xff] }
   0x6   :  { %v34_v16 = vld [vmem:[%s559_s0 + $0x68] sm:$0xff]  ;;  %335 = vmatprep.mubr.msk.bf16.mxu1 %vm77_vm0, %v41_v8  ;;  %v39_v19 = vpack.c.bf16 %v26_v14, %v25_v13  ;;  %v28_v22 = vld [vmem:[%s559_s0 + $0x38] sm:$0xff]  ;;  %v35_v23 = vld [vmem:[%s559_s0 + $0x70] sm:$0xff] }
   0x7   :  { %324 = vmatpush3.bf16.msra.mxu0 %v350_v1  ;;  %347 = vmatpush3.bf16.msra.mxu1 %v350_v1  ;;  %v43_v20 = vpack.c.bf16 %v34_v16, %v33_v15  ;;  %v36_v24 = vld [vmem:[%s559_s0 + $0x78] sm:$0xff]  ;;  %v40_v25 = vpack.c.bf16 %v28_v22, %v27_v21  ;;  %v450_v27 = vld [vmem:[%s560_s2] ss:$0 sm:$0xff] }
   0x8   :  { %325 = vmatprep.subr.bf16.mxu0 %v351_v5  ;;  %345 = vmatprep.subr.bf16.mxu1 %v351_v5  ;;  %v44_v26 = vpack.c.bf16 %v36_v24, %v35_v23  ;;  %v459_v38 = vld [vmem:[%s561_s3] ss:$0 sm:$0xff] }
   0x9   :  { %v464_v45 = vld [vmem:[%s562_s4] ss:$0 sm:$0xff] }
   0xb   :  { %326 = vmatpush3.bf16.msra.mxu0 %v351_v5  ;;  %348 = vmatpush3.bf16.msra.mxu1 %v351_v5 }
   0xe   :  { %328 = vmatmul.mubr.msk.bf16.vlgmr.msra.gmra.mxu0 %vm77_vm0, %v38_v17  ;;  %336 = vmatmul.mubr.msk.bf16.vlgmr.msra.gmra.mxu1 %vm77_vm0, %v42_v18 }
   0xf   :  { %331 = vmatprep.mubr.msk.bf16.mxu0 %vm77_vm0, %v39_v19  ;;  %339 = vmatprep.mubr.msk.bf16.mxu1 %vm77_vm0, %v43_v20 }
  0x16   :  { %332 = vmatmul.mubr.msk.bf16.gmra.mxu0 %vm77_vm0, %v40_v25  ;;  %340 = vmatmul.mubr.msk.bf16.gmra.mxu1 %vm77_vm0, %v44_v26 }
  0xce   :  { %v329_v28 = vpop.f32.mrf.mxu0  ;;  %v337_v29 = vpop.f32.mrf.mxu1 }
  0xcf   :  { %v145_v30 = vadd.f32 %v329_v28, %v450_v27  ;;  %v177_v31 = vadd.f32 %v337_v29, %v450_v27 }
  0xd0   :  { %v136_v32 = vpop.f32.mrf.mxu0  ;;  %v168_v33 = vpop.f32.mrf.mxu1 }
  0xd1   :  { %v201_v34 = vmax.f32 %v145_v30, 0.0  ;;  %v209_v35 = vmax.f32 %v177_v31, 0.0  ;;  %v137_v36 = vadd.f32 %v450_v27, %v136_v32  ;;  %v169_v37 = vadd.f32 %v450_v27, %v168_v33 }
  0xd2   :  { %v330_v39 = vpop.f32.mrf.mxu0  ;;  %v338_v40 = vpop.f32.mrf.mxu1 }
  0xd3   :  { %v217_v41 = vmin.f32 %v201_v34, 6.0  ;;  %v225_v42 = vmin.f32 %v209_v35, 6.0  ;;  %v199_v43 = vmax.f32 %v137_v36, 0.0  ;;  %v207_v44 = vmax.f32 %v169_v37, 0.0 }
  0xd4   :  { %v148_v46 = vadd.f32 %v330_v39, %v450_v27  ;;  %v180_v47 = vadd.f32 %v338_v40, %v450_v27  ;;  %v139_v48 = vpop.f32.mrf.mxu0  ;;  %v171_v49 = vpop.f32.mrf.mxu1 }
  0xd5   :  { %v239_v50 = vmul.f32 %v459_v38, %v217_v41  ;;  %v247_v51 = vmul.f32 %v459_v38, %v225_v42  ;;  %v215_v52 = vmin.f32 %v199_v43, 6.0  ;;  %v223_v53 = vmin.f32 %v207_v44, 6.0 }
  0xd6   :  { %v202_v54 = vmax.f32 %v148_v46, 0.0  ;;  %v210_v55 = vmax.f32 %v180_v47, 0.0  ;;  %v140_v56 = vadd.f32 %v450_v27, %v139_v48  ;;  %v172_v57 = vadd.f32 %v450_v27, %v171_v49  ;;  %v333_v58 = vpop.f32.mrf.mxu0  ;;  %v341_v59 = vpop.f32.mrf.mxu1 }
  0xd7   :  { %v262_v60 = vadd.f32 %v464_v45, %v239_v50  ;;  %v270_v61 = vadd.f32 %v464_v45, %v247_v51  ;;  %v237_v62 = vmul.f32 %v459_v38, %v215_v52  ;;  %v245_v63 = vmul.f32 %v459_v38, %v223_v53 }
  0xd8   :  { %v218_v0 = vmin.f32 %v202_v54, 6.0  ;;  %v226_v1 = vmin.f32 %v210_v55, 6.0  ;;  %v200_v2 = vmax.f32 %v140_v56, 0.0  ;;  %v208_v3 = vmax.f32 %v172_v57, 0.0  ;;  %v152_v4 = vpop.f32.mrf.mxu0  ;;  %v184_v5 = vpop.f32.mrf.mxu1 }
  0xd9   :  { %278 = vst [vmem:[%s563_s5 + $0x10] sm:$0xff] %v262_v60  ;;  %286 = vst [vmem:[%s563_s5 + $0x50] sm:$0xff] %v270_v61  ;;  %v260_v6 = vadd.f32 %v464_v45, %v237_v62  ;;  %v268_v7 = vadd.f32 %v464_v45, %v245_v63  ;;  %v161_v8 = vadd.f32 %v333_v58, %v450_v27 }
  0xda   :  { %v193_v9 = vadd.f32 %v341_v59, %v450_v27  ;;  %v240_v10 = vmul.f32 %v459_v38, %v218_v0  ;;  %v248_v11 = vmul.f32 %v459_v38, %v226_v1  ;;  %v216_v12 = vmin.f32 %v200_v2, 6.0  ;;  %v334_v14 = vpop.f32.mrf.mxu0  ;;  %v342_v15 = vpop.f32.mrf.mxu1 }
  0xdb   :  { %v224_v13 = vmin.f32 %v208_v3, 6.0  ;;  %276 = vst [vmem:[%s563_s5] sm:$0xff] %v260_v6  ;;  %284 = vst [vmem:[%s563_s5 + $0x40] sm:$0xff] %v268_v7  ;;  %v205_v16 = vmax.f32 %v161_v8, 0.0  ;;  %v153_v18 = vadd.f32 %v450_v27, %v152_v4  ;;  %v185_v19 = vadd.f32 %v450_v27, %v184_v5 }
  0xdc   :  { %v213_v17 = vmax.f32 %v193_v9, 0.0  ;;  %v263_v20 = vadd.f32 %v464_v45, %v240_v10  ;;  %v271_v21 = vadd.f32 %v464_v45, %v248_v11  ;;  %v238_v22 = vmul.f32 %v459_v38, %v216_v12  ;;  %v155_v29 = vpop.f32.mrf.mxu0  ;;  %v187_v30 = vpop.f32.mrf.mxu1 }
  0xdd   :  { %v246_v23 = vmul.f32 %v459_v38, %v224_v13  ;;  %v221_v24 = vmin.f32 %v205_v16, 6.0  ;;  %v203_v26 = vmax.f32 %v153_v18, 0.0  ;;  %v211_v28 = vmax.f32 %v185_v19, 0.0 }
  0xde   :  { %v229_v25 = vmin.f32 %v213_v17, 6.0  ;;  %279 = vst [vmem:[%s563_s5 + $0x18] sm:$0xff] %v263_v20  ;;  %287 = vst [vmem:[%s563_s5 + $0x58] sm:$0xff] %v271_v21  ;;  %v261_v31 = vadd.f32 %v464_v45, %v238_v22  ;;  %v164_v33 = vadd.f32 %v334_v14, %v450_v27  ;;  %v196_v34 = vadd.f32 %v342_v15, %v450_v27 }
  0xdf   :  { %v269_v32 = vadd.f32 %v464_v45, %v246_v23  ;;  %v243_v35 = vmul.f32 %v459_v38, %v221_v24  ;;  %v219_v37 = vmin.f32 %v203_v26, 6.0  ;;  %v227_v39 = vmin.f32 %v211_v28, 6.0 }
  0xe0   :  { %v251_v36 = vmul.f32 %v459_v38, %v229_v25  ;;  %277 = vst [vmem:[%s563_s5 + $0x8] sm:$0xff] %v261_v31  ;;  %v206_v40 = vmax.f32 %v164_v33, 0.0  ;;  %v214_v41 = vmax.f32 %v196_v34, 0.0  ;;  %v156_v42 = vadd.f32 %v450_v27, %v155_v29 }
  0xe1   :  { %285 = vst [vmem:[%s563_s5 + $0x48] sm:$0xff] %v269_v32  ;;  %v188_v43 = vadd.f32 %v450_v27, %v187_v30  ;;  %v266_v44 = vadd.f32 %v464_v45, %v243_v35  ;;  %v241_v47 = vmul.f32 %v459_v38, %v219_v37  ;;  %v249_v48 = vmul.f32 %v459_v38, %v227_v39 }
  0xe2   :  { %v274_v46 = vadd.f32 %v464_v45, %v251_v36  ;;  %v222_v49 = vmin.f32 %v206_v40, 6.0  ;;  %v230_v50 = vmin.f32 %v214_v41, 6.0  ;;  %v204_v51 = vmax.f32 %v156_v42, 0.0 }
  0xe3   :  { %v212_v52 = vmax.f32 %v188_v43, 0.0  ;;  %282 = vst [vmem:[%s563_s5 + $0x30] sm:$0xff] %v266_v44  ;;  %v264_v27 = vadd.f32 %v464_v45, %v241_v47  ;;  %v272_v53 = vadd.f32 %v464_v45, %v249_v48 }
  0xe4   :  { %290 = vst [vmem:[%s563_s5 + $0x70] sm:$0xff] %v274_v46  ;;  %v244_v54 = vmul.f32 %v459_v38, %v222_v49  ;;  %v252_v55 = vmul.f32 %v459_v38, %v230_v50  ;;  %v220_v56 = vmin.f32 %v204_v51, 6.0 }
  0xe5   :  { %v228_v57 = vmin.f32 %v212_v52, 6.0  ;;  %280 = vst [vmem:[%s563_s5 + $0x20] sm:$0xff] %v264_v27  ;;  %288 = vst [vmem:[%s563_s5 + $0x60] sm:$0xff] %v272_v53 }
  0xe6   :  { %v267_v58 = vadd.f32 %v464_v45, %v244_v54  ;;  %v275_v59 = vadd.f32 %v464_v45, %v252_v55  ;;  %v242_v60 = vmul.f32 %v459_v38, %v220_v56 }
  0xe7   :  { %v250_v61 = vmul.f32 %v459_v38, %v228_v57 }
  0xe8   :  { %283 = vst [vmem:[%s563_s5 + $0x38] sm:$0xff] %v267_v58  ;;  %291 = vst [vmem:[%s563_s5 + $0x78] sm:$0xff] %v275_v59  ;;  %v265_v62 = vadd.f32 %v464_v45, %v242_v60 }
  0xe9   :  { %v273_v63 = vadd.f32 %v464_v45, %v250_v61 }
  0xea   :  { %281 = vst [vmem:[%s563_s5 + $0x28] sm:$0xff] %v265_v62 }
  0xeb   :  { %289 = vst [vmem:[%s563_s5 + $0x68] sm:$0xff] %v273_v63 }

// kernel: vqvae_forward.30
= control target key start
LH: loop header
LB: loop body
LE: loop exit
PB: predicated region body
PF: predicated region fallthrough
CT: control target
= control target key end

     0   :  { %vm191_vm0 = vcmask 261120   ;;  %s555_s1 = inlined_call_operand.vmem [shape: bf16[288,128], index: 1, kind: input, shape index: {}]   ;;  %s556_s0 = inlined_call_operand.vmem [shape: f32[32,288], index: 0, kind: input, shape index: {}]   ;;  %s557_s2 = inlined_call_operand.vmem [shape: f32[1,128], index: 2, kind: input, shape index: {}]   ;;  %s558_s3 = inlined_call_operand.vmem [shape: f32[1,128], index: 3, kind: input, shape index: {}]   ;;  %s559_s4 = inlined_call_operand.vmem [shape: f32[1,128], index: 4, kind: input, shape index: {}]   ;;  %s560_s5 = inlined_call_operand.vmem [shape: f32[32,128], index: 5, kind: output, shape index: {}]  }
   0x1   :  { %v396_v0 = vld [vmem:[%s555_s1 + $0x78] sm:$0xff]   ;;  %v398_v2 = vld [vmem:[%s555_s1 + $0x70] sm:$0xff]   ;;  %v400_v4 = vld [vmem:[%s555_s1 + $0x68] sm:$0xff]  }
   0x2   :  { %v397_v1 = vld [vmem:[%s555_s1 + $0x38] sm:$0xff]   ;;  %356 = vmatprep.subr.bf16.mxu0 %v396_v0  ;;  %v399_v3 = vld [vmem:[%s555_s1 + $0x30] sm:$0xff]   ;;  %v401_v5 = vld [vmem:[%s555_s1 + $0x28] sm:$0xff]  }
   0x3   :  { %357 = vmatpush3.bf16.msra.mxu0 %v397_v1  ;;  %v402_v6 = vld [vmem:[%s555_s1 + $0x60] sm:$0xff]   ;;  %v404_v8 = vld [vmem:[%s555_s1 + $0x58] sm:$0xff]   ;;  %v411_v10 = vld [vmem:[%s555_s1 + $0x88] sm:$0xff]  }
   0x4   :  { %358 = vmatprep.subr.bf16.mxu0 %v398_v2  ;;  %v403_v7 = vld [vmem:[%s555_s1 + $0x20] sm:$0xff]   ;;  %v405_v9 = vld [vmem:[%s555_s1 + $0x18] sm:$0xff]   ;;  %v406_v11 = vld [vmem:[%s555_s1 + $0x50] sm:$0xff]   ;;  %388 = vmatprep.subr.bf16.mxu1 %v411_v10 }
   0x5   :  { %v22_v12 = vld [vmem:[%s556_s0 + $0x8] sm:$0xff]  ;;  %v25_v13 = vld [vmem:[%s556_s0 + $0x20] sm:$0xff]  ;;  %v407_v14 = vld [vmem:[%s555_s1 + $0x10] sm:$0xff]   ;;  %389 = vmatpush3.bf16.msra.mxu1 %v411_v10 }
   0x6   :  { %v34_v15 = vpack.c.bf16 %v25_v13, %v22_v12  ;;  %v413_v16 = vld [vmem:[%s555_s1 + $0x80] sm:$0xff]   ;;  %v23_v17 = vld [vmem:[%s556_s0 + $0x10] sm:$0xff]  ;;  %v26_v18 = vld [vmem:[%s556_s0 + $0x28] sm:$0xff] }
   0x7   :  { %359 = vmatpush3.bf16.msra.mxu0 %v399_v3  ;;  %v408_v19 = vld [vmem:[%s555_s1 + $0x48] sm:$0xff]   ;;  %v35_v20 = vpack.c.bf16 %v26_v18, %v23_v17  ;;  %v29_v21 = vld [vmem:[%s556_s0 + $0x40] sm:$0xff]  ;;  %v32_v22 = vld [vmem:[%s556_s0 + $0x58] sm:$0xff]  ;;  %390 = vmatprep.subr.bf16.mxu1 %v413_v16 }
   0x8   :  { %360 = vmatprep.subr.bf16.mxu0 %v400_v4  ;;  %230 = vmatprep.mubr.bf16.mxu0 %v34_v15  ;;  %v38_v23 = vpack.c.bf16 %v32_v22, %v29_v21  ;;  %v409_v24 = vld [vmem:[%s555_s1 + $0x8] sm:$0xff]   ;;  %v410_v25 = vld [vmem:[%s555_s1 + $0x40] sm:$0xff]   ;;  %v24_v28 = vld [vmem:[%s556_s0 + $0x18] sm:$0xff] }
   0x9   :  { %391 = vmatpush3.bf16.msra.mxu1 %v413_v16  ;;  %392 = vmatprep.mubr.msk.bf16.mxu1 %vm191_vm0, %v35_v20  ;;  %v412_v26 = vld [vmem:[%s555_s1] sm:$0xff]   ;;  %v28_v29 = vld [vmem:[%s556_s0 + $0x38] sm:$0xff]  ;;  %v31_v30 = vld [vmem:[%s556_s0 + $0x50] sm:$0xff] }
   0xa   :  { %v21_v27 = vld [vmem:[%s556_s0] sm:$0xff]  ;;  %v37_v32 = vpack.c.bf16 %v31_v30, %v28_v29  ;;  %v27_v33 = vld [vmem:[%s556_s0 + $0x30] sm:$0xff]  ;;  %v30_v34 = vld [vmem:[%s556_s0 + $0x48] sm:$0xff] }
   0xb   :  { %361 = vmatpush3.bf16.msra.mxu0 %v401_v5  ;;  %v33_v31 = vpack.c.bf16 %v24_v28, %v21_v27  ;;  %v36_v35 = vpack.c.bf16 %v30_v34, %v27_v33  ;;  %v333_v40 = vld [vmem:[%s557_s2] ss:$0 sm:$0xff] }
   0xc   :  { %362 = vmatprep.subr.bf16.mxu0 %v402_v6  ;;  %393 = vmatmul.mubr.msk.bf16.vlgmr.msra.gmra.mxu1 %vm191_vm0, %v38_v23  ;;  %v354_v52 = vld [vmem:[%s558_s3] ss:$0 sm:$0xff] }
   0xd   :  { %v355_v57 = vld [vmem:[%s559_s4] ss:$0 sm:$0xff] }
   0xf   :  { %363 = vmatpush3.bf16.msra.mxu0 %v403_v7 }
  0x10   :  { %364 = vmatprep.subr.bf16.mxu0 %v404_v8 }
  0x13   :  { %365 = vmatpush3.bf16.msra.mxu0 %v405_v9 }
  0x14   :  { %366 = vmatprep.subr.bf16.mxu0 %v406_v11 }
  0x17   :  { %367 = vmatpush3.bf16.msra.mxu0 %v407_v14 }
  0x18   :  { %368 = vmatprep.subr.bf16.mxu0 %v408_v19 }
  0x1b   :  { %369 = vmatpush3.bf16.msra.mxu0 %v409_v24 }
  0x1c   :  { %370 = vmatprep.subr.bf16.mxu0 %v410_v25 }
  0x1f   :  { %371 = vmatpush3.bf16.msra.mxu0 %v412_v26 }
  0x22   :  { %231 = vmatmul.mubr.bf16.vlgmr.msra.gmra.mxu0 %v33_v31 }
  0x23   :  { %238 = vmatprep.mubr.bf16.mxu0 %v37_v32 }
  0x2a   :  { %239 = vmatmul.mubr.bf16.gmra.mxu0 %v36_v35 }
  0xcc   :  { %v394_v36 = vpop.f32.mrf.mxu1 }
  0xce   :  { %v281_v38 = vpop.f32.mrf.mxu1 }
  0xd0   :  { %v395_v43 = vpop.f32.mrf.mxu1 }
  0xd2   :  { %v284_v49 = vpop.f32.mrf.mxu1 }
  0xe2   :  { %v372_v37 = vpop.f32.mrf.mxu0 }
  0xe4   :  { %v373_v39 = vpop.f32.mrf.mxu0 }
  0xe5   :  { %v374_v41 = vadd.f32 %v373_v39, %v372_v37 }
  0xe6   :  { %v375_v42 = vpop.f32.mrf.mxu0 }
  0xe7   :  { %v233_v44 = vadd.f32 %v374_v41, %v333_v40 }
  0xe8   :  { %v376_v45 = vpop.f32.mrf.mxu0 }
  0xe9   :  { %v377_v46 = vadd.f32 %v376_v45, %v375_v42  ;;  %v282_v47 = vadd.f32 %v281_v38, %v233_v44 }
  0xea   :  { %v378_v48 = vpop.f32.mrf.mxu0 }
  0xeb   :  { %v296_v50 = vmax.f32 %v282_v47, 0.0  ;;  %v236_v51 = vadd.f32 %v377_v46, %v333_v40 }
  0xec   :  { %v379_v53 = vpop.f32.mrf.mxu0 }
  0xed   :  { %v300_v54 = vmin.f32 %v296_v50, 6.0  ;;  %v380_v55 = vadd.f32 %v379_v53, %v378_v48  ;;  %v285_v56 = vadd.f32 %v284_v49, %v236_v51 }
  0xee   :  { %v381_v58 = vpop.f32.mrf.mxu0 }
  0xef   :  { %v310_v59 = vmul.f32 %v354_v52, %v300_v54  ;;  %v241_v60 = vadd.f32 %v380_v55, %v333_v40  ;;  %v297_v61 = vmax.f32 %v285_v56, 0.0 }
  0xf0   :  { %v382_v62 = vpop.f32.mrf.mxu0 }
  0xf1   :  { %v321_v63 = vadd.f32 %v355_v57, %v310_v59  ;;  %v290_v0 = vadd.f32 %v394_v36, %v241_v60  ;;  %v301_v1 = vmin.f32 %v297_v61, 6.0  ;;  %v383_v2 = vadd.f32 %v382_v62, %v381_v58 }
  0xf3   :  { %325 = vst [vmem:[%s560_s5] sm:$0xff] %v321_v63  ;;  %v298_v3 = vmax.f32 %v290_v0, 0.0  ;;  %v311_v4 = vmul.f32 %v354_v52, %v301_v1  ;;  %v244_v5 = vadd.f32 %v383_v2, %v333_v40 }
  0xf5   :  { %v302_v6 = vmin.f32 %v298_v3, 6.0  ;;  %v322_v7 = vadd.f32 %v355_v57, %v311_v4  ;;  %v293_v8 = vadd.f32 %v395_v43, %v244_v5 }
  0xf7   :  { %v312_v9 = vmul.f32 %v354_v52, %v302_v6  ;;  %326 = vst [vmem:[%s560_s5 + $0x8] sm:$0xff] %v322_v7  ;;  %v299_v10 = vmax.f32 %v293_v8, 0.0 }
  0xf9   :  { %v323_v11 = vadd.f32 %v355_v57, %v312_v9  ;;  %v303_v12 = vmin.f32 %v299_v10, 6.0 }
  0xfb   :  { %327 = vst [vmem:[%s560_s5 + $0x10] sm:$0xff] %v323_v11  ;;  %v313_v13 = vmul.f32 %v354_v52, %v303_v12 }
  0xfd   :  { %v324_v14 = vadd.f32 %v355_v57, %v313_v13 }
  0xff   :  { %328 = vst [vmem:[%s560_s5 + $0x18] sm:$0xff] %v324_v14 }

// kernel: vqvae_forward.33
= control target key start
LH: loop header
LB: loop body
LE: loop exit
PB: predicated region body
PF: predicated region fallthrough
CT: control target
= control target key end

     0   :  { %v366_v1 = vmov 0.0   ;;  %vm367_vm0 = vmmov 0   ;;  %vm182_vm1 = vcmask 261120   ;;  %s485_s1 = inlined_call_operand.vmem [shape: bf16[288,128], index: 1, kind: input, shape index: {}]   ;;  %s486_s0 = inlined_call_operand.vmem [shape: f32[16,288], index: 0, kind: input, shape index: {}]   ;;  %s487_s2 = inlined_call_operand.vmem [shape: f32[1,128], index: 2, kind: input, shape index: {}]   ;;  %s488_s3 = inlined_call_operand.vmem [shape: f32[1,128], index: 3, kind: input, shape index: {}]   ;;  %s489_s4 = inlined_call_operand.vmem [shape: f32[1,128], index: 4, kind: input, shape index: {}]   ;;  %s490_s5 = inlined_call_operand.vmem [shape: f32[16,128], index: 5, kind: output, shape index: {}]  }
   0x1   :  { %v348_v0 = vld [vmem:[%s485_s1 + $0x78] sm:$0xff]   ;;  %338 = vmatprep.subr.bf16.mxu1 %v366_v1  ;;  %342 = vmatprep.mubr.msk.bf16.mxu1 %vm367_vm0, %v366_v1  ;;  %v350_v3 = vld [vmem:[%s485_s1 + $0x70] sm:$0xff]   ;;  %v352_v5 = vld [vmem:[%s485_s1 + $0x68] sm:$0xff]  }
   0x2   :  { %v349_v2 = vld [vmem:[%s485_s1 + $0x38] sm:$0xff]   ;;  %313 = vmatprep.subr.bf16.mxu0 %v348_v0  ;;  %v351_v4 = vld [vmem:[%s485_s1 + $0x30] sm:$0xff]   ;;  %v353_v6 = vld [vmem:[%s485_s1 + $0x28] sm:$0xff]  }
   0x3   :  { %314 = vmatpush3.bf16.msra.mxu0 %v349_v2  ;;  %v354_v7 = vld [vmem:[%s485_s1 + $0x60] sm:$0xff]   ;;  %v356_v9 = vld [vmem:[%s485_s1 + $0x58] sm:$0xff]   ;;  %v362_v10 = vld [vmem:[%s485_s1 + $0x88] sm:$0xff]  }
   0x4   :  { %315 = vmatprep.subr.bf16.mxu0 %v350_v3  ;;  %v355_v8 = vld [vmem:[%s485_s1 + $0x20] sm:$0xff]   ;;  %v357_v11 = vld [vmem:[%s485_s1 + $0x18] sm:$0xff]   ;;  %v358_v12 = vld [vmem:[%s485_s1 + $0x50] sm:$0xff]   ;;  %339 = vmatpush3.bf16.msra.mxu1 %v362_v10 }
   0x5   :  { %340 = vmatprep.subr.bf16.mxu1 %v366_v1  ;;  %v365_v13 = vld [vmem:[%s485_s1 + $0x80] sm:$0xff]   ;;  %v22_v14 = vld [vmem:[%s486_s0 + $0x8] sm:$0xff]  ;;  %v359_v16 = vld [vmem:[%s485_s1 + $0x10] sm:$0xff]  }
   0x6   :  { %v25_v15 = vld [vmem:[%s486_s0 + $0x20] sm:$0xff]  ;;  %v23_v18 = vld [vmem:[%s486_s0 + $0x10] sm:$0xff]  ;;  %v26_v19 = vld [vmem:[%s486_s0 + $0x28] sm:$0xff] }
   0x7   :  { %316 = vmatpush3.bf16.msra.mxu0 %v351_v4  ;;  %v28_v17 = vpack.c.bf16 %v25_v15, %v22_v14  ;;  %v360_v20 = vld [vmem:[%s485_s1 + $0x48] sm:$0xff]   ;;  %v29_v21 = vpack.c.bf16 %v26_v19, %v23_v18  ;;  %v363_v23 = vld [vmem:[%s485_s1 + $0x40] sm:$0xff]   ;;  %v24_v26 = vld [vmem:[%s486_s0 + $0x18] sm:$0xff] }
   0x8   :  { %317 = vmatprep.subr.bf16.mxu0 %v352_v5  ;;  %341 = vmatpush3.bf16.msra.mxu1 %v365_v13  ;;  %v361_v22 = vld [vmem:[%s485_s1 + $0x8] sm:$0xff]   ;;  %v364_v24 = vld [vmem:[%s485_s1] sm:$0xff]  }
   0x9   :  { %218 = vmatprep.mubr.bf16.mxu0 %v28_v17  ;;  %v21_v25 = vld [vmem:[%s486_s0] sm:$0xff] }
   0xa   :  { %v27_v27 = vpack.c.bf16 %v24_v26, %v21_v25  ;;  %v291_v33 = vld [vmem:[%s487_s2] ss:$0 sm:$0xff] }
   0xb   :  { %318 = vmatpush3.bf16.msra.mxu0 %v353_v6  ;;  %343 = vmatmul.mubr.msk.bf16.vlgmr.msra.gmra.mxu1 %vm182_vm1, %v29_v21  ;;  %v311_v38 = vld [vmem:[%s488_s3] ss:$0 sm:$0xff] }
   0xc   :  { %319 = vmatprep.subr.bf16.mxu0 %v354_v7  ;;  %v312_v42 = vld [vmem:[%s489_s4] ss:$0 sm:$0xff] }
   0xf   :  { %320 = vmatpush3.bf16.msra.mxu0 %v355_v8 }
  0x10   :  { %321 = vmatprep.subr.bf16.mxu0 %v356_v9 }
  0x13   :  { %322 = vmatpush3.bf16.msra.mxu0 %v357_v11 }
  0x14   :  { %323 = vmatprep.subr.bf16.mxu0 %v358_v12 }
  0x17   :  { %324 = vmatpush3.bf16.msra.mxu0 %v359_v16 }
  0x18   :  { %325 = vmatprep.subr.bf16.mxu0 %v360_v20 }
  0x1b   :  { %326 = vmatpush3.bf16.msra.mxu0 %v361_v22 }
  0x1c   :  { %327 = vmatprep.subr.bf16.mxu0 %v363_v23 }
  0x1f   :  { %328 = vmatpush3.bf16.msra.mxu0 %v364_v24 }
  0x22   :  { %219 = vmatmul.mubr.bf16.vlgmr.msra.gmra.mxu0 %v27_v27 }
  0xcb   :  { %v261_v28 = vpop.f32.mrf.mxu1 }
  0xcd   :  { %v344_v29 = vpop.f32.mrf.mxu1 }
  0xcf   :  { %v264_v30 = vpop.f32.mrf.mxu1 }
  0xd1   :  { %v345_v31 = vpop.f32.mrf.mxu1 }
  0xe2   :  { %v329_v32 = vpop.f32.mrf.mxu0 }
  0xe4   :  { %v330_v34 = vpop.f32.mrf.mxu0 }
  0xe5   :  { %v331_v35 = vadd.f32 %v330_v34, %v329_v32 }
  0xe6   :  { %v332_v36 = vpop.f32.mrf.mxu0 }
  0xe7   :  { %v221_v37 = vadd.f32 %v331_v35, %v291_v33 }
  0xe8   :  { %v333_v39 = vpop.f32.mrf.mxu0 }
  0xe9   :  { %v262_v40 = vadd.f32 %v261_v28, %v221_v37  ;;  %v334_v41 = vadd.f32 %v333_v39, %v332_v36 }
  0xeb   :  { %v274_v43 = vmul.f32 %v311_v38, %v262_v40  ;;  %v224_v44 = vadd.f32 %v334_v41, %v291_v33 }
  0xed   :  { %v283_v45 = vadd.f32 %v312_v42, %v274_v43  ;;  %v265_v46 = vadd.f32 %v264_v30, %v224_v44 }
  0xef   :  { %285 = vst [vmem:[%s490_s5] sm:$0xff] %v283_v45  ;;  %v275_v47 = vmul.f32 %v311_v38, %v265_v46 }
  0xf1   :  { %v284_v48 = vadd.f32 %v312_v42, %v275_v47 }
  0xf3   :  { %286 = vst [vmem:[%s490_s5 + $0x8] sm:$0xff] %v284_v48 }

// kernel: vqvae_forward.43
= control target key start
LH: loop header
LB: loop body
LE: loop exit
PB: predicated region body
PF: predicated region fallthrough
CT: control target
= control target key end

     0   :  { %vm34_vm0 = vcmask 261120   ;;  %v187_v33 = vlaneseq  ;;  %v438_v60 = vmov 1.0   ;;  %s565_s1 = inlined_call_operand.vmem [shape: f32[128,32], index: 1, kind: input, shape index: {}]   ;;  %s566_s0 = inlined_call_operand.vmem [shape: f32[16,32], index: 0, kind: input, shape index: {}]   ;;  %s567_s2 = inlined_call_operand.vmem [shape: f32[1,128], index: 2, kind: input, shape index: {}]   ;;  %s568_s3 = inlined_call_operand.vmem [shape: f32[16,32], index: 3, kind: output, shape index: {}]  }
   0x1   :  { %v31_v0 = vld [vmem:[%s565_s1 + $0x78] sm:$0xff]  ;;  %v30_v1 = vld [vmem:[%s565_s1 + $0x70] sm:$0xff]  ;;  %v29_v2 = vld [vmem:[%s565_s1 + $0x68] sm:$0xff] }
   0x2   :  { %367 = vmatprep.subr.msk.mxu0 %vm34_vm0, %v31_v0  ;;  %402 = vmatprep.subr.mxu1 %v31_v0  ;;  %v14_v3 = vld [vmem:[%s566_s0] sm:$0xff]  ;;  %v477_v4 = vld [vmem:[%s566_s0 + $0x8] sm:$0xff]  ;;  %v27_v9 = vld [vmem:[%s565_s1 + $0x58] sm:$0xff]  ;;  %v188_v34 = vand.u32 127, %v187_v33 }
   0x3   :  { %368 = vmatpush3.xpose.msk.msra.mxu0 %vm34_vm0, %v31_v0  ;;  %403 = vmatpush3.msra.mxu1 %v31_v0  ;;  %v32_v5 = vmul.f32 %v14_v3, %v14_v3  ;;  %v33_v6 = vmul.f32 %v477_v4, %v477_v4  ;;  %v28_v7 = vld [vmem:[%s565_s1 + $0x60] sm:$0xff]  ;;  %v26_v11 = vld [vmem:[%s565_s1 + $0x50] sm:$0xff]  ;;  %v25_v12 = vld [vmem:[%s565_s1 + $0x48] sm:$0xff] }
   0x4   :  { %369 = vmatprep.subr.msk.mxu0 %vm34_vm0, %v30_v1  ;;  %404 = vmatprep.subr.mxu1 %v30_v1  ;;  %v24_v13 = vld [vmem:[%s565_s1 + $0x40] sm:$0xff]  ;;  %v23_v14 = vld [vmem:[%s565_s1 + $0x38] sm:$0xff]  ;;  %v22_v15 = vld [vmem:[%s565_s1 + $0x30] sm:$0xff] }
   0x5   :  { %405 = vmatpush3.msra.mxu1 %v30_v1  ;;  %399 = vmatprep.mubr.msk.f32.mxu0 %vm34_vm0, %v14_v3  ;;  %v35_v8 = vsel %vm34_vm0, %v32_v5, 0.0  ;;  %v38_v10 = vsel %vm34_vm0, %v33_v6, 0.0  ;;  %v21_v16 = vld [vmem:[%s565_s1 + $0x28] sm:$0xff]  ;;  %v20_v17 = vld [vmem:[%s565_s1 + $0x20] sm:$0xff]  ;;  %v19_v18 = vld [vmem:[%s565_s1 + $0x18] sm:$0xff] }
   0x6   :  { %406 = vmatprep.subr.mxu1 %v29_v2  ;;  %36 = vadd.xlane.f32.xlu0 %v35_v8  ;;  %v18_v19 = vld [vmem:[%s565_s1 + $0x10] sm:$0xff]  ;;  %v17_v20 = vld [vmem:[%s565_s1 + $0x8] sm:$0xff]  ;;  %v16_v21 = vld [vmem:[%s565_s1] sm:$0xff] }
   0x7   :  { %370 = vmatpush3.xpose.msk.msra.mxu0 %vm34_vm0, %v30_v1  ;;  %407 = vmatpush3.msra.mxu1 %v29_v2  ;;  %v326_v29 = vld [vmem:[%s567_s2] ss:$0 sm:$0xff] }
   0x8   :  { %371 = vmatprep.subr.msk.mxu0 %vm34_vm0, %v29_v2  ;;  %408 = vmatprep.subr.mxu1 %v28_v7 }
   0x9   :  { %409 = vmatpush3.msra.mxu1 %v28_v7 }
   0xa   :  { %410 = vmatprep.subr.mxu1 %v27_v9  ;;  %39 = vadd.xlane.f32.xlu0 %v38_v10 }
   0xb   :  { %372 = vmatpush3.xpose.msk.msra.mxu0 %vm34_vm0, %v29_v2  ;;  %411 = vmatpush3.msra.mxu1 %v27_v9 }
   0xc   :  { %373 = vmatprep.subr.msk.mxu0 %vm34_vm0, %v28_v7  ;;  %412 = vmatprep.subr.mxu1 %v26_v11 }
   0xd   :  { %413 = vmatpush3.msra.mxu1 %v26_v11 }
   0xe   :  { %414 = vmatprep.subr.mxu1 %v25_v12 }
   0xf   :  { %374 = vmatpush3.xpose.msk.msra.mxu0 %vm34_vm0, %v28_v7  ;;  %415 = vmatpush3.msra.mxu1 %v25_v12 }
  0x10   :  { %375 = vmatprep.subr.msk.mxu0 %vm34_vm0, %v27_v9  ;;  %416 = vmatprep.subr.mxu1 %v24_v13 }
  0x11   :  { %417 = vmatpush3.msra.mxu1 %v24_v13 }
  0x12   :  { %418 = vmatprep.subr.mxu1 %v23_v14 }
  0x13   :  { %376 = vmatpush3.xpose.msk.msra.mxu0 %vm34_vm0, %v27_v9  ;;  %419 = vmatpush3.msra.mxu1 %v23_v14 }
  0x14   :  { %377 = vmatprep.subr.msk.mxu0 %vm34_vm0, %v26_v11  ;;  %420 = vmatprep.subr.mxu1 %v22_v15 }
  0x15   :  { %421 = vmatpush3.msra.mxu1 %v22_v15 }
  0x16   :  { %422 = vmatprep.subr.mxu1 %v21_v16 }
  0x17   :  { %378 = vmatpush3.xpose.msk.msra.mxu0 %vm34_vm0, %v26_v11  ;;  %423 = vmatpush3.msra.mxu1 %v21_v16 }
  0x18   :  { %379 = vmatprep.subr.msk.mxu0 %vm34_vm0, %v25_v12  ;;  %424 = vmatprep.subr.mxu1 %v20_v17 }
  0x19   :  { %425 = vmatpush3.msra.mxu1 %v20_v17 }
  0x1a   :  { %426 = vmatprep.subr.mxu1 %v19_v18 }
  0x1b   :  { %380 = vmatpush3.xpose.msk.msra.mxu0 %vm34_vm0, %v25_v12  ;;  %427 = vmatpush3.msra.mxu1 %v19_v18 }
  0x1c   :  { %381 = vmatprep.subr.msk.mxu0 %vm34_vm0, %v24_v13  ;;  %428 = vmatprep.subr.mxu1 %v18_v19 }
  0x1d   :  { %429 = vmatpush3.msra.mxu1 %v18_v19 }
  0x1e   :  { %430 = vmatprep.subr.mxu1 %v17_v20 }
  0x1f   :  { %382 = vmatpush3.xpose.msk.msra.mxu0 %vm34_vm0, %v24_v13  ;;  %431 = vmatpush3.msra.mxu1 %v17_v20 }
  0x20   :  { %383 = vmatprep.subr.msk.mxu0 %vm34_vm0, %v23_v14  ;;  %432 = vmatprep.subr.mxu1 %v16_v21 }
  0x21   :  { %433 = vmatpush3.msra.mxu1 %v16_v21 }
  0x23   :  { %384 = vmatpush3.xpose.msk.msra.mxu0 %vm34_vm0, %v23_v14 }
  0x24   :  { %385 = vmatprep.subr.msk.mxu0 %vm34_vm0, %v22_v15 }
  0x27   :  { %386 = vmatpush3.xpose.msk.msra.mxu0 %vm34_vm0, %v22_v15 }
  0x28   :  { %387 = vmatprep.subr.msk.mxu0 %vm34_vm0, %v21_v16 }
  0x2b   :  { %388 = vmatpush3.xpose.msk.msra.mxu0 %vm34_vm0, %v21_v16 }
  0x2c   :  { %389 = vmatprep.subr.msk.mxu0 %vm34_vm0, %v20_v17 }
  0x2f   :  { %390 = vmatpush3.xpose.msk.msra.mxu0 %vm34_vm0, %v20_v17 }
  0x30   :  { %391 = vmatprep.subr.msk.mxu0 %vm34_vm0, %v19_v18 }
  0x33   :  { %392 = vmatpush3.xpose.msk.msra.mxu0 %vm34_vm0, %v19_v18 }
  0x34   :  { %393 = vmatprep.subr.msk.mxu0 %vm34_vm0, %v18_v19 }
  0x37   :  { %394 = vmatpush3.xpose.msk.msra.mxu0 %vm34_vm0, %v18_v19 }
  0x38   :  { %395 = vmatprep.subr.msk.mxu0 %vm34_vm0, %v17_v20 }
  0x3b   :  { %396 = vmatpush3.xpose.msk.msra.mxu0 %vm34_vm0, %v17_v20 }
  0x3c   :  { %397 = vmatprep.subr.msk.mxu0 %vm34_vm0, %v16_v21 }
  0x3f   :  { %398 = vmatpush3.xpose.msk.msra.mxu0 %vm34_vm0, %v16_v21 }
  0x42   :  { %400 = vmatmul.mubr.msk.f32.vlgmr.msra.gmra.mxu0 %vm34_vm0, %v477_v4 }
  0x8f   :  { %v37_v22 = vpop.xlane.xlu0 %36 }
  0x93   :  { %v40_v27 = vpop.xlane.xlu0 %39 }
 0x102   :  { %v401_v23 = vpop.f32.mrf.mxu0 }
 0x103   :  { %v171_v25 = vmul.f32 2.0, %v401_v23 }
 0x104   :  { %v161_v24 = vpop.f32.mrf.mxu0 }
 0x105   :  { %v170_v26 = vmul.f32 2.0, %v161_v24  ;;  %v173_v30 = vsub.f32 %v40_v27, %v171_v25 }
 0x107   :  { %v172_v28 = vsub.f32 %v37_v22, %v170_v26  ;;  %v182_v32 = vadd.f32 %v326_v29, %v173_v30 }
 0x109   :  { %v181_v31 = vadd.f32 %v326_v29, %v172_v28 }
 0x10b   :  { %183 = vmin.xlane.f32.xlu1 %v181_v31 }
 0x10f   :  { %185 = vmin.xlane.f32.xlu1 %v182_v32 }
 0x194   :  { %v184_v35 = vpop.xlane.xlu1 %183 }
 0x195   :  { %vm189_vm1 = vcmp.le.f32.partialorder %v181_v31, %v184_v35 }
 0x196   :  { %v191_v36 = vsel %vm189_vm1, %v188_v34, 2147483647 }
 0x197   :  { %v194_v37 = vshra.s32 %v191_v36, 16  ;;  %v193_v43 = vand.u32 65535, %v191_v36 }
 0x198   :  { %v186_v38 = vpop.xlane.xlu1 %185 }
 0x199   :  { %vm190_vm2 = vcmp.le.f32.partialorder %v182_v32, %v186_v38  ;;  %v196_v39 = vcvt.s32.f32 %v194_v37  ;;  %v195_v46 = vcvt.s32.f32 %v193_v43 }
 0x19a   :  { %v192_v40 = vsel %vm190_vm2, %v188_v34, 2147483647 }
 0x19b   :  { %197 = vmin.xlane.f32.xlu0 %v196_v39  ;;  %v208_v41 = vshra.s32 %v192_v40, 16  ;;  %v207_v44 = vand.u32 65535, %v192_v40 }
 0x19d   :  { %v210_v42 = vcvt.s32.f32 %v208_v41  ;;  %v209_v49 = vcvt.s32.f32 %v207_v44 }
 0x19f   :  { %211 = vmin.xlane.f32.xlu1 %v210_v42 }
 0x224   :  { %v198_v45 = vpop.xlane.xlu0 %197 }
 0x225   :  { %vm199_vm3 = vcmp.eq.f32.partialorder %v196_v39, %v198_v45  ;;  %v204_v51 = vcvt.f32.s32 %v198_v45 }
 0x226   :  { %v200_v47 = vsel %vm199_vm3, %v195_v46, inf }
 0x227   :  { %201 = vmin.xlane.f32.xlu0 %v200_v47  ;;  %v205_v53 = vshll.u32 %v204_v51, 16 }
 0x228   :  { %v212_v48 = vpop.xlane.xlu1 %211 }
 0x229   :  { %vm213_vm4 = vcmp.eq.f32.partialorder %v210_v42, %v212_v48  ;;  %v218_v54 = vcvt.f32.s32 %v212_v48 }
 0x22a   :  { %v214_v50 = vsel %vm213_vm4, %v209_v49, inf }
 0x22b   :  { %215 = vmin.xlane.f32.xlu1 %v214_v50  ;;  %v219_v58 = vshll.u32 %v218_v54, 16 }
 0x2b0   :  { %v202_v52 = vpop.xlane.xlu0 %201 }
 0x2b1   :  { %v203_v55 = vcvt.f32.s32 %v202_v52 }
 0x2b3   :  { %v206_v56 = vadd.s32 %v205_v53, %v203_v55 }
 0x2b4   :  { %v216_v57 = vpop.xlane.xlu1 %215 }
 0x2b5   :  { %v217_v59 = vcvt.f32.s32 %v216_v57  ;;  %vm221_vm5 = vcmp.eq.s32.totalorder %v188_v34, %v206_v56 }
 0x2b6   :  { %434 = vmatprep.mubr.msk.f32.mxu1 %vm221_vm5, %v438_v60 }
 0x2b7   :  { %v220_v61 = vadd.s32 %v219_v58, %v217_v59 }
 0x2b9   :  { %vm222_vm6 = vcmp.eq.s32.totalorder %v188_v34, %v220_v61 }
 0x2ba   :  { %435 = vmatmul.mubr.msk.f32.vlgmr.msra.gmra.mxu1 %vm222_vm6, %v438_v60 }
 0x37a   :  { %v436_v62 = vpop.f32.mrf.mxu1 }
 0x37b   :  { %303 = vst.msk [vmem:[%s568_s3 + $0x8] sm:$0xff] %vm34_vm0, %v436_v62 }
 0x37c   :  { %v293_v63 = vpop.f32.mrf.mxu1 }
 0x37d   :  { %302 = vst.msk [vmem:[%s568_s3] sm:$0xff] %vm34_vm0, %v293_v63 }

// kernel: vqvae_forward.34
= control target key start
LH: loop header
LB: loop body
LE: loop exit
PB: predicated region body
PF: predicated region fallthrough
CT: control target
= control target key end

     0   :  { %v570_v1 = vmov 0.0   ;;  %vm571_vm0 = vmmov 0   ;;  %vm197_vm1 = vcmask 261120   ;;  %s767_s1 = inlined_call_operand.vmem [shape: bf16[288,128], index: 1, kind: input, shape index: {}]   ;;  %s768_s0 = inlined_call_operand.vmem [shape: f32[16,288], index: 0, kind: input, shape index: {}]   ;;  %s769_s5 = inlined_call_operand.vmem [shape: bf16[128,128], index: 5, kind: input, shape index: {}]   ;;  %s770_s2 = inlined_call_operand.vmem [shape: f32[1,128], index: 2, kind: input, shape index: {}]   ;;  %s771_s3 = inlined_call_operand.vmem [shape: f32[1,128], index: 3, kind: input, shape index: {}]   ;;  %s772_s4 = inlined_call_operand.vmem [shape: f32[1,128], index: 4, kind: input, shape index: {}]   ;;  %s773_s6 = inlined_call_operand.vmem [shape: f32[1,128], index: 6, kind: input, shape index: {}]   ;;  %s774_s9 = inlined_call_operand.vmem [shape: f32[16,128], index: 9, kind: input, shape index: {}]   ;;  %s775_s7 = inlined_call_operand.vmem [shape: f32[1,128], index: 7, kind: input, shape index: {}]   ;;  %s776_s8 = inlined_call_operand.vmem [shape: f32[1,128], index: 8, kind: input, shape index: {}]   ;;  %s777_s10 = inlined_call_operand.vmem [shape: f32[16,128], index: 10, kind: output, shape index: {}]  }
   0x1   :  { %v544_v0 = vld [vmem:[%s767_s1 + $0x78] sm:$0xff]   ;;  %514 = vmatprep.subr.bf16.mxu1 %v570_v1  ;;  %518 = vmatprep.mubr.msk.bf16.mxu1 %vm571_vm0, %v570_v1  ;;  %v546_v3 = vld [vmem:[%s767_s1 + $0x70] sm:$0xff]   ;;  %v548_v5 = vld [vmem:[%s767_s1 + $0x68] sm:$0xff]  }
   0x2   :  { %v545_v2 = vld [vmem:[%s767_s1 + $0x38] sm:$0xff]   ;;  %480 = vmatprep.subr.bf16.mxu0 %v544_v0  ;;  %v547_v4 = vld [vmem:[%s767_s1 + $0x30] sm:$0xff]   ;;  %v549_v6 = vld [vmem:[%s767_s1 + $0x28] sm:$0xff]  }
   0x3   :  { %481 = vmatpush3.bf16.msra.mxu0 %v545_v2  ;;  %v550_v7 = vld [vmem:[%s767_s1 + $0x60] sm:$0xff]   ;;  %v552_v9 = vld [vmem:[%s767_s1 + $0x58] sm:$0xff]   ;;  %v558_v10 = vld [vmem:[%s767_s1 + $0x88] sm:$0xff]  }
   0x4   :  { %482 = vmatprep.subr.bf16.mxu0 %v546_v3  ;;  %v551_v8 = vld [vmem:[%s767_s1 + $0x20] sm:$0xff]   ;;  %v553_v11 = vld [vmem:[%s767_s1 + $0x18] sm:$0xff]   ;;  %v554_v12 = vld [vmem:[%s767_s1 + $0x50] sm:$0xff]   ;;  %515 = vmatpush3.bf16.msra.mxu1 %v558_v10 }
   0x5   :  { %516 = vmatprep.subr.bf16.mxu1 %v570_v1  ;;  %v561_v13 = vld [vmem:[%s767_s1 + $0x80] sm:$0xff]   ;;  %v555_v14 = vld [vmem:[%s767_s1 + $0x10] sm:$0xff]   ;;  %v37_v15 = vld [vmem:[%s768_s0 + $0x8] sm:$0xff] }
   0x6   :  { %v40_v16 = vld [vmem:[%s768_s0 + $0x20] sm:$0xff]  ;;  %v556_v17 = vld [vmem:[%s767_s1 + $0x48] sm:$0xff]   ;;  %v38_v19 = vld [vmem:[%s768_s0 + $0x10] sm:$0xff] }
   0x7   :  { %483 = vmatpush3.bf16.msra.mxu0 %v547_v4  ;;  %v43_v18 = vpack.c.bf16 %v40_v16, %v37_v15  ;;  %v41_v20 = vld [vmem:[%s768_s0 + $0x28] sm:$0xff]  ;;  %v562_v22 = vld [vmem:[%s769_s5 + $0x38] sm:$0xff]   ;;  %v559_v24 = vld [vmem:[%s767_s1 + $0x40] sm:$0xff]  }
   0x8   :  { %484 = vmatprep.subr.bf16.mxu0 %v548_v5  ;;  %517 = vmatpush3.bf16.msra.mxu1 %v561_v13  ;;  %v44_v21 = vpack.c.bf16 %v41_v20, %v38_v19  ;;  %v557_v23 = vld [vmem:[%s767_s1 + $0x8] sm:$0xff]   ;;  %v563_v25 = vld [vmem:[%s769_s5 + $0x30] sm:$0xff]   ;;  %v560_v26 = vld [vmem:[%s767_s1] sm:$0xff]  }
   0x9   :  { %233 = vmatprep.mubr.bf16.mxu0 %v43_v18  ;;  %522 = vmatprep.subr.bf16.mxu1 %v570_v1  ;;  %v36_v27 = vld [vmem:[%s768_s0] sm:$0xff]  ;;  %v39_v28 = vld [vmem:[%s768_s0 + $0x18] sm:$0xff]  ;;  %v564_v29 = vld [vmem:[%s769_s5 + $0x28] sm:$0xff]  }
   0xa   :  { %v42_v30 = vpack.c.bf16 %v39_v28, %v36_v27  ;;  %v565_v31 = vld [vmem:[%s769_s5 + $0x20] sm:$0xff]   ;;  %v566_v32 = vld [vmem:[%s769_s5 + $0x18] sm:$0xff]   ;;  %v567_v33 = vld [vmem:[%s769_s5 + $0x10] sm:$0xff]  }
   0xb   :  { %485 = vmatpush3.bf16.msra.mxu0 %v549_v6  ;;  %519 = vmatmul.mubr.msk.bf16.vlgmr.msra.gmra.mxu1 %vm197_vm1, %v44_v21  ;;  %v568_v34 = vld [vmem:[%s769_s5 + $0x8] sm:$0xff]   ;;  %v569_v35 = vld [vmem:[%s769_s5] sm:$0xff]  }
   0xc   :  { %486 = vmatprep.subr.bf16.mxu0 %v550_v7  ;;  %523 = vmatpush3.bf16.msra.mxu1 %v562_v22  ;;  %v447_v41 = vld [vmem:[%s770_s2] ss:$0 sm:$0xff]  ;;  %v420_v7 = vld [vmem:[%s774_s9 + $0x8] sm:$0xff] }
   0xd   :  { %524 = vmatprep.subr.bf16.mxu1 %v570_v1  ;;  %538 = vmatprep.mubr.msk.bf16.mxu1 %vm571_vm0, %v570_v1  ;;  %v467_v46 = vld [vmem:[%s771_s3] ss:$0 sm:$0xff] }
   0xe   :  { %v468_v50 = vld [vmem:[%s772_s4] ss:$0 sm:$0xff] }
   0xf   :  { %487 = vmatpush3.bf16.msra.mxu0 %v551_v8  ;;  %v469_v62 = vld [vmem:[%s773_s6] ss:$0 sm:$0xff] }
  0x10   :  { %488 = vmatprep.subr.bf16.mxu0 %v552_v9  ;;  %525 = vmatpush3.bf16.msra.mxu1 %v563_v25  ;;  %v419_v0 = vld [vmem:[%s774_s9] sm:$0xff] }
  0x11   :  { %526 = vmatprep.subr.bf16.mxu1 %v570_v1  ;;  %v478_v2 = vld [vmem:[%s775_s7] ss:$0 sm:$0xff] }
  0x12   :  { %v479_v5 = vld [vmem:[%s776_s8] ss:$0 sm:$0xff] }
  0x13   :  { %489 = vmatpush3.bf16.msra.mxu0 %v553_v11 }
  0x14   :  { %490 = vmatprep.subr.bf16.mxu0 %v554_v12  ;;  %527 = vmatpush3.bf16.msra.mxu1 %v564_v29 }
  0x15   :  { %528 = vmatprep.subr.bf16.mxu1 %v570_v1 }
  0x17   :  { %491 = vmatpush3.bf16.msra.mxu0 %v555_v14 }
  0x18   :  { %492 = vmatprep.subr.bf16.mxu0 %v556_v17  ;;  %529 = vmatpush3.bf16.msra.mxu1 %v565_v31 }
  0x19   :  { %530 = vmatprep.subr.bf16.mxu1 %v570_v1 }
  0x1b   :  { %493 = vmatpush3.bf16.msra.mxu0 %v557_v23 }
  0x1c   :  { %494 = vmatprep.subr.bf16.mxu0 %v559_v24  ;;  %531 = vmatpush3.bf16.msra.mxu1 %v566_v32 }
  0x1d   :  { %532 = vmatprep.subr.bf16.mxu1 %v570_v1 }
  0x1f   :  { %495 = vmatpush3.bf16.msra.mxu0 %v560_v26 }
  0x20   :  { %533 = vmatpush3.bf16.msra.mxu1 %v567_v33 }
  0x21   :  { %534 = vmatprep.subr.bf16.mxu1 %v570_v1 }
  0x22   :  { %234 = vmatmul.mubr.bf16.vlgmr.msra.gmra.mxu0 %v42_v30 }
  0x24   :  { %535 = vmatpush3.bf16.msra.mxu1 %v568_v34 }
  0x25   :  { %536 = vmatprep.subr.bf16.mxu1 %v570_v1 }
  0x28   :  { %537 = vmatpush3.bf16.msra.mxu1 %v569_v35 }
  0xcb   :  { %v276_v36 = vpop.f32.mrf.mxu1 }
  0xcd   :  { %v520_v37 = vpop.f32.mrf.mxu1 }
  0xcf   :  { %v279_v38 = vpop.f32.mrf.mxu1 }
  0xd1   :  { %v521_v39 = vpop.f32.mrf.mxu1 }
  0xe2   :  { %v496_v40 = vpop.f32.mrf.mxu0 }
  0xe4   :  { %v497_v42 = vpop.f32.mrf.mxu0 }
  0xe5   :  { %v498_v43 = vadd.f32 %v497_v42, %v496_v40 }
  0xe6   :  { %v499_v44 = vpop.f32.mrf.mxu0 }
  0xe7   :  { %v236_v45 = vadd.f32 %v498_v43, %v447_v41 }
  0xe8   :  { %v500_v47 = vpop.f32.mrf.mxu0 }
  0xe9   :  { %v277_v48 = vadd.f32 %v276_v36, %v236_v45  ;;  %v501_v49 = vadd.f32 %v500_v47, %v499_v44 }
  0xeb   :  { %v289_v51 = vmul.f32 %v467_v46, %v277_v48  ;;  %v239_v52 = vadd.f32 %v501_v49, %v447_v41 }
  0xed   :  { %v298_v53 = vadd.f32 %v468_v50, %v289_v51  ;;  %v280_v54 = vadd.f32 %v279_v38, %v239_v52 }
  0xef   :  { %v290_v55 = vmul.f32 %v467_v46, %v280_v54  ;;  %v302_v57 = vmul.f32 0.22916667, %v298_v53  ;;  %vm300_vm2 = vcmp.ge.f32.partialorder %v298_v53, 0.0 }
  0xf1   :  { %v299_v56 = vadd.f32 %v468_v50, %v290_v55  ;;  %v304_v59 = vsel %vm300_vm2, %v298_v53, %v302_v57 }
  0xf3   :  { %vm301_vm3 = vcmp.ge.f32.partialorder %v299_v56, 0.0  ;;  %v303_v58 = vmul.f32 0.22916667, %v299_v56 }
  0xf5   :  { %v305_v60 = vsel %vm301_vm3, %v299_v56, %v303_v58 }
  0xf6   :  { %v306_v61 = vpack.c.bf16 %v305_v60, %v304_v59 }
  0xf8   :  { %539 = vmatmul.mubr.bf16.vlgmr.msra.gmra.mxu1 %v306_v61 }
 0x1b8   :  { %v412_v63 = vpop.f32.mrf.mxu1 }
 0x1b9   :  { %v413_v1 = vadd.f32 %v469_v62, %v412_v63 }
 0x1ba   :  { %v540_v3 = vpop.f32.mrf.mxu1 }
 0x1bb   :  { %v421_v4 = vadd.f32 %v419_v0, %v413_v1 }
 0x1bc   :  { %v415_v6 = vpop.f32.mrf.mxu1 }
 0x1bd   :  { %v430_v8 = vmul.f32 %v478_v2, %v421_v4  ;;  %v416_v9 = vadd.f32 %v469_v62, %v415_v6 }
 0x1be   :  { %v541_v10 = vpop.f32.mrf.mxu1 }
 0x1bf   :  { %v439_v11 = vadd.f32 %v479_v5, %v430_v8  ;;  %v422_v12 = vadd.f32 %v420_v7, %v416_v9 }
 0x1c1   :  { %441 = vst [vmem:[%s777_s10] sm:$0xff] %v439_v11  ;;  %v431_v13 = vmul.f32 %v478_v2, %v422_v12 }
 0x1c3   :  { %v440_v14 = vadd.f32 %v479_v5, %v431_v13 }
 0x1c5   :  { %442 = vst [vmem:[%s777_s10 + $0x8] sm:$0xff] %v440_v14 }

// kernel: vqvae_forward.52
= control target key start
LH: loop header
LB: loop body
LE: loop exit
PB: predicated region body
PF: predicated region fallthrough
CT: control target
= control target key end

     0   :  { %v574_v1 = vmov 0.0   ;;  %vm575_vm0 = vmmov 0   ;;  %vm197_vm1 = vcmask 261120   ;;  %s771_s1 = inlined_call_operand.vmem [shape: bf16[288,128], index: 1, kind: input, shape index: {}]   ;;  %s772_s0 = inlined_call_operand.vmem [shape: f32[16,288], index: 0, kind: input, shape index: {}]   ;;  %s773_s5 = inlined_call_operand.vmem [shape: bf16[128,128], index: 5, kind: input, shape index: {}]   ;;  %s774_s2 = inlined_call_operand.vmem [shape: f32[1,128], index: 2, kind: input, shape index: {}]   ;;  %s775_s3 = inlined_call_operand.vmem [shape: f32[1,128], index: 3, kind: input, shape index: {}]   ;;  %s776_s4 = inlined_call_operand.vmem [shape: f32[1,128], index: 4, kind: input, shape index: {}]   ;;  %s777_s6 = inlined_call_operand.vmem [shape: f32[1,128], index: 6, kind: input, shape index: {}]   ;;  %s778_s9 = inlined_call_operand.vmem [shape: f32[16,128], index: 9, kind: input, shape index: {}]   ;;  %s779_s7 = inlined_call_operand.vmem [shape: f32[1,128], index: 7, kind: input, shape index: {}]   ;;  %s780_s8 = inlined_call_operand.vmem [shape: f32[1,128], index: 8, kind: input, shape index: {}]   ;;  %s781_s10 = inlined_call_operand.vmem [shape: f32[16,128], index: 10, kind: output, shape index: {}]  }
   0x1   :  { %v548_v0 = vld [vmem:[%s771_s1 + $0x78] sm:$0xff]   ;;  %518 = vmatprep.subr.bf16.mxu1 %v574_v1  ;;  %522 = vmatprep.mubr.msk.bf16.mxu1 %vm575_vm0, %v574_v1  ;;  %v550_v3 = vld [vmem:[%s771_s1 + $0x70] sm:$0xff]   ;;  %v552_v5 = vld [vmem:[%s771_s1 + $0x68] sm:$0xff]  }
   0x2   :  { %v549_v2 = vld [vmem:[%s771_s1 + $0x38] sm:$0xff]   ;;  %484 = vmatprep.subr.bf16.mxu0 %v548_v0  ;;  %v551_v4 = vld [vmem:[%s771_s1 + $0x30] sm:$0xff]   ;;  %v553_v6 = vld [vmem:[%s771_s1 + $0x28] sm:$0xff]  }
   0x3   :  { %485 = vmatpush3.bf16.msra.mxu0 %v549_v2  ;;  %v554_v7 = vld [vmem:[%s771_s1 + $0x60] sm:$0xff]   ;;  %v556_v9 = vld [vmem:[%s771_s1 + $0x58] sm:$0xff]   ;;  %v562_v10 = vld [vmem:[%s771_s1 + $0x88] sm:$0xff]  }
   0x4   :  { %486 = vmatprep.subr.bf16.mxu0 %v550_v3  ;;  %v555_v8 = vld [vmem:[%s771_s1 + $0x20] sm:$0xff]   ;;  %v557_v11 = vld [vmem:[%s771_s1 + $0x18] sm:$0xff]   ;;  %v558_v12 = vld [vmem:[%s771_s1 + $0x50] sm:$0xff]   ;;  %519 = vmatpush3.bf16.msra.mxu1 %v562_v10 }
   0x5   :  { %520 = vmatprep.subr.bf16.mxu1 %v574_v1  ;;  %v565_v13 = vld [vmem:[%s771_s1 + $0x80] sm:$0xff]   ;;  %v559_v14 = vld [vmem:[%s771_s1 + $0x10] sm:$0xff]   ;;  %v37_v15 = vld [vmem:[%s772_s0 + $0x8] sm:$0xff] }
   0x6   :  { %v40_v16 = vld [vmem:[%s772_s0 + $0x20] sm:$0xff]  ;;  %v560_v17 = vld [vmem:[%s771_s1 + $0x48] sm:$0xff]   ;;  %v38_v19 = vld [vmem:[%s772_s0 + $0x10] sm:$0xff] }
   0x7   :  { %487 = vmatpush3.bf16.msra.mxu0 %v551_v4  ;;  %v43_v18 = vpack.c.bf16 %v40_v16, %v37_v15  ;;  %v41_v20 = vld [vmem:[%s772_s0 + $0x28] sm:$0xff]  ;;  %v566_v22 = vld [vmem:[%s773_s5 + $0x38] sm:$0xff]   ;;  %v563_v24 = vld [vmem:[%s771_s1 + $0x40] sm:$0xff]  }
   0x8   :  { %488 = vmatprep.subr.bf16.mxu0 %v552_v5  ;;  %521 = vmatpush3.bf16.msra.mxu1 %v565_v13  ;;  %v44_v21 = vpack.c.bf16 %v41_v20, %v38_v19  ;;  %v561_v23 = vld [vmem:[%s771_s1 + $0x8] sm:$0xff]   ;;  %v567_v25 = vld [vmem:[%s773_s5 + $0x30] sm:$0xff]   ;;  %v564_v26 = vld [vmem:[%s771_s1] sm:$0xff]  }
   0x9   :  { %233 = vmatprep.mubr.bf16.mxu0 %v43_v18  ;;  %526 = vmatprep.subr.bf16.mxu1 %v574_v1  ;;  %v36_v27 = vld [vmem:[%s772_s0] sm:$0xff]  ;;  %v39_v28 = vld [vmem:[%s772_s0 + $0x18] sm:$0xff]  ;;  %v568_v29 = vld [vmem:[%s773_s5 + $0x28] sm:$0xff]  }
   0xa   :  { %v42_v30 = vpack.c.bf16 %v39_v28, %v36_v27  ;;  %v569_v31 = vld [vmem:[%s773_s5 + $0x20] sm:$0xff]   ;;  %v570_v32 = vld [vmem:[%s773_s5 + $0x18] sm:$0xff]   ;;  %v571_v33 = vld [vmem:[%s773_s5 + $0x10] sm:$0xff]  }
   0xb   :  { %489 = vmatpush3.bf16.msra.mxu0 %v553_v6  ;;  %523 = vmatmul.mubr.msk.bf16.vlgmr.msra.gmra.mxu1 %vm197_vm1, %v44_v21  ;;  %v572_v34 = vld [vmem:[%s773_s5 + $0x8] sm:$0xff]   ;;  %v573_v35 = vld [vmem:[%s773_s5] sm:$0xff]  }
   0xc   :  { %490 = vmatprep.subr.bf16.mxu0 %v554_v7  ;;  %527 = vmatpush3.bf16.msra.mxu1 %v566_v22  ;;  %v451_v41 = vld [vmem:[%s774_s2] ss:$0 sm:$0xff]  ;;  %v420_v5 = vld [vmem:[%s778_s9 + $0x8] sm:$0xff] }
   0xd   :  { %528 = vmatprep.subr.bf16.mxu1 %v574_v1  ;;  %542 = vmatprep.mubr.msk.bf16.mxu1 %vm575_vm0, %v574_v1  ;;  %v471_v46 = vld [vmem:[%s775_s3] ss:$0 sm:$0xff] }
   0xe   :  { %v472_v50 = vld [vmem:[%s776_s4] ss:$0 sm:$0xff] }
   0xf   :  { %491 = vmatpush3.bf16.msra.mxu0 %v555_v8  ;;  %v473_v62 = vld [vmem:[%s777_s6] ss:$0 sm:$0xff] }
  0x10   :  { %492 = vmatprep.subr.bf16.mxu0 %v556_v9  ;;  %529 = vmatpush3.bf16.msra.mxu1 %v567_v25  ;;  %v419_v0 = vld [vmem:[%s778_s9] sm:$0xff] }
  0x11   :  { %530 = vmatprep.subr.bf16.mxu1 %v574_v1  ;;  %v482_v8 = vld [vmem:[%s779_s7] ss:$0 sm:$0xff] }
  0x13   :  { %493 = vmatpush3.bf16.msra.mxu0 %v557_v11 }
  0x14   :  { %494 = vmatprep.subr.bf16.mxu0 %v558_v12  ;;  %531 = vmatpush3.bf16.msra.mxu1 %v568_v29  ;;  %v483_v12 = vld [vmem:[%s780_s8] ss:$0 sm:$0xff] }
  0x15   :  { %532 = vmatprep.subr.bf16.mxu1 %v574_v1 }
  0x17   :  { %495 = vmatpush3.bf16.msra.mxu0 %v559_v14 }
  0x18   :  { %496 = vmatprep.subr.bf16.mxu0 %v560_v17  ;;  %533 = vmatpush3.bf16.msra.mxu1 %v569_v31 }
  0x19   :  { %534 = vmatprep.subr.bf16.mxu1 %v574_v1 }
  0x1b   :  { %497 = vmatpush3.bf16.msra.mxu0 %v561_v23 }
  0x1c   :  { %498 = vmatprep.subr.bf16.mxu0 %v563_v24  ;;  %535 = vmatpush3.bf16.msra.mxu1 %v570_v32 }
  0x1d   :  { %536 = vmatprep.subr.bf16.mxu1 %v574_v1 }
  0x1f   :  { %499 = vmatpush3.bf16.msra.mxu0 %v564_v26 }
  0x20   :  { %537 = vmatpush3.bf16.msra.mxu1 %v571_v33 }
  0x21   :  { %538 = vmatprep.subr.bf16.mxu1 %v574_v1 }
  0x22   :  { %234 = vmatmul.mubr.bf16.vlgmr.msra.gmra.mxu0 %v42_v30 }
  0x24   :  { %539 = vmatpush3.bf16.msra.mxu1 %v572_v34 }
  0x25   :  { %540 = vmatprep.subr.bf16.mxu1 %v574_v1 }
  0x28   :  { %541 = vmatpush3.bf16.msra.mxu1 %v573_v35 }
  0xcb   :  { %v276_v36 = vpop.f32.mrf.mxu1 }
  0xcd   :  { %v524_v37 = vpop.f32.mrf.mxu1 }
  0xcf   :  { %v279_v38 = vpop.f32.mrf.mxu1 }
  0xd1   :  { %v525_v39 = vpop.f32.mrf.mxu1 }
  0xe2   :  { %v500_v40 = vpop.f32.mrf.mxu0 }
  0xe4   :  { %v501_v42 = vpop.f32.mrf.mxu0 }
  0xe5   :  { %v502_v43 = vadd.f32 %v501_v42, %v500_v40 }
  0xe6   :  { %v503_v44 = vpop.f32.mrf.mxu0 }
  0xe7   :  { %v236_v45 = vadd.f32 %v502_v43, %v451_v41 }
  0xe8   :  { %v504_v47 = vpop.f32.mrf.mxu0 }
  0xe9   :  { %v277_v48 = vadd.f32 %v276_v36, %v236_v45  ;;  %v505_v49 = vadd.f32 %v504_v47, %v503_v44 }
  0xeb   :  { %v289_v51 = vmul.f32 %v471_v46, %v277_v48  ;;  %v239_v52 = vadd.f32 %v505_v49, %v451_v41 }
  0xed   :  { %v298_v53 = vadd.f32 %v472_v50, %v289_v51  ;;  %v280_v54 = vadd.f32 %v279_v38, %v239_v52 }
  0xef   :  { %v290_v55 = vmul.f32 %v471_v46, %v280_v54  ;;  %v302_v57 = vmul.f32 0.22916667, %v298_v53  ;;  %vm300_vm2 = vcmp.ge.f32.partialorder %v298_v53, 0.0 }
  0xf1   :  { %v299_v56 = vadd.f32 %v472_v50, %v290_v55  ;;  %v304_v59 = vsel %vm300_vm2, %v298_v53, %v302_v57 }
  0xf3   :  { %vm301_vm3 = vcmp.ge.f32.partialorder %v299_v56, 0.0  ;;  %v303_v58 = vmul.f32 0.22916667, %v299_v56 }
  0xf5   :  { %v305_v60 = vsel %vm301_vm3, %v299_v56, %v303_v58 }
  0xf6   :  { %v306_v61 = vpack.c.bf16 %v305_v60, %v304_v59 }
  0xf8   :  { %543 = vmatmul.mubr.bf16.vlgmr.msra.gmra.mxu1 %v306_v61 }
 0x1b8   :  { %v412_v63 = vpop.f32.mrf.mxu1 }
 0x1b9   :  { %v413_v1 = vadd.f32 %v473_v62, %v412_v63 }
 0x1ba   :  { %v544_v2 = vpop.f32.mrf.mxu1 }
 0x1bb   :  { %v421_v3 = vadd.f32 %v419_v0, %v413_v1 }
 0x1bc   :  { %v415_v4 = vpop.f32.mrf.mxu1 }
 0x1bd   :  { %v424_v6 = vmax.f32 %v421_v3, 0.0  ;;  %v416_v7 = vadd.f32 %v473_v62, %v415_v4 }
 0x1be   :  { %v545_v9 = vpop.f32.mrf.mxu1 }
 0x1bf   :  { %v426_v10 = vmin.f32 %v424_v6, 6.0  ;;  %v422_v11 = vadd.f32 %v420_v5, %v416_v7 }
 0x1c1   :  { %v434_v13 = vmul.f32 %v482_v8, %v426_v10  ;;  %v425_v14 = vmax.f32 %v422_v11, 0.0 }
 0x1c3   :  { %v443_v15 = vadd.f32 %v483_v12, %v434_v13  ;;  %v427_v16 = vmin.f32 %v425_v14, 6.0 }
 0x1c5   :  { %445 = vst [vmem:[%s781_s10] sm:$0xff] %v443_v15  ;;  %v435_v17 = vmul.f32 %v482_v8, %v427_v16 }
 0x1c7   :  { %v444_v18 = vadd.f32 %v483_v12, %v435_v17 }
 0x1c9   :  { %446 = vst [vmem:[%s781_s10 + $0x8] sm:$0xff] %v444_v18 }

// kernel: vqvae_forward.56
= control target key start
LH: loop header
LB: loop body
LE: loop exit
PB: predicated region body
PF: predicated region fallthrough
CT: control target
= control target key end

     0   :  { %vm209_vm0 = vcmask 261120   ;;  %s739_s1 = inlined_call_operand.vmem [shape: bf16[288,128], index: 1, kind: input, shape index: {}]   ;;  %s740_s0 = inlined_call_operand.vmem [shape: f32[64,288], index: 0, kind: input, shape index: {}]   ;;  %s741_s2 = inlined_call_operand.vmem [shape: f32[1,128], index: 2, kind: input, shape index: {}]   ;;  %s742_s3 = inlined_call_operand.vmem [shape: f32[1,128], index: 3, kind: input, shape index: {}]   ;;  %s743_s4 = inlined_call_operand.vmem [shape: f32[1,128], index: 4, kind: input, shape index: {}]   ;;  %s744_s5 = inlined_call_operand.vmem [shape: f32[64,128], index: 5, kind: output, shape index: {}]  }
   0x1   :  { %v508_v0 = vld [vmem:[%s739_s1 + $0x78] sm:$0xff]   ;;  %v510_v2 = vld [vmem:[%s739_s1 + $0x70] sm:$0xff]   ;;  %v512_v4 = vld [vmem:[%s739_s1 + $0x68] sm:$0xff]  }
   0x2   :  { %v509_v1 = vld [vmem:[%s739_s1 + $0x38] sm:$0xff]   ;;  %434 = vmatprep.subr.bf16.mxu0 %v508_v0  ;;  %492 = vmatprep.subr.bf16.mxu1 %v508_v0  ;;  %v511_v3 = vld [vmem:[%s739_s1 + $0x30] sm:$0xff]   ;;  %v513_v5 = vld [vmem:[%s739_s1 + $0x28] sm:$0xff]  }
   0x3   :  { %435 = vmatpush3.bf16.msra.mxu0 %v509_v1  ;;  %500 = vmatpush3.bf16.msra.mxu1 %v509_v1  ;;  %v514_v6 = vld [vmem:[%s739_s1 + $0x60] sm:$0xff]   ;;  %v516_v8 = vld [vmem:[%s739_s1 + $0x58] sm:$0xff]   ;;  %v518_v10 = vld [vmem:[%s739_s1 + $0x50] sm:$0xff]  }
   0x4   :  { %436 = vmatprep.subr.bf16.mxu0 %v510_v2  ;;  %493 = vmatprep.subr.bf16.mxu1 %v510_v2  ;;  %v515_v7 = vld [vmem:[%s739_s1 + $0x20] sm:$0xff]   ;;  %v517_v9 = vld [vmem:[%s739_s1 + $0x18] sm:$0xff]   ;;  %v22_v11 = vld [vmem:[%s740_s0 + $0x8] sm:$0xff] }
   0x5   :  { %v25_v12 = vld [vmem:[%s740_s0 + $0x20] sm:$0xff]  ;;  %v40_v13 = vld [vmem:[%s740_s0 + $0x98] sm:$0xff]  ;;  %v43_v15 = vld [vmem:[%s740_s0 + $0xb0] sm:$0xff] }
   0x6   :  { %v46_v14 = vpack.c.bf16 %v25_v12, %v22_v11  ;;  %v55_v16 = vpack.c.bf16 %v43_v15, %v40_v13  ;;  %v519_v17 = vld [vmem:[%s739_s1 + $0x10] sm:$0xff]   ;;  %v520_v18 = vld [vmem:[%s739_s1 + $0x48] sm:$0xff]   ;;  %v522_v20 = vld [vmem:[%s739_s1 + $0x40] sm:$0xff]  }
   0x7   :  { %437 = vmatpush3.bf16.msra.mxu0 %v511_v3  ;;  %501 = vmatpush3.bf16.msra.mxu1 %v511_v3  ;;  %v521_v19 = vld [vmem:[%s739_s1 + $0x8] sm:$0xff]   ;;  %v523_v21 = vld [vmem:[%s739_s1] sm:$0xff]   ;;  %v24_v23 = vld [vmem:[%s740_s0 + $0x18] sm:$0xff] }
   0x8   :  { %438 = vmatprep.subr.bf16.mxu0 %v512_v4  ;;  %494 = vmatprep.subr.bf16.mxu1 %v512_v4  ;;  %v21_v22 = vld [vmem:[%s740_s0] sm:$0xff]  ;;  %v39_v24 = vld [vmem:[%s740_s0 + $0x90] sm:$0xff]  ;;  %v42_v25 = vld [vmem:[%s740_s0 + $0xa8] sm:$0xff] }
   0x9   :  { %254 = vmatprep.mubr.bf16.mxu0 %v46_v14  ;;  %278 = vmatprep.mubr.bf16.mxu1 %v55_v16  ;;  %v524_v26 = vld [vmem:[%s739_s1 + $0x88] sm:$0xff]   ;;  %v28_v27 = vld [vmem:[%s740_s0 + $0x38] sm:$0xff]  ;;  %v31_v28 = vld [vmem:[%s740_s0 + $0x50] sm:$0xff]  ;;  %v45_v31 = vpack.c.bf16 %v24_v23, %v21_v22  ;;  %v54_v32 = vpack.c.bf16 %v42_v25, %v39_v24 }
   0xa   :  { %v23_v29 = vld [vmem:[%s740_s0 + $0x10] sm:$0xff]  ;;  %v26_v30 = vld [vmem:[%s740_s0 + $0x28] sm:$0xff]  ;;  %v49_v33 = vpack.c.bf16 %v31_v28, %v28_v27  ;;  %v525_v34 = vld [vmem:[%s739_s1 + $0x80] sm:$0xff]  }
   0xb   :  { %439 = vmatpush3.bf16.msra.mxu0 %v513_v5  ;;  %502 = vmatpush3.bf16.msra.mxu1 %v513_v5  ;;  %v47_v35 = vpack.c.bf16 %v26_v30, %v23_v29  ;;  %v27_v36 = vld [vmem:[%s740_s0 + $0x30] sm:$0xff]  ;;  %v30_v37 = vld [vmem:[%s740_s0 + $0x48] sm:$0xff]  ;;  %v29_v38 = vld [vmem:[%s740_s0 + $0x40] sm:$0xff] }
   0xc   :  { %440 = vmatprep.subr.bf16.mxu0 %v514_v6  ;;  %495 = vmatprep.subr.bf16.mxu1 %v514_v6  ;;  %v32_v39 = vld [vmem:[%s740_s0 + $0x58] sm:$0xff]  ;;  %v34_v40 = vld [vmem:[%s740_s0 + $0x68] sm:$0xff]  ;;  %v37_v41 = vld [vmem:[%s740_s0 + $0x80] sm:$0xff]  ;;  %v48_v44 = vpack.c.bf16 %v30_v37, %v27_v36 }
   0xd   :  { %v35_v42 = vld [vmem:[%s740_s0 + $0x70] sm:$0xff]  ;;  %v38_v43 = vld [vmem:[%s740_s0 + $0x88] sm:$0xff]  ;;  %v50_v45 = vpack.c.bf16 %v32_v39, %v29_v38  ;;  %v52_v46 = vpack.c.bf16 %v37_v41, %v34_v40  ;;  %v33_v48 = vld [vmem:[%s740_s0 + $0x60] sm:$0xff] }
   0xe   :  { %v53_v47 = vpack.c.bf16 %v38_v43, %v35_v42  ;;  %v36_v49 = vld [vmem:[%s740_s0 + $0x78] sm:$0xff]  ;;  %v41_v50 = vld [vmem:[%s740_s0 + $0xa0] sm:$0xff] }
   0xf   :  { %441 = vmatpush3.bf16.msra.mxu0 %v515_v7  ;;  %503 = vmatpush3.bf16.msra.mxu1 %v515_v7  ;;  %v44_v51 = vld [vmem:[%s740_s0 + $0xb8] sm:$0xff]  ;;  %v51_v52 = vpack.c.bf16 %v36_v49, %v33_v48  ;;  %v689_v63 = vld [vmem:[%s741_s2] ss:$0 sm:$0xff] }
  0x10   :  { %442 = vmatprep.subr.bf16.mxu0 %v516_v8  ;;  %496 = vmatprep.subr.bf16.mxu1 %v516_v8  ;;  %v56_v53 = vpack.c.bf16 %v44_v51, %v41_v50  ;;  %v697_v15 = vld [vmem:[%s742_s3] ss:$0 sm:$0xff] }
  0x11   :  { %v433_v22 = vld [vmem:[%s743_s4] ss:$0 sm:$0xff] }
  0x13   :  { %443 = vmatpush3.bf16.msra.mxu0 %v517_v9  ;;  %504 = vmatpush3.bf16.msra.mxu1 %v517_v9 }
  0x14   :  { %444 = vmatprep.subr.bf16.mxu0 %v518_v10  ;;  %497 = vmatprep.subr.bf16.mxu1 %v518_v10 }
  0x17   :  { %445 = vmatpush3.bf16.msra.mxu0 %v519_v17  ;;  %505 = vmatpush3.bf16.msra.mxu1 %v519_v17 }
  0x18   :  { %446 = vmatprep.subr.bf16.mxu0 %v520_v18  ;;  %498 = vmatprep.subr.bf16.mxu1 %v520_v18 }
  0x1b   :  { %447 = vmatpush3.bf16.msra.mxu0 %v521_v19  ;;  %506 = vmatpush3.bf16.msra.mxu1 %v521_v19 }
  0x1c   :  { %448 = vmatprep.subr.bf16.mxu0 %v522_v20  ;;  %499 = vmatprep.subr.bf16.mxu1 %v522_v20 }
  0x1f   :  { %449 = vmatpush3.bf16.msra.mxu0 %v523_v21  ;;  %507 = vmatpush3.bf16.msra.mxu1 %v523_v21 }
  0x20   :  { %480 = vmatprep.subr.bf16.mxu1 %v524_v26 }
  0x22   :  { %255 = vmatmul.mubr.bf16.vlgmr.msra.gmra.mxu0 %v45_v31  ;;  %279 = vmatmul.mubr.bf16.vlgmr.msra.gmra.mxu1 %v54_v32 }
  0x23   :  { %481 = vmatpush3.bf16.msra.mxu1 %v524_v26  ;;  %262 = vmatprep.mubr.bf16.mxu0 %v49_v33 }
  0x24   :  { %482 = vmatprep.subr.bf16.mxu1 %v525_v34  ;;  %484 = vmatprep.mubr.msk.bf16.mxu1 %vm209_vm0, %v47_v35 }
  0x27   :  { %483 = vmatpush3.bf16.msra.mxu1 %v525_v34 }
  0x2a   :  { %263 = vmatmul.mubr.bf16.gmra.mxu0 %v48_v44  ;;  %485 = vmatmul.mubr.msk.bf16.vlgmr.msra.gmra.mxu1 %vm209_vm0, %v50_v45 }
  0x2b   :  { %270 = vmatprep.mubr.bf16.mxu0 %v52_v46  ;;  %488 = vmatprep.mubr.msk.bf16.mxu1 %vm209_vm0, %v53_v47 }
  0x32   :  { %271 = vmatmul.mubr.bf16.gmra.mxu0 %v51_v52  ;;  %489 = vmatmul.mubr.msk.bf16.gmra.mxu1 %vm209_vm0, %v56_v53 }
  0xe2   :  { %v450_v54 = vpop.f32.mrf.mxu0  ;;  %v468_v55 = vpop.f32.mrf.mxu1 }
  0xe4   :  { %v451_v56 = vpop.f32.mrf.mxu0  ;;  %v469_v57 = vpop.f32.mrf.mxu1 }
  0xe5   :  { %v452_v60 = vadd.f32 %v451_v56, %v450_v54  ;;  %v470_v8 = vadd.f32 %v469_v57, %v468_v55 }
  0xe6   :  { %v453_v58 = vpop.f32.mrf.mxu0  ;;  %v471_v59 = vpop.f32.mrf.mxu1 }
  0xe7   :  { %v257_v3 = vadd.f32 %v452_v60, %v689_v63  ;;  %v281_v24 = vadd.f32 %v470_v8, %v689_v63 }
  0xe8   :  { %v454_v61 = vpop.f32.mrf.mxu0  ;;  %v472_v62 = vpop.f32.mrf.mxu1 }
  0xe9   :  { %v455_v2 = vadd.f32 %v454_v61, %v453_v58  ;;  %v473_v14 = vadd.f32 %v472_v62, %v471_v59 }
  0xea   :  { %v456_v0 = vpop.f32.mrf.mxu0  ;;  %v486_v1 = vpop.f32.mrf.mxu1 }
  0xeb   :  { %v260_v13 = vadd.f32 %v455_v2, %v689_v63  ;;  %v284_v33 = vadd.f32 %v473_v14, %v689_v63 }
  0xec   :  { %v457_v4 = vpop.f32.mrf.mxu0  ;;  %v321_v5 = vpop.f32.mrf.mxu1 }
  0xed   :  { %v458_v6 = vadd.f32 %v457_v4, %v456_v0  ;;  %v322_v7 = vadd.f32 %v321_v5, %v257_v3 }
  0xee   :  { %v459_v9 = vpop.f32.mrf.mxu0  ;;  %v487_v10 = vpop.f32.mrf.mxu1 }
  0xef   :  { %v265_v11 = vadd.f32 %v458_v6, %v689_v63  ;;  %v352_v12 = vmax.f32 %v322_v7, 0.0 }
  0xf0   :  { %v460_v16 = vpop.f32.mrf.mxu0  ;;  %v324_v17 = vpop.f32.mrf.mxu1 }
  0xf1   :  { %v330_v18 = vadd.f32 %v486_v1, %v265_v11  ;;  %v360_v19 = vmin.f32 %v352_v12, 6.0  ;;  %v461_v20 = vadd.f32 %v460_v16, %v459_v9  ;;  %v325_v21 = vadd.f32 %v324_v17, %v260_v13 }
  0xf2   :  { %v462_v23 = vpop.f32.mrf.mxu0  ;;  %v490_v25 = vpop.f32.mrf.mxu1 }
  0xf3   :  { %v354_v26 = vmax.f32 %v330_v18, 0.0  ;;  %v374_v27 = vmul.f32 %v697_v15, %v360_v19  ;;  %v268_v28 = vadd.f32 %v461_v20, %v689_v63  ;;  %v353_v29 = vmax.f32 %v325_v21, 0.0 }
  0xf4   :  { %v346_v30 = vadd.f32 %v490_v25, %v281_v24  ;;  %v463_v31 = vpop.f32.mrf.mxu0  ;;  %v337_v32 = vpop.f32.mrf.mxu1 }
  0xf5   :  { %v362_v34 = vmin.f32 %v354_v26, 6.0  ;;  %v389_v35 = vadd.f32 %v433_v22, %v374_v27  ;;  %v333_v36 = vadd.f32 %v487_v10, %v268_v28  ;;  %v361_v37 = vmin.f32 %v353_v29, 6.0 }
  0xf6   :  { %v358_v38 = vmax.f32 %v346_v30, 0.0  ;;  %v464_v39 = vadd.f32 %v463_v31, %v462_v23  ;;  %v465_v40 = vpop.f32.mrf.mxu0  ;;  %v491_v41 = vpop.f32.mrf.mxu1 }
  0xf7   :  { %v376_v42 = vmul.f32 %v697_v15, %v362_v34  ;;  %397 = vst [vmem:[%s744_s5] sm:$0xff] %v389_v35  ;;  %v355_v43 = vmax.f32 %v333_v36, 0.0  ;;  %v375_v44 = vmul.f32 %v697_v15, %v361_v37  ;;  %v349_v45 = vadd.f32 %v491_v41, %v284_v33 }
  0xf8   :  { %v366_v46 = vmin.f32 %v358_v38, 6.0  ;;  %v273_v47 = vadd.f32 %v464_v39, %v689_v63  ;;  %v466_v48 = vpop.f32.mrf.mxu0  ;;  %v340_v0 = vpop.f32.mrf.mxu1 }
  0xf9   :  { %v391_v49 = vadd.f32 %v433_v22, %v376_v42  ;;  %v363_v50 = vmin.f32 %v355_v43, 6.0  ;;  %v390_v51 = vadd.f32 %v433_v22, %v375_v44  ;;  %v359_v52 = vmax.f32 %v349_v45, 0.0 }
  0xfa   :  { %v380_v53 = vmul.f32 %v697_v15, %v366_v46  ;;  %v338_v54 = vadd.f32 %v337_v32, %v273_v47  ;;  %v467_v55 = vadd.f32 %v466_v48, %v465_v40 }
  0xfb   :  { %399 = vst [vmem:[%s744_s5 + $0x10] sm:$0xff] %v391_v49  ;;  %v377_v56 = vmul.f32 %v697_v15, %v363_v50  ;;  %398 = vst [vmem:[%s744_s5 + $0x8] sm:$0xff] %v390_v51  ;;  %v367_v57 = vmin.f32 %v359_v52, 6.0 }
  0xfc   :  { %v395_v58 = vadd.f32 %v433_v22, %v380_v53  ;;  %v356_v59 = vmax.f32 %v338_v54, 0.0  ;;  %v276_v60 = vadd.f32 %v467_v55, %v689_v63 }
  0xfd   :  { %v392_v61 = vadd.f32 %v433_v22, %v377_v56  ;;  %v381_v62 = vmul.f32 %v697_v15, %v367_v57 }
  0xfe   :  { %403 = vst [vmem:[%s744_s5 + $0x30] sm:$0xff] %v395_v58  ;;  %v364_v1 = vmin.f32 %v356_v59, 6.0  ;;  %v341_v2 = vadd.f32 %v340_v0, %v276_v60 }
  0xff   :  { %400 = vst [vmem:[%s744_s5 + $0x18] sm:$0xff] %v392_v61  ;;  %v396_v3 = vadd.f32 %v433_v22, %v381_v62 }
 0x100   :  { %v378_v4 = vmul.f32 %v697_v15, %v364_v1  ;;  %v357_v5 = vmax.f32 %v341_v2, 0.0 }
 0x101   :  { %404 = vst [vmem:[%s744_s5 + $0x38] sm:$0xff] %v396_v3 }
 0x102   :  { %v393_v63 = vadd.f32 %v433_v22, %v378_v4  ;;  %v365_v6 = vmin.f32 %v357_v5, 6.0 }
 0x104   :  { %401 = vst [vmem:[%s744_s5 + $0x20] sm:$0xff] %v393_v63  ;;  %v379_v7 = vmul.f32 %v697_v15, %v365_v6 }
 0x106   :  { %v394_v8 = vadd.f32 %v433_v22, %v379_v7 }
 0x108   :  { %402 = vst [vmem:[%s744_s5 + $0x28] sm:$0xff] %v394_v8 }

// kernel: vqvae_forward.57
= control target key start
LH: loop header
LB: loop body
LE: loop exit
PB: predicated region body
PF: predicated region fallthrough
CT: control target
= control target key end

     0   :  { %s1752_s1 = inlined_call_operand.vmem [shape: bf16[512,128], index: 1, kind: input, shape index: {}]   ;;  %s1753_s0 = inlined_call_operand.vmem [shape: f32[208,512], index: 0, kind: input, shape index: {}]   ;;  %s1754_s2 = inlined_call_operand.vmem [shape: f32[1,128], index: 2, kind: input, shape index: {}]   ;;  %s1755_s3 = inlined_call_operand.vmem [shape: f32[1,128], index: 3, kind: input, shape index: {}]   ;;  %s1756_s4 = inlined_call_operand.vmem [shape: f32[1,128], index: 4, kind: input, shape index: {}]   ;;  %s1757_s5 = inlined_call_operand.vmem [shape: f32[208,128], index: 5, kind: output, shape index: {}]  }
   0x1   :  { %v1059_v0 = vld [vmem:[%s1752_s1 + $0x78] sm:$0xff]   ;;  %v1063_v4 = vld [vmem:[%s1752_s1 + $0x70] sm:$0xff]   ;;  %v1067_v8 = vld [vmem:[%s1752_s1 + $0x68] sm:$0xff]  }
   0x2   :  { %v1060_v1 = vld [vmem:[%s1752_s1 + $0xf8] sm:$0xff]   ;;  %871 = vmatprep.subr.bf16.mxu0 %v1059_v0  ;;  %v1064_v5 = vld [vmem:[%s1752_s1 + $0xf0] sm:$0xff]   ;;  %v1068_v9 = vld [vmem:[%s1752_s1 + $0xe8] sm:$0xff]  }
   0x3   :  { %v1061_v2 = vld [vmem:[%s1752_s1 + $0x38] sm:$0xff]   ;;  %965 = vmatprep.subr.bf16.mxu1 %v1060_v1  ;;  %v1065_v6 = vld [vmem:[%s1752_s1 + $0x30] sm:$0xff]   ;;  %v1069_v10 = vld [vmem:[%s1752_s1 + $0x28] sm:$0xff]  }
   0x4   :  { %v1062_v3 = vld [vmem:[%s1752_s1 + $0xb8] sm:$0xff]   ;;  %872 = vmatpush3.bf16.msra.mxu0 %v1061_v2  ;;  %v1066_v7 = vld [vmem:[%s1752_s1 + $0xb0] sm:$0xff]   ;;  %v1070_v11 = vld [vmem:[%s1752_s1 + $0xa8] sm:$0xff]  }
   0x5   :  { %966 = vmatpush3.bf16.msra.mxu1 %v1062_v3  ;;  %873 = vmatprep.subr.bf16.mxu0 %v1063_v4  ;;  %v1071_v12 = vld [vmem:[%s1752_s1 + $0x60] sm:$0xff]   ;;  %v1075_v16 = vld [vmem:[%s1752_s1 + $0x58] sm:$0xff]   ;;  %v1079_v20 = vld [vmem:[%s1752_s1 + $0x50] sm:$0xff]  }
   0x6   :  { %967 = vmatprep.subr.bf16.mxu1 %v1064_v5  ;;  %v1072_v13 = vld [vmem:[%s1752_s1 + $0xe0] sm:$0xff]   ;;  %v1076_v17 = vld [vmem:[%s1752_s1 + $0xd8] sm:$0xff]   ;;  %v1080_v21 = vld [vmem:[%s1752_s1 + $0xd0] sm:$0xff]  }
   0x7   :  { %v1073_v14 = vld [vmem:[%s1752_s1 + $0x20] sm:$0xff]   ;;  %v1077_v18 = vld [vmem:[%s1752_s1 + $0x18] sm:$0xff]   ;;  %v1081_v22 = vld [vmem:[%s1752_s1 + $0x10] sm:$0xff]  }
   0x8   :  { %874 = vmatpush3.bf16.msra.mxu0 %v1065_v6  ;;  %v1074_v15 = vld [vmem:[%s1752_s1 + $0xa0] sm:$0xff]   ;;  %v1078_v19 = vld [vmem:[%s1752_s1 + $0x98] sm:$0xff]   ;;  %v1082_v23 = vld [vmem:[%s1752_s1 + $0x90] sm:$0xff]  }
   0x9   :  { %968 = vmatpush3.bf16.msra.mxu1 %v1066_v7  ;;  %875 = vmatprep.subr.bf16.mxu0 %v1067_v8  ;;  %v1083_v24 = vld [vmem:[%s1752_s1 + $0x48] sm:$0xff]   ;;  %v1087_v28 = vld [vmem:[%s1752_s1 + $0x40] sm:$0xff]   ;;  %v24_v34 = vld [vmem:[%s1753_s0 + $0x18] sm:$0xff] }
   0xa   :  { %969 = vmatprep.subr.bf16.mxu1 %v1068_v9  ;;  %v1084_v25 = vld [vmem:[%s1752_s1 + $0xc8] sm:$0xff]   ;;  %v1088_v29 = vld [vmem:[%s1752_s1 + $0xc0] sm:$0xff]   ;;  %v28_v36 = vld [vmem:[%s1753_s0 + $0x38] sm:$0xff] }
   0xb   :  { %v1085_v26 = vld [vmem:[%s1752_s1 + $0x8] sm:$0xff]   ;;  %v1089_v30 = vld [vmem:[%s1752_s1] sm:$0xff]   ;;  %v128_v39 = vpack.c.bf16 %v28_v36, %v24_v34  ;;  %v23_v41 = vld [vmem:[%s1753_s0 + $0x10] sm:$0xff] }
   0xc   :  { %876 = vmatpush3.bf16.msra.mxu0 %v1069_v10  ;;  %v1086_v27 = vld [vmem:[%s1752_s1 + $0x88] sm:$0xff]   ;;  %v1090_v31 = vld [vmem:[%s1752_s1 + $0x80] sm:$0xff]   ;;  %v27_v42 = vld [vmem:[%s1753_s0 + $0x30] sm:$0xff] }
   0xd   :  { %970 = vmatpush3.bf16.msra.mxu1 %v1070_v11  ;;  %877 = vmatprep.subr.bf16.mxu0 %v1071_v12  ;;  %v22_v32 = vld [vmem:[%s1753_s0 + $0x8] sm:$0xff]  ;;  %v21_v37 = vld [vmem:[%s1753_s0] sm:$0xff]  ;;  %v127_v44 = vpack.c.bf16 %v27_v42, %v23_v41  ;;  %v32_v46 = vld [vmem:[%s1753_s0 + $0x58] sm:$0xff] }
   0xe   :  { %971 = vmatprep.subr.bf16.mxu1 %v1072_v13  ;;  %v26_v33 = vld [vmem:[%s1753_s0 + $0x28] sm:$0xff]  ;;  %v25_v38 = vld [vmem:[%s1753_s0 + $0x20] sm:$0xff]  ;;  %v36_v47 = vld [vmem:[%s1753_s0 + $0x78] sm:$0xff]  ;;  %610 = vmatprep.mubr.bf16.mxu1 %v128_v39 }
   0xf   :  { %v126_v35 = vpack.c.bf16 %v26_v33, %v22_v32  ;;  %v125_v40 = vpack.c.bf16 %v25_v38, %v21_v37  ;;  %v30_v43 = vld [vmem:[%s1753_s0 + $0x48] sm:$0xff]  ;;  %v132_v49 = vpack.c.bf16 %v36_v47, %v32_v46  ;;  %v29_v50 = vld [vmem:[%s1753_s0 + $0x40] sm:$0xff]  ;;  %v31_v52 = vld [vmem:[%s1753_s0 + $0x50] sm:$0xff] }
  0x10   :  { %878 = vmatpush3.bf16.msra.mxu0 %v1073_v14  ;;  %v34_v45 = vld [vmem:[%s1753_s0 + $0x68] sm:$0xff]  ;;  %v33_v51 = vld [vmem:[%s1753_s0 + $0x60] sm:$0xff]  ;;  %v35_v53 = vld [vmem:[%s1753_s0 + $0x70] sm:$0xff] }
  0x11   :  { %972 = vmatpush3.bf16.msra.mxu1 %v1074_v15  ;;  %879 = vmatprep.subr.bf16.mxu0 %v1075_v16  ;;  %v130_v48 = vpack.c.bf16 %v34_v45, %v30_v43  ;;  %v38_v54 = vld [vmem:[%s1753_s0 + $0x88] sm:$0xff]  ;;  %v40_v56 = vld [vmem:[%s1753_s0 + $0x98] sm:$0xff]  ;;  %v129_v58 = vpack.c.bf16 %v33_v51, %v29_v50  ;;  %v131_v59 = vpack.c.bf16 %v35_v53, %v31_v52  ;;  %v37_v62 = vld [vmem:[%s1753_s0 + $0x80] sm:$0xff] }
  0x12   :  { %973 = vmatprep.subr.bf16.mxu1 %v1076_v17  ;;  %473 = vmatprep.mubr.bf16.mxu0 %v126_v35  ;;  %v42_v55 = vld [vmem:[%s1753_s0 + $0xa8] sm:$0xff]  ;;  %v44_v57 = vld [vmem:[%s1753_s0 + $0xb8] sm:$0xff]  ;;  %v41_v63 = vld [vmem:[%s1753_s0 + $0xa0] sm:$0xff] }
  0x13   :  { %v134_v60 = vpack.c.bf16 %v42_v55, %v38_v54  ;;  %v136_v61 = vpack.c.bf16 %v44_v57, %v40_v56  ;;  %v39_v0 = vld [vmem:[%s1753_s0 + $0x90] sm:$0xff]  ;;  %v46_v2 = vld [vmem:[%s1753_s0 + $0xc8] sm:$0xff]  ;;  %v48_v4 = vld [vmem:[%s1753_s0 + $0xd8] sm:$0xff]  ;;  %v133_v6 = vpack.c.bf16 %v41_v63, %v37_v62 }
  0x14   :  { %880 = vmatpush3.bf16.msra.mxu0 %v1077_v18  ;;  %v43_v1 = vld [vmem:[%s1753_s0 + $0xb0] sm:$0xff]  ;;  %v50_v3 = vld [vmem:[%s1753_s0 + $0xe8] sm:$0xff]  ;;  %v52_v5 = vld [vmem:[%s1753_s0 + $0xf8] sm:$0xff] }
  0x15   :  { %974 = vmatpush3.bf16.msra.mxu1 %v1078_v19  ;;  %881 = vmatprep.subr.bf16.mxu0 %v1079_v20  ;;  %v135_v7 = vpack.c.bf16 %v43_v1, %v39_v0  ;;  %v138_v8 = vpack.c.bf16 %v50_v3, %v46_v2  ;;  %v140_v9 = vpack.c.bf16 %v52_v5, %v48_v4  ;;  %v45_v10 = vld [vmem:[%s1753_s0 + $0xc0] sm:$0xff]  ;;  %v47_v12 = vld [vmem:[%s1753_s0 + $0xd0] sm:$0xff]  ;;  %v54_v14 = vld [vmem:[%s1753_s0 + $0x108] sm:$0xff] }
  0x16   :  { %975 = vmatprep.subr.bf16.mxu1 %v1080_v21  ;;  %v49_v11 = vld [vmem:[%s1753_s0 + $0xe0] sm:$0xff]  ;;  %v51_v13 = vld [vmem:[%s1753_s0 + $0xf0] sm:$0xff]  ;;  %v58_v15 = vld [vmem:[%s1753_s0 + $0x128] sm:$0xff] }
  0x17   :  { %v56_v16 = vld [vmem:[%s1753_s0 + $0x118] sm:$0xff]  ;;  %v137_v18 = vpack.c.bf16 %v49_v11, %v45_v10  ;;  %v139_v19 = vpack.c.bf16 %v51_v13, %v47_v12  ;;  %v142_v20 = vpack.c.bf16 %v58_v15, %v54_v14  ;;  %v61_v34 = vld [vmem:[%s1753_s0 + $0x140] sm:$0xff]  ;;  %v63_v36 = vld [vmem:[%s1753_s0 + $0x150] sm:$0xff] }
  0x18   :  { %882 = vmatpush3.bf16.msra.mxu0 %v1081_v22  ;;  %v60_v17 = vld [vmem:[%s1753_s0 + $0x138] sm:$0xff]  ;;  %v53_v22 = vld [vmem:[%s1753_s0 + $0x100] sm:$0xff]  ;;  %v67_v37 = vld [vmem:[%s1753_s0 + $0x170] sm:$0xff] }
  0x19   :  { %976 = vmatpush3.bf16.msra.mxu1 %v1082_v23  ;;  %883 = vmatprep.subr.bf16.mxu0 %v1083_v24  ;;  %v144_v21 = vpack.c.bf16 %v60_v17, %v56_v16  ;;  %v57_v23 = vld [vmem:[%s1753_s0 + $0x120] sm:$0xff]  ;;  %v55_v24 = vld [vmem:[%s1753_s0 + $0x110] sm:$0xff]  ;;  %v70_v38 = vld [vmem:[%s1753_s0 + $0x188] sm:$0xff]  ;;  %v147_v43 = vpack.c.bf16 %v67_v37, %v63_v36 }
  0x1a   :  { %977 = vmatprep.subr.bf16.mxu1 %v1084_v25  ;;  %v59_v25 = vld [vmem:[%s1753_s0 + $0x130] sm:$0xff]  ;;  %v65_v35 = vld [vmem:[%s1753_s0 + $0x160] sm:$0xff]  ;;  %v74_v39 = vld [vmem:[%s1753_s0 + $0x1a8] sm:$0xff] }
  0x1b   :  { %v76_v41 = vld [vmem:[%s1753_s0 + $0x1b8] sm:$0xff]  ;;  %v145_v42 = vpack.c.bf16 %v65_v35, %v61_v34  ;;  %v69_v46 = vld [vmem:[%s1753_s0 + $0x180] sm:$0xff]  ;;  %v78_v50 = vld [vmem:[%s1753_s0 + $0x1c8] sm:$0xff] }
  0x1c   :  { %884 = vmatpush3.bf16.msra.mxu0 %v1085_v26  ;;  %v62_v26 = vld [vmem:[%s1753_s0 + $0x148] sm:$0xff]  ;;  %v73_v47 = vld [vmem:[%s1753_s0 + $0x1a0] sm:$0xff]  ;;  %v80_v52 = vld [vmem:[%s1753_s0 + $0x1d8] sm:$0xff] }
  0x1d   :  { %978 = vmatpush3.bf16.msra.mxu1 %v1086_v27  ;;  %885 = vmatprep.subr.bf16.mxu0 %v1087_v28  ;;  %v66_v27 = vld [vmem:[%s1753_s0 + $0x168] sm:$0xff]  ;;  %v64_v28 = vld [vmem:[%s1753_s0 + $0x158] sm:$0xff]  ;;  %v149_v54 = vpack.c.bf16 %v73_v47, %v69_v46 }
  0x1e   :  { %979 = vmatprep.subr.bf16.mxu1 %v1088_v29  ;;  %v68_v29 = vld [vmem:[%s1753_s0 + $0x178] sm:$0xff]  ;;  %v146_v32 = vpack.c.bf16 %v66_v27, %v62_v26  ;;  %v82_v51 = vld [vmem:[%s1753_s0 + $0x1e8] sm:$0xff] }
  0x1f   :  { %v148_v33 = vpack.c.bf16 %v68_v29, %v64_v28  ;;  %v84_v53 = vld [vmem:[%s1753_s0 + $0x1f8] sm:$0xff]  ;;  %v154_v56 = vpack.c.bf16 %v82_v51, %v78_v50  ;;  %v86_v62 = vld [vmem:[%s1753_s0 + $0x208] sm:$0xff] }
  0x20   :  { %886 = vmatpush3.bf16.msra.mxu0 %v1089_v30  ;;  %v141_v30 = vpack.c.bf16 %v57_v23, %v53_v22  ;;  %v156_v57 = vpack.c.bf16 %v84_v53, %v80_v52  ;;  %v90_v63 = vld [vmem:[%s1753_s0 + $0x228] sm:$0xff]  ;;  %v88_v0 = vld [vmem:[%s1753_s0 + $0x218] sm:$0xff] }
  0x21   :  { %980 = vmatpush3.bf16.msra.mxu1 %v1090_v31  ;;  %v143_v31 = vpack.c.bf16 %v59_v25, %v55_v24  ;;  %v92_v1 = vld [vmem:[%s1753_s0 + $0x238] sm:$0xff]  ;;  %v158_v4 = vpack.c.bf16 %v90_v63, %v86_v62  ;;  %v94_v10 = vld [vmem:[%s1753_s0 + $0x248] sm:$0xff]  ;;  %v1584_v62 = vld [vmem:[%s1754_s2] ss:$0 sm:$0xff] }
  0x22   :  { %v160_v5 = vpack.c.bf16 %v92_v1, %v88_v0  ;;  %v98_v11 = vld [vmem:[%s1753_s0 + $0x268] sm:$0xff]  ;;  %v96_v12 = vld [vmem:[%s1753_s0 + $0x258] sm:$0xff] }
  0x23   :  { %474 = vmatmul.mubr.bf16.vlgmr.msra.gmra.mxu0 %v125_v40  ;;  %v72_v40 = vld [vmem:[%s1753_s0 + $0x198] sm:$0xff]  ;;  %v162_v16 = vpack.c.bf16 %v98_v11, %v94_v10  ;;  %v102_v22 = vld [vmem:[%s1753_s0 + $0x288] sm:$0xff] }
  0x24   :  { %611 = vmatmul.mubr.bf16.vlgmr.msra.gmra.mxu1 %v127_v44  ;;  %481 = vmatprep.mubr.bf16.mxu0 %v130_v48  ;;  %v150_v44 = vpack.c.bf16 %v74_v39, %v70_v38  ;;  %v152_v45 = vpack.c.bf16 %v76_v41, %v72_v40  ;;  %v71_v48 = vld [vmem:[%s1753_s0 + $0x190] sm:$0xff]  ;;  %v100_v13 = vld [vmem:[%s1753_s0 + $0x278] sm:$0xff]  ;;  %v106_v23 = vld [vmem:[%s1753_s0 + $0x2a8] sm:$0xff] }
  0x25   :  { %618 = vmatprep.mubr.bf16.mxu1 %v132_v49  ;;  %v75_v49 = vld [vmem:[%s1753_s0 + $0x1b0] sm:$0xff]  ;;  %v164_v17 = vpack.c.bf16 %v100_v13, %v96_v12  ;;  %v104_v24 = vld [vmem:[%s1753_s0 + $0x298] sm:$0xff]  ;;  %v166_v28 = vpack.c.bf16 %v106_v23, %v102_v22  ;;  %v110_v34 = vld [vmem:[%s1753_s0 + $0x2c8] sm:$0xff] }
  0x26   :  { %v151_v55 = vpack.c.bf16 %v75_v49, %v71_v48  ;;  %v108_v25 = vld [vmem:[%s1753_s0 + $0x2b8] sm:$0xff]  ;;  %v114_v35 = vld [vmem:[%s1753_s0 + $0x2e8] sm:$0xff] }
  0x27   :  { %v168_v29 = vpack.c.bf16 %v108_v25, %v104_v24  ;;  %v112_v36 = vld [vmem:[%s1753_s0 + $0x2d8] sm:$0xff]  ;;  %v170_v40 = vpack.c.bf16 %v114_v35, %v110_v34  ;;  %v118_v46 = vld [vmem:[%s1753_s0 + $0x308] sm:$0xff]  ;;  %v1593_v34 = vld [vmem:[%s1755_s3] ss:$0 sm:$0xff] }
  0x28   :  { %v116_v37 = vld [vmem:[%s1753_s0 + $0x2f8] sm:$0xff]  ;;  %v122_v47 = vld [vmem:[%s1753_s0 + $0x328] sm:$0xff] }
  0x29   :  { %v172_v41 = vpack.c.bf16 %v116_v37, %v112_v36  ;;  %v120_v48 = vld [vmem:[%s1753_s0 + $0x318] sm:$0xff]  ;;  %v174_v52 = vpack.c.bf16 %v122_v47, %v118_v46 }
  0x2a   :  { %v124_v49 = vld [vmem:[%s1753_s0 + $0x338] sm:$0xff] }
  0x2b   :  { %482 = vmatmul.mubr.bf16.gmra.mxu0 %v129_v58  ;;  %v77_v58 = vld [vmem:[%s1753_s0 + $0x1c0] sm:$0xff]  ;;  %v176_v53 = vpack.c.bf16 %v124_v49, %v120_v48 }
  0x2c   :  { %619 = vmatmul.mubr.bf16.gmra.mxu1 %v131_v59  ;;  %489 = vmatprep.mubr.bf16.mxu0 %v134_v60  ;;  %v81_v59 = vld [vmem:[%s1753_s0 + $0x1e0] sm:$0xff]  ;;  %v79_v60 = vld [vmem:[%s1753_s0 + $0x1d0] sm:$0xff] }
  0x2d   :  { %626 = vmatprep.mubr.bf16.mxu1 %v136_v61  ;;  %v83_v61 = vld [vmem:[%s1753_s0 + $0x1f0] sm:$0xff]  ;;  %v153_v2 = vpack.c.bf16 %v81_v59, %v77_v58 }
  0x2e   :  { %v155_v3 = vpack.c.bf16 %v83_v61, %v79_v60 }
  0x33   :  { %490 = vmatmul.mubr.bf16.gmra.mxu0 %v133_v6  ;;  %v85_v6 = vld [vmem:[%s1753_s0 + $0x200] sm:$0xff] }
  0x34   :  { %627 = vmatmul.mubr.bf16.gmra.mxu1 %v135_v7  ;;  %497 = vmatprep.mubr.bf16.mxu0 %v138_v8  ;;  %v89_v7 = vld [vmem:[%s1753_s0 + $0x220] sm:$0xff]  ;;  %v87_v8 = vld [vmem:[%s1753_s0 + $0x210] sm:$0xff] }
  0x35   :  { %634 = vmatprep.mubr.bf16.mxu1 %v140_v9  ;;  %v91_v9 = vld [vmem:[%s1753_s0 + $0x230] sm:$0xff]  ;;  %v157_v14 = vpack.c.bf16 %v89_v7, %v85_v6 }
  0x36   :  { %v159_v15 = vpack.c.bf16 %v91_v9, %v87_v8 }
  0x3b   :  { %498 = vmatmul.mubr.bf16.gmra.mxu0 %v137_v18  ;;  %v93_v18 = vld [vmem:[%s1753_s0 + $0x240] sm:$0xff] }
  0x3c   :  { %635 = vmatmul.mubr.bf16.gmra.mxu1 %v139_v19  ;;  %505 = vmatprep.mubr.bf16.mxu0 %v142_v20  ;;  %v97_v19 = vld [vmem:[%s1753_s0 + $0x260] sm:$0xff]  ;;  %v95_v20 = vld [vmem:[%s1753_s0 + $0x250] sm:$0xff] }
  0x3d   :  { %642 = vmatprep.mubr.bf16.mxu1 %v144_v21  ;;  %v99_v21 = vld [vmem:[%s1753_s0 + $0x270] sm:$0xff]  ;;  %v161_v26 = vpack.c.bf16 %v97_v19, %v93_v18 }
  0x3e   :  { %v163_v27 = vpack.c.bf16 %v99_v21, %v95_v20 }
  0x43   :  { %506 = vmatmul.mubr.bf16.gmra.mxu0 %v141_v30  ;;  %v101_v30 = vld [vmem:[%s1753_s0 + $0x280] sm:$0xff] }
  0x44   :  { %643 = vmatmul.mubr.bf16.gmra.mxu1 %v143_v31  ;;  %513 = vmatprep.mubr.bf16.mxu0 %v146_v32  ;;  %v105_v31 = vld [vmem:[%s1753_s0 + $0x2a0] sm:$0xff]  ;;  %v103_v32 = vld [vmem:[%s1753_s0 + $0x290] sm:$0xff] }
  0x45   :  { %650 = vmatprep.mubr.bf16.mxu1 %v148_v33  ;;  %v107_v33 = vld [vmem:[%s1753_s0 + $0x2b0] sm:$0xff]  ;;  %v165_v38 = vpack.c.bf16 %v105_v31, %v101_v30 }
  0x46   :  { %v167_v39 = vpack.c.bf16 %v107_v33, %v103_v32 }
  0x4b   :  { %514 = vmatmul.mubr.bf16.gmra.mxu0 %v145_v42  ;;  %v109_v42 = vld [vmem:[%s1753_s0 + $0x2c0] sm:$0xff] }
  0x4c   :  { %651 = vmatmul.mubr.bf16.gmra.mxu1 %v147_v43  ;;  %521 = vmatprep.mubr.bf16.mxu0 %v150_v44  ;;  %v113_v43 = vld [vmem:[%s1753_s0 + $0x2e0] sm:$0xff]  ;;  %v111_v44 = vld [vmem:[%s1753_s0 + $0x2d0] sm:$0xff] }
  0x4d   :  { %658 = vmatprep.mubr.bf16.mxu1 %v152_v45  ;;  %v115_v45 = vld [vmem:[%s1753_s0 + $0x2f0] sm:$0xff]  ;;  %v169_v50 = vpack.c.bf16 %v113_v43, %v109_v42 }
  0x4e   :  { %v171_v51 = vpack.c.bf16 %v115_v45, %v111_v44 }
  0x53   :  { %522 = vmatmul.mubr.bf16.gmra.mxu0 %v149_v54  ;;  %v117_v54 = vld [vmem:[%s1753_s0 + $0x300] sm:$0xff] }
  0x54   :  { %659 = vmatmul.mubr.bf16.gmra.mxu1 %v151_v55  ;;  %529 = vmatprep.mubr.bf16.mxu0 %v154_v56  ;;  %v121_v55 = vld [vmem:[%s1753_s0 + $0x320] sm:$0xff]  ;;  %v119_v56 = vld [vmem:[%s1753_s0 + $0x310] sm:$0xff] }
  0x55   :  { %666 = vmatprep.mubr.bf16.mxu1 %v156_v57  ;;  %v123_v57 = vld [vmem:[%s1753_s0 + $0x330] sm:$0xff]  ;;  %v173_v58 = vpack.c.bf16 %v121_v55, %v117_v54 }
  0x56   :  { %v175_v59 = vpack.c.bf16 %v123_v57, %v119_v56 }
  0x5b   :  { %530 = vmatmul.mubr.bf16.gmra.mxu0 %v153_v2 }
  0x5c   :  { %667 = vmatmul.mubr.bf16.gmra.mxu1 %v155_v3  ;;  %537 = vmatprep.mubr.bf16.mxu0 %v158_v4 }
  0x5d   :  { %674 = vmatprep.mubr.bf16.mxu1 %v160_v5 }
  0x63   :  { %538 = vmatmul.mubr.bf16.gmra.mxu0 %v157_v14 }
  0x64   :  { %675 = vmatmul.mubr.bf16.gmra.mxu1 %v159_v15  ;;  %545 = vmatprep.mubr.bf16.mxu0 %v162_v16 }
  0x65   :  { %682 = vmatprep.mubr.bf16.mxu1 %v164_v17 }
  0x6b   :  { %546 = vmatmul.mubr.bf16.gmra.mxu0 %v161_v26 }
  0x6c   :  { %683 = vmatmul.mubr.bf16.gmra.mxu1 %v163_v27  ;;  %553 = vmatprep.mubr.bf16.mxu0 %v166_v28 }
  0x6d   :  { %690 = vmatprep.mubr.bf16.mxu1 %v168_v29 }
  0x73   :  { %554 = vmatmul.mubr.bf16.gmra.mxu0 %v165_v38 }
  0x74   :  { %691 = vmatmul.mubr.bf16.gmra.mxu1 %v167_v39  ;;  %561 = vmatprep.mubr.bf16.mxu0 %v170_v40  ;;  %v1599_v40 = vld [vmem:[%s1756_s4] ss:$0 sm:$0xff] }
  0x75   :  { %698 = vmatprep.mubr.bf16.mxu1 %v172_v41 }
  0x7b   :  { %562 = vmatmul.mubr.bf16.gmra.mxu0 %v169_v50 }
  0x7c   :  { %699 = vmatmul.mubr.bf16.gmra.mxu1 %v171_v51  ;;  %569 = vmatprep.mubr.bf16.mxu0 %v174_v52 }
  0x7d   :  { %706 = vmatprep.mubr.bf16.mxu1 %v176_v53 }
  0x83   :  { %570 = vmatmul.mubr.bf16.gmra.mxu0 %v173_v58 }
  0x84   :  { %707 = vmatmul.mubr.bf16.gmra.mxu1 %v175_v59 }
  0xe3   :  { %v887_v60 = vpop.f32.mrf.mxu0 }
  0xe4   :  { %v981_v61 = vpop.f32.mrf.mxu1 }
  0xe5   :  { %v888_v63 = vpop.f32.mrf.mxu0 }
  0xe6   :  { %v889_v0 = vadd.f32 %v888_v63, %v887_v60  ;;  %v982_v1 = vpop.f32.mrf.mxu1 }
  0xe7   :  { %v890_v2 = vpop.f32.mrf.mxu0  ;;  %v983_v4 = vadd.f32 %v982_v1, %v981_v61 }
  0xe8   :  { %v476_v3 = vadd.f32 %v889_v0, %v1584_v62  ;;  %v984_v5 = vpop.f32.mrf.mxu1 }
  0xe9   :  { %v891_v6 = vpop.f32.mrf.mxu0 }
  0xea   :  { %v613_v7 = vadd.f32 %v983_v4, %v476_v3  ;;  %v892_v8 = vadd.f32 %v891_v6, %v890_v2  ;;  %v985_v9 = vpop.f32.mrf.mxu1 }
  0xeb   :  { %v893_v10 = vpop.f32.mrf.mxu0  ;;  %v986_v12 = vadd.f32 %v985_v9, %v984_v5 }
  0xec   :  { %1091 = vtanh.f32 %v613_v7  ;;  %v479_v11 = vadd.f32 %v892_v8, %v1584_v62  ;;  %v987_v13 = vpop.f32.mrf.mxu1 }
  0xed   :  { %v894_v14 = vpop.f32.mrf.mxu0 }
  0xee   :  { %v616_v15 = vadd.f32 %v986_v12, %v479_v11  ;;  %v895_v16 = vadd.f32 %v894_v14, %v893_v10  ;;  %v988_v17 = vpop.f32.mrf.mxu1 }
  0xef   :  { %v896_v18 = vpop.f32.mrf.mxu0  ;;  %v989_v20 = vadd.f32 %v988_v17, %v987_v13 }
  0xf0   :  { %1093 = vtanh.f32 %v616_v15  ;;  %v484_v19 = vadd.f32 %v895_v16, %v1584_v62  ;;  %v990_v21 = vpop.f32.mrf.mxu1 }
  0xf1   :  { %v897_v22 = vpop.f32.mrf.mxu0 }
  0xf2   :  { %v621_v23 = vadd.f32 %v989_v20, %v484_v19  ;;  %v898_v24 = vadd.f32 %v897_v22, %v896_v18  ;;  %v991_v25 = vpop.f32.mrf.mxu1 }
  0xf3   :  { %v899_v26 = vpop.f32.mrf.mxu0  ;;  %v992_v28 = vadd.f32 %v991_v25, %v990_v21 }
  0xf4   :  { %1095 = vtanh.f32 %v621_v23  ;;  %v487_v27 = vadd.f32 %v898_v24, %v1584_v62  ;;  %v993_v29 = vpop.f32.mrf.mxu1 }
  0xf5   :  { %v900_v30 = vpop.f32.mrf.mxu0 }
  0xf6   :  { %v624_v31 = vadd.f32 %v992_v28, %v487_v27  ;;  %v901_v32 = vadd.f32 %v900_v30, %v899_v26  ;;  %v994_v33 = vpop.f32.mrf.mxu1 }
  0xf7   :  { %v902_v35 = vpop.f32.mrf.mxu0  ;;  %v995_v37 = vadd.f32 %v994_v33, %v993_v29 }
  0xf8   :  { %1097 = vtanh.f32 %v624_v31  ;;  %v492_v36 = vadd.f32 %v901_v32, %v1584_v62  ;;  %v996_v38 = vpop.f32.mrf.mxu1 }
  0xf9   :  { %v1092_v39 = vpop.eup %1091  ;;  %v903_v41 = vpop.f32.mrf.mxu0 }
  0xfa   :  { %v747_v42 = vmul.f32 %v1092_v39, %v1593_v34  ;;  %v629_v43 = vadd.f32 %v995_v37, %v492_v36  ;;  %v904_v44 = vadd.f32 %v903_v41, %v902_v35  ;;  %v997_v45 = vpop.f32.mrf.mxu1 }
  0xfb   :  { %v905_v46 = vpop.f32.mrf.mxu0  ;;  %v998_v49 = vadd.f32 %v997_v45, %v996_v38 }
  0xfc   :  { %v780_v47 = vadd.f32 %v1599_v40, %v747_v42  ;;  %1099 = vtanh.f32 %v629_v43  ;;  %v495_v48 = vadd.f32 %v904_v44, %v1584_v62  ;;  %v999_v50 = vpop.f32.mrf.mxu1 }
  0xfd   :  { %v1094_v51 = vpop.eup %1093  ;;  %v906_v52 = vpop.f32.mrf.mxu0 }
  0xfe   :  { %806 = vst [vmem:[%s1757_s5] sm:$0xff] %v780_v47  ;;  %v748_v53 = vmul.f32 %v1094_v51, %v1593_v34  ;;  %v632_v54 = vadd.f32 %v998_v49, %v495_v48  ;;  %v907_v55 = vadd.f32 %v906_v52, %v905_v46  ;;  %v1000_v56 = vpop.f32.mrf.mxu1 }
  0xff   :  { %v908_v57 = vpop.f32.mrf.mxu0  ;;  %v1001_v60 = vadd.f32 %v1000_v56, %v999_v50 }
 0x100   :  { %v781_v58 = vadd.f32 %v1599_v40, %v748_v53  ;;  %1101 = vtanh.f32 %v632_v54  ;;  %v500_v59 = vadd.f32 %v907_v55, %v1584_v62  ;;  %v1002_v61 = vpop.f32.mrf.mxu1 }
 0x101   :  { %v1096_v63 = vpop.eup %1095  ;;  %v909_v0 = vpop.f32.mrf.mxu0 }
 0x102   :  { %807 = vst [vmem:[%s1757_s5 + $0x8] sm:$0xff] %v781_v58  ;;  %v749_v1 = vmul.f32 %v1096_v63, %v1593_v34  ;;  %v637_v2 = vadd.f32 %v1001_v60, %v500_v59  ;;  %v910_v3 = vadd.f32 %v909_v0, %v908_v57  ;;  %v1003_v4 = vpop.f32.mrf.mxu1 }
 0x103   :  { %v911_v5 = vpop.f32.mrf.mxu0  ;;  %v1004_v8 = vadd.f32 %v1003_v4, %v1002_v61 }
 0x104   :  { %v782_v6 = vadd.f32 %v1599_v40, %v749_v1  ;;  %1103 = vtanh.f32 %v637_v2  ;;  %v503_v7 = vadd.f32 %v910_v3, %v1584_v62  ;;  %v1005_v9 = vpop.f32.mrf.mxu1 }
 0x105   :  { %v1098_v10 = vpop.eup %1097  ;;  %v912_v11 = vpop.f32.mrf.mxu0 }
 0x106   :  { %808 = vst [vmem:[%s1757_s5 + $0x10] sm:$0xff] %v782_v6  ;;  %v750_v12 = vmul.f32 %v1098_v10, %v1593_v34  ;;  %v640_v13 = vadd.f32 %v1004_v8, %v503_v7  ;;  %v913_v14 = vadd.f32 %v912_v11, %v911_v5  ;;  %v1006_v15 = vpop.f32.mrf.mxu1 }
 0x107   :  { %v914_v16 = vpop.f32.mrf.mxu0  ;;  %v1007_v19 = vadd.f32 %v1006_v15, %v1005_v9 }
 0x108   :  { %v783_v17 = vadd.f32 %v1599_v40, %v750_v12  ;;  %1105 = vtanh.f32 %v640_v13  ;;  %v508_v18 = vadd.f32 %v913_v14, %v1584_v62  ;;  %v1008_v20 = vpop.f32.mrf.mxu1 }
 0x109   :  { %v1100_v21 = vpop.eup %1099  ;;  %v915_v22 = vpop.f32.mrf.mxu0 }
 0x10a   :  { %809 = vst [vmem:[%s1757_s5 + $0x18] sm:$0xff] %v783_v17  ;;  %v751_v23 = vmul.f32 %v1100_v21, %v1593_v34  ;;  %v645_v24 = vadd.f32 %v1007_v19, %v508_v18  ;;  %v916_v25 = vadd.f32 %v915_v22, %v914_v16  ;;  %v1009_v26 = vpop.f32.mrf.mxu1 }
 0x10b   :  { %v917_v27 = vpop.f32.mrf.mxu0  ;;  %v1010_v30 = vadd.f32 %v1009_v26, %v1008_v20 }
 0x10c   :  { %v784_v28 = vadd.f32 %v1599_v40, %v751_v23  ;;  %1107 = vtanh.f32 %v645_v24  ;;  %v511_v29 = vadd.f32 %v916_v25, %v1584_v62  ;;  %v1011_v31 = vpop.f32.mrf.mxu1 }
 0x10d   :  { %v1102_v32 = vpop.eup %1101  ;;  %v918_v33 = vpop.f32.mrf.mxu0 }
 0x10e   :  { %810 = vst [vmem:[%s1757_s5 + $0x20] sm:$0xff] %v784_v28  ;;  %v752_v35 = vmul.f32 %v1102_v32, %v1593_v34  ;;  %v648_v36 = vadd.f32 %v1010_v30, %v511_v29  ;;  %v919_v37 = vadd.f32 %v918_v33, %v917_v27  ;;  %v1012_v38 = vpop.f32.mrf.mxu1 }
 0x10f   :  { %v920_v39 = vpop.f32.mrf.mxu0  ;;  %v1013_v43 = vadd.f32 %v1012_v38, %v1011_v31 }
 0x110   :  { %v785_v41 = vadd.f32 %v1599_v40, %v752_v35  ;;  %1109 = vtanh.f32 %v648_v36  ;;  %v516_v42 = vadd.f32 %v919_v37, %v1584_v62  ;;  %v1014_v44 = vpop.f32.mrf.mxu1 }
 0x111   :  { %v1104_v45 = vpop.eup %1103  ;;  %v921_v46 = vpop.f32.mrf.mxu0 }
 0x112   :  { %811 = vst [vmem:[%s1757_s5 + $0x28] sm:$0xff] %v785_v41  ;;  %v753_v47 = vmul.f32 %v1104_v45, %v1593_v34  ;;  %v653_v48 = vadd.f32 %v1013_v43, %v516_v42  ;;  %v922_v49 = vadd.f32 %v921_v46, %v920_v39  ;;  %v1015_v50 = vpop.f32.mrf.mxu1 }
 0x113   :  { %v923_v51 = vpop.f32.mrf.mxu0  ;;  %v1016_v54 = vadd.f32 %v1015_v50, %v1014_v44 }
 0x114   :  { %v786_v52 = vadd.f32 %v1599_v40, %v753_v47  ;;  %1111 = vtanh.f32 %v653_v48  ;;  %v519_v53 = vadd.f32 %v922_v49, %v1584_v62  ;;  %v1017_v55 = vpop.f32.mrf.mxu1 }
 0x115   :  { %v1106_v56 = vpop.eup %1105  ;;  %v924_v57 = vpop.f32.mrf.mxu0 }
 0x116   :  { %812 = vst [vmem:[%s1757_s5 + $0x30] sm:$0xff] %v786_v52  ;;  %v754_v58 = vmul.f32 %v1106_v56, %v1593_v34  ;;  %v656_v59 = vadd.f32 %v1016_v54, %v519_v53  ;;  %v925_v60 = vadd.f32 %v924_v57, %v923_v51  ;;  %v1018_v61 = vpop.f32.mrf.mxu1 }
 0x117   :  { %v926_v63 = vpop.f32.mrf.mxu0  ;;  %v1019_v2 = vadd.f32 %v1018_v61, %v1017_v55 }
 0x118   :  { %v787_v0 = vadd.f32 %v1599_v40, %v754_v58  ;;  %1113 = vtanh.f32 %v656_v59  ;;  %v524_v1 = vadd.f32 %v925_v60, %v1584_v62  ;;  %v1020_v3 = vpop.f32.mrf.mxu1 }
 0x119   :  { %v1108_v4 = vpop.eup %1107  ;;  %v927_v5 = vpop.f32.mrf.mxu0 }
 0x11a   :  { %813 = vst [vmem:[%s1757_s5 + $0x38] sm:$0xff] %v787_v0  ;;  %v755_v6 = vmul.f32 %v1108_v4, %v1593_v34  ;;  %v661_v7 = vadd.f32 %v1019_v2, %v524_v1  ;;  %v928_v8 = vadd.f32 %v927_v5, %v926_v63  ;;  %v1021_v9 = vpop.f32.mrf.mxu1 }
 0x11b   :  { %v929_v10 = vpop.f32.mrf.mxu0  ;;  %v1022_v13 = vadd.f32 %v1021_v9, %v1020_v3 }
 0x11c   :  { %v788_v11 = vadd.f32 %v1599_v40, %v755_v6  ;;  %1115 = vtanh.f32 %v661_v7  ;;  %v527_v12 = vadd.f32 %v928_v8, %v1584_v62  ;;  %v1023_v14 = vpop.f32.mrf.mxu1 }
 0x11d   :  { %v1110_v15 = vpop.eup %1109  ;;  %v930_v16 = vpop.f32.mrf.mxu0 }
 0x11e   :  { %814 = vst [vmem:[%s1757_s5 + $0x40] sm:$0xff] %v788_v11  ;;  %v756_v17 = vmul.f32 %v1110_v15, %v1593_v34  ;;  %v664_v18 = vadd.f32 %v1022_v13, %v527_v12  ;;  %v931_v19 = vadd.f32 %v930_v16, %v929_v10  ;;  %v1024_v20 = vpop.f32.mrf.mxu1 }
 0x11f   :  { %v932_v21 = vpop.f32.mrf.mxu0  ;;  %v1025_v24 = vadd.f32 %v1024_v20, %v1023_v14 }
 0x120   :  { %v789_v22 = vadd.f32 %v1599_v40, %v756_v17  ;;  %1117 = vtanh.f32 %v664_v18  ;;  %v532_v23 = vadd.f32 %v931_v19, %v1584_v62  ;;  %v1026_v25 = vpop.f32.mrf.mxu1 }
 0x121   :  { %v1112_v26 = vpop.eup %1111  ;;  %v933_v27 = vpop.f32.mrf.mxu0 }
 0x122   :  { %815 = vst [vmem:[%s1757_s5 + $0x48] sm:$0xff] %v789_v22  ;;  %v757_v28 = vmul.f32 %v1112_v26, %v1593_v34  ;;  %v669_v29 = vadd.f32 %v1025_v24, %v532_v23  ;;  %v934_v30 = vadd.f32 %v933_v27, %v932_v21  ;;  %v1027_v31 = vpop.f32.mrf.mxu1 }
 0x123   :  { %v935_v32 = vpop.f32.mrf.mxu0  ;;  %v1028_v36 = vadd.f32 %v1027_v31, %v1026_v25 }
 0x124   :  { %v790_v33 = vadd.f32 %v1599_v40, %v757_v28  ;;  %1119 = vtanh.f32 %v669_v29  ;;  %v535_v35 = vadd.f32 %v934_v30, %v1584_v62  ;;  %v1029_v37 = vpop.f32.mrf.mxu1 }
 0x125   :  { %v1114_v38 = vpop.eup %1113  ;;  %v936_v39 = vpop.f32.mrf.mxu0 }
 0x126   :  { %816 = vst [vmem:[%s1757_s5 + $0x50] sm:$0xff] %v790_v33  ;;  %v758_v41 = vmul.f32 %v1114_v38, %v1593_v34  ;;  %v672_v42 = vadd.f32 %v1028_v36, %v535_v35  ;;  %v937_v43 = vadd.f32 %v936_v39, %v935_v32  ;;  %v1030_v44 = vpop.f32.mrf.mxu1 }
 0x127   :  { %v938_v45 = vpop.f32.mrf.mxu0  ;;  %v1031_v48 = vadd.f32 %v1030_v44, %v1029_v37 }
 0x128   :  { %v791_v46 = vadd.f32 %v1599_v40, %v758_v41  ;;  %1121 = vtanh.f32 %v672_v42  ;;  %v540_v47 = vadd.f32 %v937_v43, %v1584_v62  ;;  %v1032_v49 = vpop.f32.mrf.mxu1 }
 0x129   :  { %v1116_v50 = vpop.eup %1115  ;;  %v939_v51 = vpop.f32.mrf.mxu0 }
 0x12a   :  { %817 = vst [vmem:[%s1757_s5 + $0x58] sm:$0xff] %v791_v46  ;;  %v759_v52 = vmul.f32 %v1116_v50, %v1593_v34  ;;  %v677_v53 = vadd.f32 %v1031_v48, %v540_v47  ;;  %v940_v54 = vadd.f32 %v939_v51, %v938_v45  ;;  %v1033_v55 = vpop.f32.mrf.mxu1 }
 0x12b   :  { %v941_v56 = vpop.f32.mrf.mxu0  ;;  %v1034_v59 = vadd.f32 %v1033_v55, %v1032_v49 }
 0x12c   :  { %v792_v57 = vadd.f32 %v1599_v40, %v759_v52  ;;  %1123 = vtanh.f32 %v677_v53  ;;  %v543_v58 = vadd.f32 %v940_v54, %v1584_v62  ;;  %v1035_v60 = vpop.f32.mrf.mxu1 }
 0x12d   :  { %v1118_v61 = vpop.eup %1117  ;;  %v942_v63 = vpop.f32.mrf.mxu0 }
 0x12e   :  { %818 = vst [vmem:[%s1757_s5 + $0x60] sm:$0xff] %v792_v57  ;;  %v760_v0 = vmul.f32 %v1118_v61, %v1593_v34  ;;  %v680_v1 = vadd.f32 %v1034_v59, %v543_v58  ;;  %v943_v2 = vadd.f32 %v942_v63, %v941_v56  ;;  %v1036_v3 = vpop.f32.mrf.mxu1 }
 0x12f   :  { %v944_v4 = vpop.f32.mrf.mxu0  ;;  %v1037_v7 = vadd.f32 %v1036_v3, %v1035_v60 }
 0x130   :  { %v793_v5 = vadd.f32 %v1599_v40, %v760_v0  ;;  %1125 = vtanh.f32 %v680_v1  ;;  %v548_v6 = vadd.f32 %v943_v2, %v1584_v62  ;;  %v1038_v8 = vpop.f32.mrf.mxu1 }
 0x131   :  { %v1120_v9 = vpop.eup %1119  ;;  %v945_v10 = vpop.f32.mrf.mxu0 }
 0x132   :  { %819 = vst [vmem:[%s1757_s5 + $0x68] sm:$0xff] %v793_v5  ;;  %v761_v11 = vmul.f32 %v1120_v9, %v1593_v34  ;;  %v685_v12 = vadd.f32 %v1037_v7, %v548_v6  ;;  %v946_v13 = vadd.f32 %v945_v10, %v944_v4  ;;  %v1039_v14 = vpop.f32.mrf.mxu1 }
 0x133   :  { %v947_v15 = vpop.f32.mrf.mxu0  ;;  %v1040_v18 = vadd.f32 %v1039_v14, %v1038_v8 }
 0x134   :  { %v794_v16 = vadd.f32 %v1599_v40, %v761_v11  ;;  %1127 = vtanh.f32 %v685_v12  ;;  %v551_v17 = vadd.f32 %v946_v13, %v1584_v62  ;;  %v1041_v19 = vpop.f32.mrf.mxu1 }
 0x135   :  { %v1122_v20 = vpop.eup %1121  ;;  %v948_v21 = vpop.f32.mrf.mxu0 }
 0x136   :  { %820 = vst [vmem:[%s1757_s5 + $0x70] sm:$0xff] %v794_v16  ;;  %v762_v22 = vmul.f32 %v1122_v20, %v1593_v34  ;;  %v688_v23 = vadd.f32 %v1040_v18, %v551_v17  ;;  %v949_v24 = vadd.f32 %v948_v21, %v947_v15  ;;  %v1042_v25 = vpop.f32.mrf.mxu1 }
 0x137   :  { %v950_v26 = vpop.f32.mrf.mxu0  ;;  %v1043_v29 = vadd.f32 %v1042_v25, %v1041_v19 }
 0x138   :  { %v795_v27 = vadd.f32 %v1599_v40, %v762_v22  ;;  %1129 = vtanh.f32 %v688_v23  ;;  %v556_v28 = vadd.f32 %v949_v24, %v1584_v62  ;;  %v1044_v30 = vpop.f32.mrf.mxu1 }
 0x139   :  { %v1124_v31 = vpop.eup %1123  ;;  %v951_v32 = vpop.f32.mrf.mxu0 }
 0x13a   :  { %821 = vst [vmem:[%s1757_s5 + $0x78] sm:$0xff] %v795_v27  ;;  %v763_v33 = vmul.f32 %v1124_v31, %v1593_v34  ;;  %v693_v35 = vadd.f32 %v1043_v29, %v556_v28  ;;  %v952_v36 = vadd.f32 %v951_v32, %v950_v26  ;;  %v1045_v37 = vpop.f32.mrf.mxu1 }
 0x13b   :  { %v953_v38 = vpop.f32.mrf.mxu0  ;;  %v1046_v42 = vadd.f32 %v1045_v37, %v1044_v30 }
 0x13c   :  { %v796_v39 = vadd.f32 %v1599_v40, %v763_v33  ;;  %1131 = vtanh.f32 %v693_v35  ;;  %v559_v41 = vadd.f32 %v952_v36, %v1584_v62  ;;  %v1047_v43 = vpop.f32.mrf.mxu1 }
 0x13d   :  { %v1126_v44 = vpop.eup %1125  ;;  %v954_v45 = vpop.f32.mrf.mxu0 }
 0x13e   :  { %822 = vst [vmem:[%s1757_s5 + $0x80] sm:$0xff] %v796_v39  ;;  %v764_v46 = vmul.f32 %v1126_v44, %v1593_v34  ;;  %v696_v47 = vadd.f32 %v1046_v42, %v559_v41  ;;  %v955_v48 = vadd.f32 %v954_v45, %v953_v38  ;;  %v1048_v49 = vpop.f32.mrf.mxu1 }
 0x13f   :  { %v956_v50 = vpop.f32.mrf.mxu0  ;;  %v1049_v53 = vadd.f32 %v1048_v49, %v1047_v43 }
 0x140   :  { %v797_v51 = vadd.f32 %v1599_v40, %v764_v46  ;;  %1133 = vtanh.f32 %v696_v47  ;;  %v564_v52 = vadd.f32 %v955_v48, %v1584_v62  ;;  %v1050_v54 = vpop.f32.mrf.mxu1 }
 0x141   :  { %v1128_v55 = vpop.eup %1127  ;;  %v957_v56 = vpop.f32.mrf.mxu0 }
 0x142   :  { %823 = vst [vmem:[%s1757_s5 + $0x88] sm:$0xff] %v797_v51  ;;  %v765_v57 = vmul.f32 %v1128_v55, %v1593_v34  ;;  %v701_v58 = vadd.f32 %v1049_v53, %v564_v52  ;;  %v958_v59 = vadd.f32 %v957_v56, %v956_v50  ;;  %v1051_v60 = vpop.f32.mrf.mxu1 }
 0x143   :  { %v959_v61 = vpop.f32.mrf.mxu0  ;;  %v1052_v1 = vadd.f32 %v1051_v60, %v1050_v54 }
 0x144   :  { %v798_v63 = vadd.f32 %v1599_v40, %v765_v57  ;;  %1135 = vtanh.f32 %v701_v58  ;;  %v567_v0 = vadd.f32 %v958_v59, %v1584_v62  ;;  %v1053_v2 = vpop.f32.mrf.mxu1 }
 0x145   :  { %v1130_v3 = vpop.eup %1129  ;;  %v960_v4 = vpop.f32.mrf.mxu0 }
 0x146   :  { %824 = vst [vmem:[%s1757_s5 + $0x90] sm:$0xff] %v798_v63  ;;  %v766_v5 = vmul.f32 %v1130_v3, %v1593_v34  ;;  %v704_v6 = vadd.f32 %v1052_v1, %v567_v0  ;;  %v961_v7 = vadd.f32 %v960_v4, %v959_v61  ;;  %v1054_v8 = vpop.f32.mrf.mxu1 }
 0x147   :  { %v962_v9 = vpop.f32.mrf.mxu0  ;;  %v1055_v12 = vadd.f32 %v1054_v8, %v1053_v2 }
 0x148   :  { %v799_v10 = vadd.f32 %v1599_v40, %v766_v5  ;;  %1137 = vtanh.f32 %v704_v6  ;;  %v572_v11 = vadd.f32 %v961_v7, %v1584_v62  ;;  %v1056_v13 = vpop.f32.mrf.mxu1 }
 0x149   :  { %v1132_v14 = vpop.eup %1131  ;;  %v963_v15 = vpop.f32.mrf.mxu0 }
 0x14a   :  { %825 = vst [vmem:[%s1757_s5 + $0x98] sm:$0xff] %v799_v10  ;;  %v767_v16 = vmul.f32 %v1132_v14, %v1593_v34  ;;  %v709_v17 = vadd.f32 %v1055_v12, %v572_v11  ;;  %v964_v18 = vadd.f32 %v963_v15, %v962_v9  ;;  %v1057_v19 = vpop.f32.mrf.mxu1 }
 0x14b   :  { %v1058_v22 = vadd.f32 %v1057_v19, %v1056_v13 }
 0x14c   :  { %v800_v20 = vadd.f32 %v1599_v40, %v767_v16  ;;  %1139 = vtanh.f32 %v709_v17  ;;  %v575_v21 = vadd.f32 %v964_v18, %v1584_v62 }
 0x14d   :  { %v1134_v23 = vpop.eup %1133 }
 0x14e   :  { %826 = vst [vmem:[%s1757_s5 + $0xa0] sm:$0xff] %v800_v20  ;;  %v768_v24 = vmul.f32 %v1134_v23, %v1593_v34  ;;  %v712_v25 = vadd.f32 %v1058_v22, %v575_v21 }
 0x150   :  { %v801_v26 = vadd.f32 %v1599_v40, %v768_v24  ;;  %1141 = vtanh.f32 %v712_v25 }
 0x151   :  { %v1136_v27 = vpop.eup %1135 }
 0x152   :  { %827 = vst [vmem:[%s1757_s5 + $0xa8] sm:$0xff] %v801_v26  ;;  %v769_v28 = vmul.f32 %v1136_v27, %v1593_v34 }
 0x154   :  { %v802_v62 = vadd.f32 %v1599_v40, %v769_v28 }
 0x155   :  { %v1138_v29 = vpop.eup %1137 }
 0x156   :  { %828 = vst [vmem:[%s1757_s5 + $0xb0] sm:$0xff] %v802_v62  ;;  %v770_v30 = vmul.f32 %v1138_v29, %v1593_v34 }
 0x158   :  { %v803_v31 = vadd.f32 %v1599_v40, %v770_v30 }
 0x159   :  { %v1140_v32 = vpop.eup %1139 }
 0x15a   :  { %829 = vst [vmem:[%s1757_s5 + $0xb8] sm:$0xff] %v803_v31  ;;  %v771_v33 = vmul.f32 %v1140_v32, %v1593_v34 }
 0x15c   :  { %v804_v35 = vadd.f32 %v1599_v40, %v771_v33 }
 0x15d   :  { %v1142_v36 = vpop.eup %1141 }
 0x15e   :  { %830 = vst [vmem:[%s1757_s5 + $0xc0] sm:$0xff] %v804_v35  ;;  %v772_v37 = vmul.f32 %v1142_v36, %v1593_v34 }
 0x160   :  { %v805_v38 = vadd.f32 %v1599_v40, %v772_v37 }
 0x162   :  { %831 = vst [vmem:[%s1757_s5 + $0xc8] sm:$0xff] %v805_v38 }

</bundles_post_ra>
